<compile_context>
chip_gen: v6e
topology: v6e:2x2x1
jax: 0.10.0
libtpu: 0.0.40
codegen_flags: <defaults>
</compile_context>

<pallas_src>
import jax
import jax.numpy as jnp
from jax import lax
from jax.experimental import pallas as pl
from jax.experimental.pallas import tpu as pltpu


def _lstm_bidir_kernel(x_ref, mask_ref,
                       w1in_ref, b1_ref, w1hh_ref,
                       w2in_ref, b2_ref, w2hh_ref,
                       bn_scale_ref, bn_shift_ref,
                       wlin_ref, blin_ref,
                       out_ref,
                       g1_scr, g2_scr, h1_scr):
    T, B, H = mask_ref.shape
    G = 4 * H                                   # gate width per direction

    # ---- hoisted, time-parallel layer-1 input projection ---------------------------
    # One (T*B, E) x (E, 8H) bf16 matmul, f32 accumulation; both biases folded in.
    g1_scr[...] = (
        jnp.dot(x_ref[...], w1in_ref[...], preferred_element_type=jnp.float32)
        + b1_ref[...])

    w1hh = w1hh_ref[...]                        # (2H, 8H) bf16 block-diag [Whh_f 0; 0 Whh_b]
    w2hh = w2hh_ref[...]                        # (H, 4H)  bf16

    zeros = jnp.zeros((B, H), jnp.float32)

    def cell(gates, h, c, m):
        # gates: (B, 4H) f32, PyTorch gate order [i, f, g, o]; elementwise math in f32.
        i = jax.nn.sigmoid(gates[:, 0:H])
        f = jax.nn.sigmoid(gates[:, H:2 * H])
        g = jnp.tanh(gates[:, 2 * H:3 * H])
        o = jax.nn.sigmoid(gates[:, 3 * H:4 * H])
        c_new = f * c + i * g
        h_new = o * jnp.tanh(c_new)
        # pack_padded_sequence masking: state only advances while t < length[b]
        return jnp.where(m, h_new, h), jnp.where(m, c_new, c)

    # ---- layer 1: forward + backward directions fused, fully unrolled --------------
    hf, cf, hb, cb = zeros, zeros, zeros, zeros
    for step in range(T):
        tf = step                               # forward time index
        tb = T - 1 - step                       # backward time index
        # single MXU push per step for BOTH directions: (B, 2H) x (2H, 8H)
        hcat = jnp.concatenate([hf, hb], axis=1).astype(jnp.bfloat16)
        gh = jnp.dot(hcat, w1hh, preferred_element_type=jnp.float32)        # (B, 8H)
        gates_f = g1_scr[tf * B:(tf + 1) * B, 0:G] + gh[:, 0:G]
        gates_b = g1_scr[tb * B:(tb + 1) * B, G:2 * G] + gh[:, G:2 * G]
        mf = mask_ref[tf] > 0.5
        mb = mask_ref[tb] > 0.5
        hf, cf = cell(gates_f, hf, cf, mf)
        hb, cb = cell(gates_b, hb, cb, mb)
        # stash layer-1 outputs for the hoisted layer-2 input projection
        h1_scr[tf * B:(tf + 1) * B, 0:H] = hf
        h1_scr[tb * B:(tb + 1) * B, H:2 * H] = hb

    # ---- hoisted layer-2 input projection: one (T*B, 2H) x (2H, 4H) matmul ----------
    g2_scr[...] = (
        jnp.dot(h1_scr[...].astype(jnp.bfloat16), w2in_ref[...],
                preferred_element_type=jnp.float32)
        + b2_ref[...])

    # ---- layer 2, backward direction (this is ht[-1]), fully unrolled ---------------
    h2, c2 = zeros, zeros
    for step in range(T):
        t = T - 1 - step
        gh2 = jnp.dot(h2.astype(jnp.bfloat16), w2hh,
                      preferred_element_type=jnp.float32)                   # (B, 4H)
        gates2 = g2_scr[t * B:(t + 1) * B, :] + gh2
        m = mask_ref[t] > 0.5
        h2, c2 = cell(gates2, h2, c2, m)

    # ---- BatchNorm1d (eval, folded affine) + Linear + ReLU ---------------------------
    y = h2 * bn_scale_ref[...] + bn_shift_ref[...]
    logits = jnp.dot(y, wlin_ref[...], preferred_element_type=jnp.float32) + blin_ref[...]
    out_ref[...] = jnp.maximum(logits, 0.0)


def lstm_variable_input_forward(tokens, lengths, params):
    """tokens: (B, T) int32, lengths: (B,) int32. Returns (B, 2) float32."""
    glove = params["glove"]
    H = params["hidden_dim"]

    x_emb = glove[tokens]                                    # frozen embedding lookup (glue)
    # nn.Dropout(0.3): identity in eval mode.
    B, T, E = x_emb.shape
    # time-major, flattened to (T*B, E); bf16 matmul operands, f32 accumulation in-kernel.
    x_flat = jnp.transpose(x_emb, (1, 0, 2)).reshape(T * B, E).astype(jnp.bfloat16)

    # pack_padded_sequence validity masks, precomputed once: (T, B, H) f32
    lengths = lengths.astype(jnp.int32)
    mask = (jnp.arange(T, dtype=jnp.int32)[:, None] < lengths[None, :]).astype(jnp.float32)
    mask = jnp.broadcast_to(mask[:, :, None], (T, B, H))

    # fused weight layouts (gate order [i, f, g, o]; weights stored (in_dim, 4H) per dir)
    w1_in = jnp.concatenate([params["wih1f"], params["wih1b"]],
                            axis=1).astype(jnp.bfloat16)                    # (E, 8H)
    b1 = jnp.concatenate([params["b1f"], params["b1b"]], axis=1)            # (1, 8H) f32
    zHH = jnp.zeros((H, 4 * H), jnp.float32)
    w1_hh = jnp.concatenate(
        [jnp.concatenate([params["whh1f"], zHH], axis=1),
         jnp.concatenate([zHH, params["whh1b"]], axis=1)],
        axis=0).astype(jnp.bfloat16)                                        # (2H, 8H) block-diag
    w2_in = params["wih2b"].astype(jnp.bfloat16)                            # (2H, 4H)
    b2 = params["b2b"]                                                      # (1, 4H) f32
    w2_hh = params["whh2b"].astype(jnp.bfloat16)                            # (H, 4H)

    # eval-mode BatchNorm1d folded into one affine transform
    bn_scale = params["bn_g"] * lax.rsqrt(params["bn_var"] + 1e-5)          # (1, H)
    bn_shift = params["bn_b"] - params["bn_mean"] * bn_scale                # (1, H)

    ins = [x_flat, mask, w1_in, b1, w1_hh, w2_in, b2, w2_hh,
           bn_scale, bn_shift, params["wlin"], params["blin"]]

    def fullspec(shape):
        nd = len(shape)
        return pl.BlockSpec(shape, lambda i, nd=nd: (0,) * nd)

    return pl.pallas_call(
        _lstm_bidir_kernel,
        out_shape=jax.ShapeDtypeStruct((B, 2), jnp.float32),
        grid_spec=pltpu.PrefetchScalarGridSpec(
            num_scalar_prefetch=0,
            grid=(1,),
            in_specs=[fullspec(a.shape) for a in ins],
            out_specs=fullspec((B, 2)),
            scratch_shapes=[
                pltpu.VMEM((T * B, 8 * H), jnp.float32),   # layer-1 gate projections (lane-dense)
                pltpu.VMEM((T * B, 4 * H), jnp.float32),   # layer-2 gate projections (lane-dense)
                pltpu.VMEM((T * B, 2 * H), jnp.float32),   # layer-1 outputs [fwd | bwd]
            ],
        ),
        compiler_params=pltpu.CompilerParams(dimension_semantics=("arbitrary",)),
    )(*ins)


def init_params(key, vocab_size, embedding_dim, hidden_dim):
    E, H = embedding_dim, hidden_dim
    keys = jax.random.split(key, 16)
    bound = 1.0 / float(jnp.sqrt(H))

    def u(kk, shape):
        return jax.random.uniform(kk, shape, jnp.float32, -bound, bound)

    glove = 0.1 * jax.random.normal(keys[0], (vocab_size, E), jnp.float32)
    glove = glove.at[0].set(0.0)                    # padding row

    return dict(
        glove=glove, hidden_dim=H,
        # LSTM layer 0, forward direction (input size E); weights stored (in, 4H)
        wih1f=u(keys[1], (E, 4 * H)), whh1f=u(keys[2], (H, 4 * H)),
        b1f=u(keys[3], (1, 4 * H)) + u(keys[4], (1, 4 * H)),
        # LSTM layer 0, backward direction
        wih1b=u(keys[5], (E, 4 * H)), whh1b=u(keys[6], (H, 4 * H)),
        b1b=u(keys[7], (1, 4 * H)) + u(keys[8], (1, 4 * H)),
        # LSTM layer 1, backward direction (input size 2H) -> produces ht[-1]
        wih2b=u(keys[9], (2 * H, 4 * H)), whh2b=u(keys[10], (H, 4 * H)),
        b2b=u(keys[11], (1, 4 * H)) + u(keys[12], (1, 4 * H)),
        # BatchNorm1d(H) fresh state
        bn_mean=jnp.zeros((1, H), jnp.float32),
        bn_var=jnp.ones((1, H), jnp.float32),
        bn_g=jnp.ones((1, H), jnp.float32),
        bn_b=jnp.zeros((1, H), jnp.float32),
        # Linear(H, 2), stored transposed
        wlin=u(keys[13], (H, 2)), blin=u(keys[14], (1, 2)),
    )


if __name__ == "__main__":
    vocab_size, E, H = 50, 32, 32
    B, T = 4, 8

    key = jax.random.PRNGKey(0)
    pkey, tkey = jax.random.split(key)
    params = init_params(pkey, vocab_size, E, H)

    tokens = jax.random.randint(tkey, (B, T), 1, vocab_size, dtype=jnp.int32)
    lengths = jnp.array([8, 5, 3, 6], jnp.int32)
    # zero (pad token) everything past each sequence length, as the dataloader would
    t_idx = jnp.arange(T)[None, :]
    tokens = jnp.where(t_idx < lengths[:, None], tokens, 0)

    out = lstm_variable_input_forward(tokens, lengths, params)
    jax.block_until_ready(out)
    assert out.shape == (B, 2) and out.dtype == jnp.float32
    print("KERNEL_OK")
</pallas_src>

<mosaic_0001>
module attributes {stable_mosaic.version = 11 : i64} {
  func.func @_lstm_bidir_kernel(%arg0: i32, %arg1: memref<32x32xbf16, #tpu.memory_space<vmem>>, %arg2: memref<8x4x32xf32, #tpu.memory_space<vmem>>, %arg3: memref<32x256xbf16, #tpu.memory_space<vmem>>, %arg4: memref<1x256xf32, #tpu.memory_space<vmem>>, %arg5: memref<64x256xbf16, #tpu.memory_space<vmem>>, %arg6: memref<64x128xbf16, #tpu.memory_space<vmem>>, %arg7: memref<1x128xf32, #tpu.memory_space<vmem>>, %arg8: memref<32x128xbf16, #tpu.memory_space<vmem>>, %arg9: memref<1x32xf32, #tpu.memory_space<vmem>>, %arg10: memref<1x32xf32, #tpu.memory_space<vmem>>, %arg11: memref<32x2xf32, #tpu.memory_space<vmem>>, %arg12: memref<1x2xf32, #tpu.memory_space<vmem>>, %arg13: memref<4x2xf32, #tpu.memory_space<vmem>>, %arg14: memref<32x256xf32, #tpu.memory_space<vmem>>, %arg15: memref<32x128xf32, #tpu.memory_space<vmem>>, %arg16: memref<32x64xf32, #tpu.memory_space<vmem>>) attributes {dimension_semantics = [#tpu.dimension_semantics<arbitrary>], iteration_bounds = array<i64: 1>, scalar_prefetch = 0 : i64, scratch_operands = 3 : i64, tpu.core_type = #tpu.core_type<tc>, window_params = [{pipeline_mode = #tpu.pipeline_mode<synchronous>, transform_indices = @transform_0, window_bounds = array<i64: 32, 32>}, {pipeline_mode = #tpu.pipeline_mode<synchronous>, transform_indices = @transform_1, window_bounds = array<i64: 8, 4, 32>}, {pipeline_mode = #tpu.pipeline_mode<synchronous>, transform_indices = @transform_2, window_bounds = array<i64: 32, 256>}, {pipeline_mode = #tpu.pipeline_mode<synchronous>, transform_indices = @transform_3, window_bounds = array<i64: 1, 256>}, {pipeline_mode = #tpu.pipeline_mode<synchronous>, transform_indices = @transform_4, window_bounds = array<i64: 64, 256>}, {pipeline_mode = #tpu.pipeline_mode<synchronous>, transform_indices = @transform_5, window_bounds = array<i64: 64, 128>}, {pipeline_mode = #tpu.pipeline_mode<synchronous>, transform_indices = @transform_6, window_bounds = array<i64: 1, 128>}, {pipeline_mode = #tpu.pipeline_mode<synchronous>, transform_indices = @transform_7, window_bounds = array<i64: 32, 128>}, {pipeline_mode = #tpu.pipeline_mode<synchronous>, transform_indices = @transform_8, window_bounds = array<i64: 1, 32>}, {pipeline_mode = #tpu.pipeline_mode<synchronous>, transform_indices = @transform_9, window_bounds = array<i64: 1, 32>}, {pipeline_mode = #tpu.pipeline_mode<synchronous>, transform_indices = @transform_10, window_bounds = array<i64: 32, 2>}, {pipeline_mode = #tpu.pipeline_mode<synchronous>, transform_indices = @transform_11, window_bounds = array<i64: 1, 2>}, {pipeline_mode = #tpu.pipeline_mode<synchronous>, transform_indices = @transform_12, window_bounds = array<i64: 4, 2>}]} {
    %c0 = arith.constant 0 : index
    %c0_0 = arith.constant 0 : index
    %0 = vector.load %arg1[%c0, %c0_0] : memref<32x32xbf16, #tpu.memory_space<vmem>>, vector<32x32xbf16>
    %c0_1 = arith.constant 0 : index
    %c0_2 = arith.constant 0 : index
    %1 = vector.load %arg3[%c0_1, %c0_2] : memref<32x256xbf16, #tpu.memory_space<vmem>>, vector<32x256xbf16>
    %cst = arith.constant dense<0.000000e+00> : vector<32x256xf32>
    %2 = tpu.matmul %0, %1, %cst {dimension_numbers = #tpu.dot_dimension_numbers<[1], [0], [0], [1], [0, 0, 1, 1], [], []>} : vector<32x32xbf16>, vector<32x256xbf16>, vector<32x256xf32> -> vector<32x256xf32>
    %c0_3 = arith.constant 0 : index
    %c0_4 = arith.constant 0 : index
    %3 = vector.load %arg4[%c0_3, %c0_4] : memref<1x256xf32, #tpu.memory_space<vmem>>, vector<1x256xf32>
    %4 = vector.broadcast %3 : vector<1x256xf32> to vector<32x256xf32>
    %5 = arith.addf %2, %4 : vector<32x256xf32>
    %c0_5 = arith.constant 0 : index
    %c0_6 = arith.constant 0 : index
    %6 = vector.load %arg14[%c0_5, %c0_6] : memref<32x256xf32, #tpu.memory_space<vmem>>, vector<32x256xf32>
    tpu.vector_store %arg14[%c0_5, %c0_6], %5 {strides = array<i32>} : memref<32x256xf32, #tpu.memory_space<vmem>>, vector<32x256xf32>,
    %c0_7 = arith.constant 0 : index
    %c0_8 = arith.constant 0 : index
    %7 = vector.load %arg5[%c0_7, %c0_8] : memref<64x256xbf16, #tpu.memory_space<vmem>>, vector<64x256xbf16>
    %c0_9 = arith.constant 0 : index
    %c0_10 = arith.constant 0 : index
    %8 = vector.load %arg8[%c0_9, %c0_10] : memref<32x128xbf16, #tpu.memory_space<vmem>>, vector<32x128xbf16>
    %cst_11 = arith.constant 0.000000e+00 : f32
    %9 = vector.broadcast %cst_11 : f32 to vector<4x32xf32>
    %10 = tpu.concatenate %9, %9 in 1 : vector<4x32xf32>, vector<4x32xf32> -> vector<4x64xf32>
    %11 = arith.truncf %10 : vector<4x64xf32> to vector<4x64xbf16>
    %cst_12 = arith.constant dense<0.000000e+00> : vector<4x256xf32>
    %12 = tpu.matmul %11, %7, %cst_12 {dimension_numbers = #tpu.dot_dimension_numbers<[1], [0], [0], [1], [0, 0, 1, 1], [], []>} : vector<4x64xbf16>, vector<64x256xbf16>, vector<4x256xf32> -> vector<4x256xf32>
    %c0_13 = arith.constant 0 : index
    %c0_14 = arith.constant 0 : index
    %13 = vector.load %arg14[%c0_13, %c0_14] : memref<32x256xf32, #tpu.memory_space<vmem>>, vector<4x128xf32>
    %14 = vector.extract_strided_slice %12 {offsets = [0, 0], sizes = [4, 128], strides = [1, 1]} : vector<4x256xf32> to vector<4x128xf32>
    %15 = arith.addf %13, %14 : vector<4x128xf32>
    %c28 = arith.constant 28 : index
    %c128 = arith.constant 128 : index
    %16 = vector.load %arg14[%c28, %c128] : memref<32x256xf32, #tpu.memory_space<vmem>>, vector<4x128xf32>
    %17 = vector.extract_strided_slice %12 {offsets = [0, 128], sizes = [4, 128], strides = [1, 1]} : vector<4x256xf32> to vector<4x128xf32>
    %18 = arith.addf %16, %17 : vector<4x128xf32>
    %c0_15 = arith.constant 0 : index
    %c0_16 = arith.constant 0 : index
    %c0_17 = arith.constant 0 : index
    %19 = vector.load %arg2[%c0_15, %c0_16, %c0_17] : memref<8x4x32xf32, #tpu.memory_space<vmem>>, vector<1x4x32xf32>
    %20 = vector.shape_cast %19 : vector<1x4x32xf32> to vector<4x32xf32>
    %cst_18 = arith.constant 5.000000e-01 : f32
    %21 = vector.broadcast %cst_18 : f32 to vector<4x32xf32>
    %22 = arith.cmpf ogt, %20, %21 : vector<4x32xf32>
    %c7 = arith.constant 7 : index
    %c0_19 = arith.constant 0 : index
    %c0_20 = arith.constant 0 : index
    %23 = vector.load %arg2[%c7, %c0_19, %c0_20] : memref<8x4x32xf32, #tpu.memory_space<vmem>>, vector<1x4x32xf32>
    %24 = vector.shape_cast %23 : vector<1x4x32xf32> to vector<4x32xf32>
    %cst_21 = arith.constant 5.000000e-01 : f32
    %25 = vector.broadcast %cst_21 : f32 to vector<4x32xf32>
    %26 = arith.cmpf ogt, %24, %25 : vector<4x32xf32>
    %27 = vector.extract_strided_slice %15 {offsets = [0, 0], sizes = [4, 32], strides = [1, 1]} : vector<4x128xf32> to vector<4x32xf32>
    %28 = arith.negf %27 : vector<4x32xf32>
    %29 = math.exp %28 : vector<4x32xf32>
    %cst_22 = arith.constant 1.000000e+00 : f32
    %30 = vector.broadcast %cst_22 : f32 to vector<4x32xf32>
    %31 = arith.addf %30, %29 : vector<4x32xf32>
    %32 = arith.divf %30, %31 : vector<4x32xf32>
    %33 = vector.extract_strided_slice %15 {offsets = [0, 32], sizes = [4, 32], strides = [1, 1]} : vector<4x128xf32> to vector<4x32xf32>
    %34 = arith.negf %33 : vector<4x32xf32>
    %35 = math.exp %34 : vector<4x32xf32>
    %cst_23 = arith.constant 1.000000e+00 : f32
    %36 = vector.broadcast %cst_23 : f32 to vector<4x32xf32>
    %37 = arith.addf %36, %35 : vector<4x32xf32>
    %38 = arith.divf %36, %37 : vector<4x32xf32>
    %39 = vector.extract_strided_slice %15 {offsets = [0, 64], sizes = [4, 32], strides = [1, 1]} : vector<4x128xf32> to vector<4x32xf32>
    %40 = math.tanh %39 : vector<4x32xf32>
    %41 = vector.extract_strided_slice %15 {offsets = [0, 96], sizes = [4, 32], strides = [1, 1]} : vector<4x128xf32> to vector<4x32xf32>
    %42 = arith.negf %41 : vector<4x32xf32>
    %43 = math.exp %42 : vector<4x32xf32>
    %cst_24 = arith.constant 1.000000e+00 : f32
    %44 = vector.broadcast %cst_24 : f32 to vector<4x32xf32>
    %45 = arith.addf %44, %43 : vector<4x32xf32>
    %46 = arith.divf %44, %45 : vector<4x32xf32>
    %47 = arith.mulf %38, %9 : vector<4x32xf32>
    %48 = arith.mulf %32, %40 : vector<4x32xf32>
    %49 = arith.addf %47, %48 : vector<4x32xf32>
    %50 = math.tanh %49 : vector<4x32xf32>
    %51 = arith.mulf %46, %50 : vector<4x32xf32>
    %52 = arith.select %22, %51, %9 : vector<4x32xi1>, vector<4x32xf32>
    %53 = arith.select %22, %49, %9 : vector<4x32xi1>, vector<4x32xf32>
    %54 = vector.extract_strided_slice %18 {offsets = [0, 0], sizes = [4, 32], strides = [1, 1]} : vector<4x128xf32> to vector<4x32xf32>
    %55 = arith.negf %54 : vector<4x32xf32>
    %56 = math.exp %55 : vector<4x32xf32>
    %cst_25 = arith.constant 1.000000e+00 : f32
    %57 = vector.broadcast %cst_25 : f32 to vector<4x32xf32>
    %58 = arith.addf %57, %56 : vector<4x32xf32>
    %59 = arith.divf %57, %58 : vector<4x32xf32>
    %60 = vector.extract_strided_slice %18 {offsets = [0, 32], sizes = [4, 32], strides = [1, 1]} : vector<4x128xf32> to vector<4x32xf32>
    %61 = arith.negf %60 : vector<4x32xf32>
    %62 = math.exp %61 : vector<4x32xf32>
    %cst_26 = arith.constant 1.000000e+00 : f32
    %63 = vector.broadcast %cst_26 : f32 to vector<4x32xf32>
    %64 = arith.addf %63, %62 : vector<4x32xf32>
    %65 = arith.divf %63, %64 : vector<4x32xf32>
    %66 = vector.extract_strided_slice %18 {offsets = [0, 64], sizes = [4, 32], strides = [1, 1]} : vector<4x128xf32> to vector<4x32xf32>
    %67 = math.tanh %66 : vector<4x32xf32>
    %68 = vector.extract_strided_slice %18 {offsets = [0, 96], sizes = [4, 32], strides = [1, 1]} : vector<4x128xf32> to vector<4x32xf32>
    %69 = arith.negf %68 : vector<4x32xf32>
    %70 = math.exp %69 : vector<4x32xf32>
    %cst_27 = arith.constant 1.000000e+00 : f32
    %71 = vector.broadcast %cst_27 : f32 to vector<4x32xf32>
    %72 = arith.addf %71, %70 : vector<4x32xf32>
    %73 = arith.divf %71, %72 : vector<4x32xf32>
    %74 = arith.mulf %65, %9 : vector<4x32xf32>
    %75 = arith.mulf %59, %67 : vector<4x32xf32>
    %76 = arith.addf %74, %75 : vector<4x32xf32>
    %77 = math.tanh %76 : vector<4x32xf32>
    %78 = arith.mulf %73, %77 : vector<4x32xf32>
    %79 = arith.select %26, %78, %9 : vector<4x32xi1>, vector<4x32xf32>
    %80 = arith.select %26, %76, %9 : vector<4x32xi1>, vector<4x32xf32>
    %c0_28 = arith.constant 0 : index
    %c0_29 = arith.constant 0 : index
    %81 = vector.load %arg16[%c0_28, %c0_29] : memref<32x64xf32, #tpu.memory_space<vmem>>, vector<4x32xf32>
    tpu.vector_store %arg16[%c0_28, %c0_29], %52 {strides = array<i32>} : memref<32x64xf32, #tpu.memory_space<vmem>>, vector<4x32xf32>,
    %c28_30 = arith.constant 28 : index
    %c32 = arith.constant 32 : index
    %82 = vector.load %arg16[%c28_30, %c32] : memref<32x64xf32, #tpu.memory_space<vmem>>, vector<4x32xf32>
    tpu.vector_store %arg16[%c28_30, %c32], %79 {strides = array<i32>} : memref<32x64xf32, #tpu.memory_space<vmem>>, vector<4x32xf32>,
    %83 = tpu.concatenate %52, %79 in 1 : vector<4x32xf32>, vector<4x32xf32> -> vector<4x64xf32>
    %84 = arith.truncf %83 : vector<4x64xf32> to vector<4x64xbf16>
    %cst_31 = arith.constant dense<0.000000e+00> : vector<4x256xf32>
    %85 = tpu.matmul %84, %7, %cst_31 {dimension_numbers = #tpu.dot_dimension_numbers<[1], [0], [0], [1], [0, 0, 1, 1], [], []>} : vector<4x64xbf16>, vector<64x256xbf16>, vector<4x256xf32> -> vector<4x256xf32>
    %c4 = arith.constant 4 : index
    %c0_32 = arith.constant 0 : index
    %86 = vector.load %arg14[%c4, %c0_32] : memref<32x256xf32, #tpu.memory_space<vmem>>, vector<4x128xf32>
    %87 = vector.extract_strided_slice %85 {offsets = [0, 0], sizes = [4, 128], strides = [1, 1]} : vector<4x256xf32> to vector<4x128xf32>
    %88 = arith.addf %86, %87 : vector<4x128xf32>
    %c24 = arith.constant 24 : index
    %c128_33 = arith.constant 128 : index
    %89 = vector.load %arg14[%c24, %c128_33] : memref<32x256xf32, #tpu.memory_space<vmem>>, vector<4x128xf32>
    %90 = vector.extract_strided_slice %85 {offsets = [0, 128], sizes = [4, 128], strides = [1, 1]} : vector<4x256xf32> to vector<4x128xf32>
    %91 = arith.addf %89, %90 : vector<4x128xf32>
    %c1 = arith.constant 1 : index
    %c0_34 = arith.constant 0 : index
    %c0_35 = arith.constant 0 : index
    %92 = vector.load %arg2[%c1, %c0_34, %c0_35] : memref<8x4x32xf32, #tpu.memory_space<vmem>>, vector<1x4x32xf32>
    %93 = vector.shape_cast %92 : vector<1x4x32xf32> to vector<4x32xf32>
    %cst_36 = arith.constant 5.000000e-01 : f32
    %94 = vector.broadcast %cst_36 : f32 to vector<4x32xf32>
    %95 = arith.cmpf ogt, %93, %94 : vector<4x32xf32>
    %c6 = arith.constant 6 : index
    %c0_37 = arith.constant 0 : index
    %c0_38 = arith.constant 0 : index
    %96 = vector.load %arg2[%c6, %c0_37, %c0_38] : memref<8x4x32xf32, #tpu.memory_space<vmem>>, vector<1x4x32xf32>
    %97 = vector.shape_cast %96 : vector<1x4x32xf32> to vector<4x32xf32>
    %cst_39 = arith.constant 5.000000e-01 : f32
    %98 = vector.broadcast %cst_39 : f32 to vector<4x32xf32>
    %99 = arith.cmpf ogt, %97, %98 : vector<4x32xf32>
    %100 = vector.extract_strided_slice %88 {offsets = [0, 0], sizes = [4, 32], strides = [1, 1]} : vector<4x128xf32> to vector<4x32xf32>
    %101 = arith.negf %100 : vector<4x32xf32>
    %102 = math.exp %101 : vector<4x32xf32>
    %cst_40 = arith.constant 1.000000e+00 : f32
    %103 = vector.broadcast %cst_40 : f32 to vector<4x32xf32>
    %104 = arith.addf %103, %102 : vector<4x32xf32>
    %105 = arith.divf %103, %104 : vector<4x32xf32>
    %106 = vector.extract_strided_slice %88 {offsets = [0, 32], sizes = [4, 32], strides = [1, 1]} : vector<4x128xf32> to vector<4x32xf32>
    %107 = arith.negf %106 : vector<4x32xf32>
    %108 = math.exp %107 : vector<4x32xf32>
    %cst_41 = arith.constant 1.000000e+00 : f32
    %109 = vector.broadcast %cst_41 : f32 to vector<4x32xf32>
    %110 = arith.addf %109, %108 : vector<4x32xf32>
    %111 = arith.divf %109, %110 : vector<4x32xf32>
    %112 = vector.extract_strided_slice %88 {offsets = [0, 64], sizes = [4, 32], strides = [1, 1]} : vector<4x128xf32> to vector<4x32xf32>
    %113 = math.tanh %112 : vector<4x32xf32>
    %114 = vector.extract_strided_slice %88 {offsets = [0, 96], sizes = [4, 32], strides = [1, 1]} : vector<4x128xf32> to vector<4x32xf32>
    %115 = arith.negf %114 : vector<4x32xf32>
    %116 = math.exp %115 : vector<4x32xf32>
    %cst_42 = arith.constant 1.000000e+00 : f32
    %117 = vector.broadcast %cst_42 : f32 to vector<4x32xf32>
    %118 = arith.addf %117, %116 : vector<4x32xf32>
    %119 = arith.divf %117, %118 : vector<4x32xf32>
    %120 = arith.mulf %111, %53 : vector<4x32xf32>
    %121 = arith.mulf %105, %113 : vector<4x32xf32>
    %122 = arith.addf %120, %121 : vector<4x32xf32>
    %123 = math.tanh %122 : vector<4x32xf32>
    %124 = arith.mulf %119, %123 : vector<4x32xf32>
    %125 = arith.select %95, %124, %52 : vector<4x32xi1>, vector<4x32xf32>
    %126 = arith.select %95, %122, %53 : vector<4x32xi1>, vector<4x32xf32>
    %127 = vector.extract_strided_slice %91 {offsets = [0, 0], sizes = [4, 32], strides = [1, 1]} : vector<4x128xf32> to vector<4x32xf32>
    %128 = arith.negf %127 : vector<4x32xf32>
    %129 = math.exp %128 : vector<4x32xf32>
    %cst_43 = arith.constant 1.000000e+00 : f32
    %130 = vector.broadcast %cst_43 : f32 to vector<4x32xf32>
    %131 = arith.addf %130, %129 : vector<4x32xf32>
    %132 = arith.divf %130, %131 : vector<4x32xf32>
    %133 = vector.extract_strided_slice %91 {offsets = [0, 32], sizes = [4, 32], strides = [1, 1]} : vector<4x128xf32> to vector<4x32xf32>
    %134 = arith.negf %133 : vector<4x32xf32>
    %135 = math.exp %134 : vector<4x32xf32>
    %cst_44 = arith.constant 1.000000e+00 : f32
    %136 = vector.broadcast %cst_44 : f32 to vector<4x32xf32>
    %137 = arith.addf %136, %135 : vector<4x32xf32>
    %138 = arith.divf %136, %137 : vector<4x32xf32>
    %139 = vector.extract_strided_slice %91 {offsets = [0, 64], sizes = [4, 32], strides = [1, 1]} : vector<4x128xf32> to vector<4x32xf32>
    %140 = math.tanh %139 : vector<4x32xf32>
    %141 = vector.extract_strided_slice %91 {offsets = [0, 96], sizes = [4, 32], strides = [1, 1]} : vector<4x128xf32> to vector<4x32xf32>
    %142 = arith.negf %141 : vector<4x32xf32>
    %143 = math.exp %142 : vector<4x32xf32>
    %cst_45 = arith.constant 1.000000e+00 : f32
    %144 = vector.broadcast %cst_45 : f32 to vector<4x32xf32>
    %145 = arith.addf %144, %143 : vector<4x32xf32>
    %146 = arith.divf %144, %145 : vector<4x32xf32>
    %147 = arith.mulf %138, %80 : vector<4x32xf32>
    %148 = arith.mulf %132, %140 : vector<4x32xf32>
    %149 = arith.addf %147, %148 : vector<4x32xf32>
    %150 = math.tanh %149 : vector<4x32xf32>
    %151 = arith.mulf %146, %150 : vector<4x32xf32>
    %152 = arith.select %99, %151, %79 : vector<4x32xi1>, vector<4x32xf32>
    %153 = arith.select %99, %149, %80 : vector<4x32xi1>, vector<4x32xf32>
    %c4_46 = arith.constant 4 : index
    %c0_47 = arith.constant 0 : index
    %154 = vector.load %arg16[%c4_46, %c0_47] : memref<32x64xf32, #tpu.memory_space<vmem>>, vector<4x32xf32>
    tpu.vector_store %arg16[%c4_46, %c0_47], %125 {strides = array<i32>} : memref<32x64xf32, #tpu.memory_space<vmem>>, vector<4x32xf32>,
    %c24_48 = arith.constant 24 : index
    %c32_49 = arith.constant 32 : index
    %155 = vector.load %arg16[%c24_48, %c32_49] : memref<32x64xf32, #tpu.memory_space<vmem>>, vector<4x32xf32>
    tpu.vector_store %arg16[%c24_48, %c32_49], %152 {strides = array<i32>} : memref<32x64xf32, #tpu.memory_space<vmem>>, vector<4x32xf32>,
    %156 = tpu.concatenate %125, %152 in 1 : vector<4x32xf32>, vector<4x32xf32> -> vector<4x64xf32>
    %157 = arith.truncf %156 : vector<4x64xf32> to vector<4x64xbf16>
    %cst_50 = arith.constant dense<0.000000e+00> : vector<4x256xf32>
    %158 = tpu.matmul %157, %7, %cst_50 {dimension_numbers = #tpu.dot_dimension_numbers<[1], [0], [0], [1], [0, 0, 1, 1], [], []>} : vector<4x64xbf16>, vector<64x256xbf16>, vector<4x256xf32> -> vector<4x256xf32>
    %c8 = arith.constant 8 : index
    %c0_51 = arith.constant 0 : index
    %159 = vector.load %arg14[%c8, %c0_51] : memref<32x256xf32, #tpu.memory_space<vmem>>, vector<4x128xf32>
    %160 = vector.extract_strided_slice %158 {offsets = [0, 0], sizes = [4, 128], strides = [1, 1]} : vector<4x256xf32> to vector<4x128xf32>
    %161 = arith.addf %159, %160 : vector<4x128xf32>
    %c20 = arith.constant 20 : index
    %c128_52 = arith.constant 128 : index
    %162 = vector.load %arg14[%c20, %c128_52] : memref<32x256xf32, #tpu.memory_space<vmem>>, vector<4x128xf32>
    %163 = vector.extract_strided_slice %158 {offsets = [0, 128], sizes = [4, 128], strides = [1, 1]} : vector<4x256xf32> to vector<4x128xf32>
    %164 = arith.addf %162, %163 : vector<4x128xf32>
    %c2 = arith.constant 2 : index
    %c0_53 = arith.constant 0 : index
    %c0_54 = arith.constant 0 : index
    %165 = vector.load %arg2[%c2, %c0_53, %c0_54] : memref<8x4x32xf32, #tpu.memory_space<vmem>>, vector<1x4x32xf32>
    %166 = vector.shape_cast %165 : vector<1x4x32xf32> to vector<4x32xf32>
    %cst_55 = arith.constant 5.000000e-01 : f32
    %167 = vector.broadcast %cst_55 : f32 to vector<4x32xf32>
    %168 = arith.cmpf ogt, %166, %167 : vector<4x32xf32>
    %c5 = arith.constant 5 : index
    %c0_56 = arith.constant 0 : index
    %c0_57 = arith.constant 0 : index
    %169 = vector.load %arg2[%c5, %c0_56, %c0_57] : memref<8x4x32xf32, #tpu.memory_space<vmem>>, vector<1x4x32xf32>
    %170 = vector.shape_cast %169 : vector<1x4x32xf32> to vector<4x32xf32>
    %cst_58 = arith.constant 5.000000e-01 : f32
    %171 = vector.broadcast %cst_58 : f32 to vector<4x32xf32>
    %172 = arith.cmpf ogt, %170, %171 : vector<4x32xf32>
    %173 = vector.extract_strided_slice %161 {offsets = [0, 0], sizes = [4, 32], strides = [1, 1]} : vector<4x128xf32> to vector<4x32xf32>
    %174 = arith.negf %173 : vector<4x32xf32>
    %175 = math.exp %174 : vector<4x32xf32>
    %cst_59 = arith.constant 1.000000e+00 : f32
    %176 = vector.broadcast %cst_59 : f32 to vector<4x32xf32>
    %177 = arith.addf %176, %175 : vector<4x32xf32>
    %178 = arith.divf %176, %177 : vector<4x32xf32>
    %179 = vector.extract_strided_slice %161 {offsets = [0, 32], sizes = [4, 32], strides = [1, 1]} : vector<4x128xf32> to vector<4x32xf32>
    %180 = arith.negf %179 : vector<4x32xf32>
    %181 = math.exp %180 : vector<4x32xf32>
    %cst_60 = arith.constant 1.000000e+00 : f32
    %182 = vector.broadcast %cst_60 : f32 to vector<4x32xf32>
    %183 = arith.addf %182, %181 : vector<4x32xf32>
    %184 = arith.divf %182, %183 : vector<4x32xf32>
    %185 = vector.extract_strided_slice %161 {offsets = [0, 64], sizes = [4, 32], strides = [1, 1]} : vector<4x128xf32> to vector<4x32xf32>
    %186 = math.tanh %185 : vector<4x32xf32>
    %187 = vector.extract_strided_slice %161 {offsets = [0, 96], sizes = [4, 32], strides = [1, 1]} : vector<4x128xf32> to vector<4x32xf32>
    %188 = arith.negf %187 : vector<4x32xf32>
    %189 = math.exp %188 : vector<4x32xf32>
    %cst_61 = arith.constant 1.000000e+00 : f32
    %190 = vector.broadcast %cst_61 : f32 to vector<4x32xf32>
    %191 = arith.addf %190, %189 : vector<4x32xf32>
    %192 = arith.divf %190, %191 : vector<4x32xf32>
    %193 = arith.mulf %184, %126 : vector<4x32xf32>
    %194 = arith.mulf %178, %186 : vector<4x32xf32>
    %195 = arith.addf %193, %194 : vector<4x32xf32>
    %196 = math.tanh %195 : vector<4x32xf32>
    %197 = arith.mulf %192, %196 : vector<4x32xf32>
    %198 = arith.select %168, %197, %125 : vector<4x32xi1>, vector<4x32xf32>
    %199 = arith.select %168, %195, %126 : vector<4x32xi1>, vector<4x32xf32>
    %200 = vector.extract_strided_slice %164 {offsets = [0, 0], sizes = [4, 32], strides = [1, 1]} : vector<4x128xf32> to vector<4x32xf32>
    %201 = arith.negf %200 : vector<4x32xf32>
    %202 = math.exp %201 : vector<4x32xf32>
    %cst_62 = arith.constant 1.000000e+00 : f32
    %203 = vector.broadcast %cst_62 : f32 to vector<4x32xf32>
    %204 = arith.addf %203, %202 : vector<4x32xf32>
    %205 = arith.divf %203, %204 : vector<4x32xf32>
    %206 = vector.extract_strided_slice %164 {offsets = [0, 32], sizes = [4, 32], strides = [1, 1]} : vector<4x128xf32> to vector<4x32xf32>
    %207 = arith.negf %206 : vector<4x32xf32>
    %208 = math.exp %207 : vector<4x32xf32>
    %cst_63 = arith.constant 1.000000e+00 : f32
    %209 = vector.broadcast %cst_63 : f32 to vector<4x32xf32>
    %210 = arith.addf %209, %208 : vector<4x32xf32>
    %211 = arith.divf %209, %210 : vector<4x32xf32>
    %212 = vector.extract_strided_slice %164 {offsets = [0, 64], sizes = [4, 32], strides = [1, 1]} : vector<4x128xf32> to vector<4x32xf32>
    %213 = math.tanh %212 : vector<4x32xf32>
    %214 = vector.extract_strided_slice %164 {offsets = [0, 96], sizes = [4, 32], strides = [1, 1]} : vector<4x128xf32> to vector<4x32xf32>
    %215 = arith.negf %214 : vector<4x32xf32>
    %216 = math.exp %215 : vector<4x32xf32>
    %cst_64 = arith.constant 1.000000e+00 : f32
    %217 = vector.broadcast %cst_64 : f32 to vector<4x32xf32>
    %218 = arith.addf %217, %216 : vector<4x32xf32>
    %219 = arith.divf %217, %218 : vector<4x32xf32>
    %220 = arith.mulf %211, %153 : vector<4x32xf32>
    %221 = arith.mulf %205, %213 : vector<4x32xf32>
    %222 = arith.addf %220, %221 : vector<4x32xf32>
    %223 = math.tanh %222 : vector<4x32xf32>
    %224 = arith.mulf %219, %223 : vector<4x32xf32>
    %225 = arith.select %172, %224, %152 : vector<4x32xi1>, vector<4x32xf32>
    %226 = arith.select %172, %222, %153 : vector<4x32xi1>, vector<4x32xf32>
    %c8_65 = arith.constant 8 : index
    %c0_66 = arith.constant 0 : index
    %227 = vector.load %arg16[%c8_65, %c0_66] : memref<32x64xf32, #tpu.memory_space<vmem>>, vector<4x32xf32>
    tpu.vector_store %arg16[%c8_65, %c0_66], %198 {strides = array<i32>} : memref<32x64xf32, #tpu.memory_space<vmem>>, vector<4x32xf32>,
    %c20_67 = arith.constant 20 : index
    %c32_68 = arith.constant 32 : index
    %228 = vector.load %arg16[%c20_67, %c32_68] : memref<32x64xf32, #tpu.memory_space<vmem>>, vector<4x32xf32>
    tpu.vector_store %arg16[%c20_67, %c32_68], %225 {strides = array<i32>} : memref<32x64xf32, #tpu.memory_space<vmem>>, vector<4x32xf32>,
    %229 = tpu.concatenate %198, %225 in 1 : vector<4x32xf32>, vector<4x32xf32> -> vector<4x64xf32>
    %230 = arith.truncf %229 : vector<4x64xf32> to vector<4x64xbf16>
    %cst_69 = arith.constant dense<0.000000e+00> : vector<4x256xf32>
    %231 = tpu.matmul %230, %7, %cst_69 {dimension_numbers = #tpu.dot_dimension_numbers<[1], [0], [0], [1], [0, 0, 1, 1], [], []>} : vector<4x64xbf16>, vector<64x256xbf16>, vector<4x256xf32> -> vector<4x256xf32>
    %c12 = arith.constant 12 : index
    %c0_70 = arith.constant 0 : index
    %232 = vector.load %arg14[%c12, %c0_70] : memref<32x256xf32, #tpu.memory_space<vmem>>, vector<4x128xf32>
    %233 = vector.extract_strided_slice %231 {offsets = [0, 0], sizes = [4, 128], strides = [1, 1]} : vector<4x256xf32> to vector<4x128xf32>
    %234 = arith.addf %232, %233 : vector<4x128xf32>
    %c16 = arith.constant 16 : index
    %c128_71 = arith.constant 128 : index
    %235 = vector.load %arg14[%c16, %c128_71] : memref<32x256xf32, #tpu.memory_space<vmem>>, vector<4x128xf32>
    %236 = vector.extract_strided_slice %231 {offsets = [0, 128], sizes = [4, 128], strides = [1, 1]} : vector<4x256xf32> to vector<4x128xf32>
    %237 = arith.addf %235, %236 : vector<4x128xf32>
    %c3 = arith.constant 3 : index
    %c0_72 = arith.constant 0 : index
    %c0_73 = arith.constant 0 : index
    %238 = vector.load %arg2[%c3, %c0_72, %c0_73] : memref<8x4x32xf32, #tpu.memory_space<vmem>>, vector<1x4x32xf32>
    %239 = vector.shape_cast %238 : vector<1x4x32xf32> to vector<4x32xf32>
    %cst_74 = arith.constant 5.000000e-01 : f32
    %240 = vector.broadcast %cst_74 : f32 to vector<4x32xf32>
    %241 = arith.cmpf ogt, %239, %240 : vector<4x32xf32>
    %c4_75 = arith.constant 4 : index
    %c0_76 = arith.constant 0 : index
    %c0_77 = arith.constant 0 : index
    %242 = vector.load %arg2[%c4_75, %c0_76, %c0_77] : memref<8x4x32xf32, #tpu.memory_space<vmem>>, vector<1x4x32xf32>
    %243 = vector.shape_cast %242 : vector<1x4x32xf32> to vector<4x32xf32>
    %cst_78 = arith.constant 5.000000e-01 : f32
    %244 = vector.broadcast %cst_78 : f32 to vector<4x32xf32>
    %245 = arith.cmpf ogt, %243, %244 : vector<4x32xf32>
    %246 = vector.extract_strided_slice %234 {offsets = [0, 0], sizes = [4, 32], strides = [1, 1]} : vector<4x128xf32> to vector<4x32xf32>
    %247 = arith.negf %246 : vector<4x32xf32>
    %248 = math.exp %247 : vector<4x32xf32>
    %cst_79 = arith.constant 1.000000e+00 : f32
    %249 = vector.broadcast %cst_79 : f32 to vector<4x32xf32>
    %250 = arith.addf %249, %248 : vector<4x32xf32>
    %251 = arith.divf %249, %250 : vector<4x32xf32>
    %252 = vector.extract_strided_slice %234 {offsets = [0, 32], sizes = [4, 32], strides = [1, 1]} : vector<4x128xf32> to vector<4x32xf32>
    %253 = arith.negf %252 : vector<4x32xf32>
    %254 = math.exp %253 : vector<4x32xf32>
    %cst_80 = arith.constant 1.000000e+00 : f32
    %255 = vector.broadcast %cst_80 : f32 to vector<4x32xf32>
    %256 = arith.addf %255, %254 : vector<4x32xf32>
    %257 = arith.divf %255, %256 : vector<4x32xf32>
    %258 = vector.extract_strided_slice %234 {offsets = [0, 64], sizes = [4, 32], strides = [1, 1]} : vector<4x128xf32> to vector<4x32xf32>
    %259 = math.tanh %258 : vector<4x32xf32>
    %260 = vector.extract_strided_slice %234 {offsets = [0, 96], sizes = [4, 32], strides = [1, 1]} : vector<4x128xf32> to vector<4x32xf32>
    %261 = arith.negf %260 : vector<4x32xf32>
    %262 = math.exp %261 : vector<4x32xf32>
    %cst_81 = arith.constant 1.000000e+00 : f32
    %263 = vector.broadcast %cst_81 : f32 to vector<4x32xf32>
    %264 = arith.addf %263, %262 : vector<4x32xf32>
    %265 = arith.divf %263, %264 : vector<4x32xf32>
    %266 = arith.mulf %257, %199 : vector<4x32xf32>
    %267 = arith.mulf %251, %259 : vector<4x32xf32>
    %268 = arith.addf %266, %267 : vector<4x32xf32>
    %269 = math.tanh %268 : vector<4x32xf32>
    %270 = arith.mulf %265, %269 : vector<4x32xf32>
    %271 = arith.select %241, %270, %198 : vector<4x32xi1>, vector<4x32xf32>
    %272 = arith.select %241, %268, %199 : vector<4x32xi1>, vector<4x32xf32>
    %273 = vector.extract_strided_slice %237 {offsets = [0, 0], sizes = [4, 32], strides = [1, 1]} : vector<4x128xf32> to vector<4x32xf32>
    %274 = arith.negf %273 : vector<4x32xf32>
    %275 = math.exp %274 : vector<4x32xf32>
    %cst_82 = arith.constant 1.000000e+00 : f32
    %276 = vector.broadcast %cst_82 : f32 to vector<4x32xf32>
    %277 = arith.addf %276, %275 : vector<4x32xf32>
    %278 = arith.divf %276, %277 : vector<4x32xf32>
    %279 = vector.extract_strided_slice %237 {offsets = [0, 32], sizes = [4, 32], strides = [1, 1]} : vector<4x128xf32> to vector<4x32xf32>
    %280 = arith.negf %279 : vector<4x32xf32>
    %281 = math.exp %280 : vector<4x32xf32>
    %cst_83 = arith.constant 1.000000e+00 : f32
    %282 = vector.broadcast %cst_83 : f32 to vector<4x32xf32>
    %283 = arith.addf %282, %281 : vector<4x32xf32>
    %284 = arith.divf %282, %283 : vector<4x32xf32>
    %285 = vector.extract_strided_slice %237 {offsets = [0, 64], sizes = [4, 32], strides = [1, 1]} : vector<4x128xf32> to vector<4x32xf32>
    %286 = math.tanh %285 : vector<4x32xf32>
    %287 = vector.extract_strided_slice %237 {offsets = [0, 96], sizes = [4, 32], strides = [1, 1]} : vector<4x128xf32> to vector<4x32xf32>
    %288 = arith.negf %287 : vector<4x32xf32>
    %289 = math.exp %288 : vector<4x32xf32>
    %cst_84 = arith.constant 1.000000e+00 : f32
    %290 = vector.broadcast %cst_84 : f32 to vector<4x32xf32>
    %291 = arith.addf %290, %289 : vector<4x32xf32>
    %292 = arith.divf %290, %291 : vector<4x32xf32>
    %293 = arith.mulf %284, %226 : vector<4x32xf32>
    %294 = arith.mulf %278, %286 : vector<4x32xf32>
    %295 = arith.addf %293, %294 : vector<4x32xf32>
    %296 = math.tanh %295 : vector<4x32xf32>
    %297 = arith.mulf %292, %296 : vector<4x32xf32>
    %298 = arith.select %245, %297, %225 : vector<4x32xi1>, vector<4x32xf32>
    %299 = arith.select %245, %295, %226 : vector<4x32xi1>, vector<4x32xf32>
    %c12_85 = arith.constant 12 : index
    %c0_86 = arith.constant 0 : index
    %300 = vector.load %arg16[%c12_85, %c0_86] : memref<32x64xf32, #tpu.memory_space<vmem>>, vector<4x32xf32>
    tpu.vector_store %arg16[%c12_85, %c0_86], %271 {strides = array<i32>} : memref<32x64xf32, #tpu.memory_space<vmem>>, vector<4x32xf32>,
    %c16_87 = arith.constant 16 : index
    %c32_88 = arith.constant 32 : index
    %301 = vector.load %arg16[%c16_87, %c32_88] : memref<32x64xf32, #tpu.memory_space<vmem>>, vector<4x32xf32>
    tpu.vector_store %arg16[%c16_87, %c32_88], %298 {strides = array<i32>} : memref<32x64xf32, #tpu.memory_space<vmem>>, vector<4x32xf32>,
    %302 = tpu.concatenate %271, %298 in 1 : vector<4x32xf32>, vector<4x32xf32> -> vector<4x64xf32>
    %303 = arith.truncf %302 : vector<4x64xf32> to vector<4x64xbf16>
    %cst_89 = arith.constant dense<0.000000e+00> : vector<4x256xf32>
    %304 = tpu.matmul %303, %7, %cst_89 {dimension_numbers = #tpu.dot_dimension_numbers<[1], [0], [0], [1], [0, 0, 1, 1], [], []>} : vector<4x64xbf16>, vector<64x256xbf16>, vector<4x256xf32> -> vector<4x256xf32>
    %c16_90 = arith.constant 16 : index
    %c0_91 = arith.constant 0 : index
    %305 = vector.load %arg14[%c16_90, %c0_91] : memref<32x256xf32, #tpu.memory_space<vmem>>, vector<4x128xf32>
    %306 = vector.extract_strided_slice %304 {offsets = [0, 0], sizes = [4, 128], strides = [1, 1]} : vector<4x256xf32> to vector<4x128xf32>
    %307 = arith.addf %305, %306 : vector<4x128xf32>
    %c12_92 = arith.constant 12 : index
    %c128_93 = arith.constant 128 : index
    %308 = vector.load %arg14[%c12_92, %c128_93] : memref<32x256xf32, #tpu.memory_space<vmem>>, vector<4x128xf32>
    %309 = vector.extract_strided_slice %304 {offsets = [0, 128], sizes = [4, 128], strides = [1, 1]} : vector<4x256xf32> to vector<4x128xf32>
    %310 = arith.addf %308, %309 : vector<4x128xf32>
    %c4_94 = arith.constant 4 : index
    %c0_95 = arith.constant 0 : index
    %c0_96 = arith.constant 0 : index
    %311 = vector.load %arg2[%c4_94, %c0_95, %c0_96] : memref<8x4x32xf32, #tpu.memory_space<vmem>>, vector<1x4x32xf32>
    %312 = vector.shape_cast %311 : vector<1x4x32xf32> to vector<4x32xf32>
    %cst_97 = arith.constant 5.000000e-01 : f32
    %313 = vector.broadcast %cst_97 : f32 to vector<4x32xf32>
    %314 = arith.cmpf ogt, %312, %313 : vector<4x32xf32>
    %c3_98 = arith.constant 3 : index
    %c0_99 = arith.constant 0 : index
    %c0_100 = arith.constant 0 : index
    %315 = vector.load %arg2[%c3_98, %c0_99, %c0_100] : memref<8x4x32xf32, #tpu.memory_space<vmem>>, vector<1x4x32xf32>
    %316 = vector.shape_cast %315 : vector<1x4x32xf32> to vector<4x32xf32>
    %cst_101 = arith.constant 5.000000e-01 : f32
    %317 = vector.broadcast %cst_101 : f32 to vector<4x32xf32>
    %318 = arith.cmpf ogt, %316, %317 : vector<4x32xf32>
    %319 = vector.extract_strided_slice %307 {offsets = [0, 0], sizes = [4, 32], strides = [1, 1]} : vector<4x128xf32> to vector<4x32xf32>
    %320 = arith.negf %319 : vector<4x32xf32>
    %321 = math.exp %320 : vector<4x32xf32>
    %cst_102 = arith.constant 1.000000e+00 : f32
    %322 = vector.broadcast %cst_102 : f32 to vector<4x32xf32>
    %323 = arith.addf %322, %321 : vector<4x32xf32>
    %324 = arith.divf %322, %323 : vector<4x32xf32>
    %325 = vector.extract_strided_slice %307 {offsets = [0, 32], sizes = [4, 32], strides = [1, 1]} : vector<4x128xf32> to vector<4x32xf32>
    %326 = arith.negf %325 : vector<4x32xf32>
    %327 = math.exp %326 : vector<4x32xf32>
    %cst_103 = arith.constant 1.000000e+00 : f32
    %328 = vector.broadcast %cst_103 : f32 to vector<4x32xf32>
    %329 = arith.addf %328, %327 : vector<4x32xf32>
    %330 = arith.divf %328, %329 : vector<4x32xf32>
    %331 = vector.extract_strided_slice %307 {offsets = [0, 64], sizes = [4, 32], strides = [1, 1]} : vector<4x128xf32> to vector<4x32xf32>
    %332 = math.tanh %331 : vector<4x32xf32>
    %333 = vector.extract_strided_slice %307 {offsets = [0, 96], sizes = [4, 32], strides = [1, 1]} : vector<4x128xf32> to vector<4x32xf32>
    %334 = arith.negf %333 : vector<4x32xf32>
    %335 = math.exp %334 : vector<4x32xf32>
    %cst_104 = arith.constant 1.000000e+00 : f32
    %336 = vector.broadcast %cst_104 : f32 to vector<4x32xf32>
    %337 = arith.addf %336, %335 : vector<4x32xf32>
    %338 = arith.divf %336, %337 : vector<4x32xf32>
    %339 = arith.mulf %330, %272 : vector<4x32xf32>
    %340 = arith.mulf %324, %332 : vector<4x32xf32>
    %341 = arith.addf %339, %340 : vector<4x32xf32>
    %342 = math.tanh %341 : vector<4x32xf32>
    %343 = arith.mulf %338, %342 : vector<4x32xf32>
    %344 = arith.select %314, %343, %271 : vector<4x32xi1>, vector<4x32xf32>
    %345 = arith.select %314, %341, %272 : vector<4x32xi1>, vector<4x32xf32>
    %346 = vector.extract_strided_slice %310 {offsets = [0, 0], sizes = [4, 32], strides = [1, 1]} : vector<4x128xf32> to vector<4x32xf32>
    %347 = arith.negf %346 : vector<4x32xf32>
    %348 = math.exp %347 : vector<4x32xf32>
    %cst_105 = arith.constant 1.000000e+00 : f32
    %349 = vector.broadcast %cst_105 : f32 to vector<4x32xf32>
    %350 = arith.addf %349, %348 : vector<4x32xf32>
    %351 = arith.divf %349, %350 : vector<4x32xf32>
    %352 = vector.extract_strided_slice %310 {offsets = [0, 32], sizes = [4, 32], strides = [1, 1]} : vector<4x128xf32> to vector<4x32xf32>
    %353 = arith.negf %352 : vector<4x32xf32>
    %354 = math.exp %353 : vector<4x32xf32>
    %cst_106 = arith.constant 1.000000e+00 : f32
    %355 = vector.broadcast %cst_106 : f32 to vector<4x32xf32>
    %356 = arith.addf %355, %354 : vector<4x32xf32>
    %357 = arith.divf %355, %356 : vector<4x32xf32>
    %358 = vector.extract_strided_slice %310 {offsets = [0, 64], sizes = [4, 32], strides = [1, 1]} : vector<4x128xf32> to vector<4x32xf32>
    %359 = math.tanh %358 : vector<4x32xf32>
    %360 = vector.extract_strided_slice %310 {offsets = [0, 96], sizes = [4, 32], strides = [1, 1]} : vector<4x128xf32> to vector<4x32xf32>
    %361 = arith.negf %360 : vector<4x32xf32>
    %362 = math.exp %361 : vector<4x32xf32>
    %cst_107 = arith.constant 1.000000e+00 : f32
    %363 = vector.broadcast %cst_107 : f32 to vector<4x32xf32>
    %364 = arith.addf %363, %362 : vector<4x32xf32>
    %365 = arith.divf %363, %364 : vector<4x32xf32>
    %366 = arith.mulf %357, %299 : vector<4x32xf32>
    %367 = arith.mulf %351, %359 : vector<4x32xf32>
    %368 = arith.addf %366, %367 : vector<4x32xf32>
    %369 = math.tanh %368 : vector<4x32xf32>
    %370 = arith.mulf %365, %369 : vector<4x32xf32>
    %371 = arith.select %318, %370, %298 : vector<4x32xi1>, vector<4x32xf32>
    %372 = arith.select %318, %368, %299 : vector<4x32xi1>, vector<4x32xf32>
    %c16_108 = arith.constant 16 : index
    %c0_109 = arith.constant 0 : index
    %373 = vector.load %arg16[%c16_108, %c0_109] : memref<32x64xf32, #tpu.memory_space<vmem>>, vector<4x32xf32>
    tpu.vector_store %arg16[%c16_108, %c0_109], %344 {strides = array<i32>} : memref<32x64xf32, #tpu.memory_space<vmem>>, vector<4x32xf32>,
    %c12_110 = arith.constant 12 : index
    %c32_111 = arith.constant 32 : index
    %374 = vector.load %arg16[%c12_110, %c32_111] : memref<32x64xf32, #tpu.memory_space<vmem>>, vector<4x32xf32>
    tpu.vector_store %arg16[%c12_110, %c32_111], %371 {strides = array<i32>} : memref<32x64xf32, #tpu.memory_space<vmem>>, vector<4x32xf32>,
    %375 = tpu.concatenate %344, %371 in 1 : vector<4x32xf32>, vector<4x32xf32> -> vector<4x64xf32>
    %376 = arith.truncf %375 : vector<4x64xf32> to vector<4x64xbf16>
    %cst_112 = arith.constant dense<0.000000e+00> : vector<4x256xf32>
    %377 = tpu.matmul %376, %7, %cst_112 {dimension_numbers = #tpu.dot_dimension_numbers<[1], [0], [0], [1], [0, 0, 1, 1], [], []>} : vector<4x64xbf16>, vector<64x256xbf16>, vector<4x256xf32> -> vector<4x256xf32>
    %c20_113 = arith.constant 20 : index
    %c0_114 = arith.constant 0 : index
    %378 = vector.load %arg14[%c20_113, %c0_114] : memref<32x256xf32, #tpu.memory_space<vmem>>, vector<4x128xf32>
    %379 = vector.extract_strided_slice %377 {offsets = [0, 0], sizes = [4, 128], strides = [1, 1]} : vector<4x256xf32> to vector<4x128xf32>
    %380 = arith.addf %378, %379 : vector<4x128xf32>
    %c8_115 = arith.constant 8 : index
    %c128_116 = arith.constant 128 : index
    %381 = vector.load %arg14[%c8_115, %c128_116] : memref<32x256xf32, #tpu.memory_space<vmem>>, vector<4x128xf32>
    %382 = vector.extract_strided_slice %377 {offsets = [0, 128], sizes = [4, 128], strides = [1, 1]} : vector<4x256xf32> to vector<4x128xf32>
    %383 = arith.addf %381, %382 : vector<4x128xf32>
    %c5_117 = arith.constant 5 : index
    %c0_118 = arith.constant 0 : index
    %c0_119 = arith.constant 0 : index
    %384 = vector.load %arg2[%c5_117, %c0_118, %c0_119] : memref<8x4x32xf32, #tpu.memory_space<vmem>>, vector<1x4x32xf32>
    %385 = vector.shape_cast %384 : vector<1x4x32xf32> to vector<4x32xf32>
    %cst_120 = arith.constant 5.000000e-01 : f32
    %386 = vector.broadcast %cst_120 : f32 to vector<4x32xf32>
    %387 = arith.cmpf ogt, %385, %386 : vector<4x32xf32>
    %c2_121 = arith.constant 2 : index
    %c0_122 = arith.constant 0 : index
    %c0_123 = arith.constant 0 : index
    %388 = vector.load %arg2[%c2_121, %c0_122, %c0_123] : memref<8x4x32xf32, #tpu.memory_space<vmem>>, vector<1x4x32xf32>
    %389 = vector.shape_cast %388 : vector<1x4x32xf32> to vector<4x32xf32>
    %cst_124 = arith.constant 5.000000e-01 : f32
    %390 = vector.broadcast %cst_124 : f32 to vector<4x32xf32>
    %391 = arith.cmpf ogt, %389, %390 : vector<4x32xf32>
    %392 = vector.extract_strided_slice %380 {offsets = [0, 0], sizes = [4, 32], strides = [1, 1]} : vector<4x128xf32> to vector<4x32xf32>
    %393 = arith.negf %392 : vector<4x32xf32>
    %394 = math.exp %393 : vector<4x32xf32>
    %cst_125 = arith.constant 1.000000e+00 : f32
    %395 = vector.broadcast %cst_125 : f32 to vector<4x32xf32>
    %396 = arith.addf %395, %394 : vector<4x32xf32>
    %397 = arith.divf %395, %396 : vector<4x32xf32>
    %398 = vector.extract_strided_slice %380 {offsets = [0, 32], sizes = [4, 32], strides = [1, 1]} : vector<4x128xf32> to vector<4x32xf32>
    %399 = arith.negf %398 : vector<4x32xf32>
    %400 = math.exp %399 : vector<4x32xf32>
    %cst_126 = arith.constant 1.000000e+00 : f32
    %401 = vector.broadcast %cst_126 : f32 to vector<4x32xf32>
    %402 = arith.addf %401, %400 : vector<4x32xf32>
    %403 = arith.divf %401, %402 : vector<4x32xf32>
    %404 = vector.extract_strided_slice %380 {offsets = [0, 64], sizes = [4, 32], strides = [1, 1]} : vector<4x128xf32> to vector<4x32xf32>
    %405 = math.tanh %404 : vector<4x32xf32>
    %406 = vector.extract_strided_slice %380 {offsets = [0, 96], sizes = [4, 32], strides = [1, 1]} : vector<4x128xf32> to vector<4x32xf32>
    %407 = arith.negf %406 : vector<4x32xf32>
    %408 = math.exp %407 : vector<4x32xf32>
    %cst_127 = arith.constant 1.000000e+00 : f32
    %409 = vector.broadcast %cst_127 : f32 to vector<4x32xf32>
    %410 = arith.addf %409, %408 : vector<4x32xf32>
    %411 = arith.divf %409, %410 : vector<4x32xf32>
    %412 = arith.mulf %403, %345 : vector<4x32xf32>
    %413 = arith.mulf %397, %405 : vector<4x32xf32>
    %414 = arith.addf %412, %413 : vector<4x32xf32>
    %415 = math.tanh %414 : vector<4x32xf32>
    %416 = arith.mulf %411, %415 : vector<4x32xf32>
    %417 = arith.select %387, %416, %344 : vector<4x32xi1>, vector<4x32xf32>
    %418 = arith.select %387, %414, %345 : vector<4x32xi1>, vector<4x32xf32>
    %419 = vector.extract_strided_slice %383 {offsets = [0, 0], sizes = [4, 32], strides = [1, 1]} : vector<4x128xf32> to vector<4x32xf32>
    %420 = arith.negf %419 : vector<4x32xf32>
    %421 = math.exp %420 : vector<4x32xf32>
    %cst_128 = arith.constant 1.000000e+00 : f32
    %422 = vector.broadcast %cst_128 : f32 to vector<4x32xf32>
    %423 = arith.addf %422, %421 : vector<4x32xf32>
    %424 = arith.divf %422, %423 : vector<4x32xf32>
    %425 = vector.extract_strided_slice %383 {offsets = [0, 32], sizes = [4, 32], strides = [1, 1]} : vector<4x128xf32> to vector<4x32xf32>
    %426 = arith.negf %425 : vector<4x32xf32>
    %427 = math.exp %426 : vector<4x32xf32>
    %cst_129 = arith.constant 1.000000e+00 : f32
    %428 = vector.broadcast %cst_129 : f32 to vector<4x32xf32>
    %429 = arith.addf %428, %427 : vector<4x32xf32>
    %430 = arith.divf %428, %429 : vector<4x32xf32>
    %431 = vector.extract_strided_slice %383 {offsets = [0, 64], sizes = [4, 32], strides = [1, 1]} : vector<4x128xf32> to vector<4x32xf32>
    %432 = math.tanh %431 : vector<4x32xf32>
    %433 = vector.extract_strided_slice %383 {offsets = [0, 96], sizes = [4, 32], strides = [1, 1]} : vector<4x128xf32> to vector<4x32xf32>
    %434 = arith.negf %433 : vector<4x32xf32>
    %435 = math.exp %434 : vector<4x32xf32>
    %cst_130 = arith.constant 1.000000e+00 : f32
    %436 = vector.broadcast %cst_130 : f32 to vector<4x32xf32>
    %437 = arith.addf %436, %435 : vector<4x32xf32>
    %438 = arith.divf %436, %437 : vector<4x32xf32>
    %439 = arith.mulf %430, %372 : vector<4x32xf32>
    %440 = arith.mulf %424, %432 : vector<4x32xf32>
    %441 = arith.addf %439, %440 : vector<4x32xf32>
    %442 = math.tanh %441 : vector<4x32xf32>
    %443 = arith.mulf %438, %442 : vector<4x32xf32>
    %444 = arith.select %391, %443, %371 : vector<4x32xi1>, vector<4x32xf32>
    %445 = arith.select %391, %441, %372 : vector<4x32xi1>, vector<4x32xf32>
    %c20_131 = arith.constant 20 : index
    %c0_132 = arith.constant 0 : index
    %446 = vector.load %arg16[%c20_131, %c0_132] : memref<32x64xf32, #tpu.memory_space<vmem>>, vector<4x32xf32>
    tpu.vector_store %arg16[%c20_131, %c0_132], %417 {strides = array<i32>} : memref<32x64xf32, #tpu.memory_space<vmem>>, vector<4x32xf32>,
    %c8_133 = arith.constant 8 : index
    %c32_134 = arith.constant 32 : index
    %447 = vector.load %arg16[%c8_133, %c32_134] : memref<32x64xf32, #tpu.memory_space<vmem>>, vector<4x32xf32>
    tpu.vector_store %arg16[%c8_133, %c32_134], %444 {strides = array<i32>} : memref<32x64xf32, #tpu.memory_space<vmem>>, vector<4x32xf32>,
    %448 = tpu.concatenate %417, %444 in 1 : vector<4x32xf32>, vector<4x32xf32> -> vector<4x64xf32>
    %449 = arith.truncf %448 : vector<4x64xf32> to vector<4x64xbf16>
    %cst_135 = arith.constant dense<0.000000e+00> : vector<4x256xf32>
    %450 = tpu.matmul %449, %7, %cst_135 {dimension_numbers = #tpu.dot_dimension_numbers<[1], [0], [0], [1], [0, 0, 1, 1], [], []>} : vector<4x64xbf16>, vector<64x256xbf16>, vector<4x256xf32> -> vector<4x256xf32>
    %c24_136 = arith.constant 24 : index
    %c0_137 = arith.constant 0 : index
    %451 = vector.load %arg14[%c24_136, %c0_137] : memref<32x256xf32, #tpu.memory_space<vmem>>, vector<4x128xf32>
    %452 = vector.extract_strided_slice %450 {offsets = [0, 0], sizes = [4, 128], strides = [1, 1]} : vector<4x256xf32> to vector<4x128xf32>
    %453 = arith.addf %451, %452 : vector<4x128xf32>
    %c4_138 = arith.constant 4 : index
    %c128_139 = arith.constant 128 : index
    %454 = vector.load %arg14[%c4_138, %c128_139] : memref<32x256xf32, #tpu.memory_space<vmem>>, vector<4x128xf32>
    %455 = vector.extract_strided_slice %450 {offsets = [0, 128], sizes = [4, 128], strides = [1, 1]} : vector<4x256xf32> to vector<4x128xf32>
    %456 = arith.addf %454, %455 : vector<4x128xf32>
    %c6_140 = arith.constant 6 : index
    %c0_141 = arith.constant 0 : index
    %c0_142 = arith.constant 0 : index
    %457 = vector.load %arg2[%c6_140, %c0_141, %c0_142] : memref<8x4x32xf32, #tpu.memory_space<vmem>>, vector<1x4x32xf32>
    %458 = vector.shape_cast %457 : vector<1x4x32xf32> to vector<4x32xf32>
    %cst_143 = arith.constant 5.000000e-01 : f32
    %459 = vector.broadcast %cst_143 : f32 to vector<4x32xf32>
    %460 = arith.cmpf ogt, %458, %459 : vector<4x32xf32>
    %c1_144 = arith.constant 1 : index
    %c0_145 = arith.constant 0 : index
    %c0_146 = arith.constant 0 : index
    %461 = vector.load %arg2[%c1_144, %c0_145, %c0_146] : memref<8x4x32xf32, #tpu.memory_space<vmem>>, vector<1x4x32xf32>
    %462 = vector.shape_cast %461 : vector<1x4x32xf32> to vector<4x32xf32>
    %cst_147 = arith.constant 5.000000e-01 : f32
    %463 = vector.broadcast %cst_147 : f32 to vector<4x32xf32>
    %464 = arith.cmpf ogt, %462, %463 : vector<4x32xf32>
    %465 = vector.extract_strided_slice %453 {offsets = [0, 0], sizes = [4, 32], strides = [1, 1]} : vector<4x128xf32> to vector<4x32xf32>
    %466 = arith.negf %465 : vector<4x32xf32>
    %467 = math.exp %466 : vector<4x32xf32>
    %cst_148 = arith.constant 1.000000e+00 : f32
    %468 = vector.broadcast %cst_148 : f32 to vector<4x32xf32>
    %469 = arith.addf %468, %467 : vector<4x32xf32>
    %470 = arith.divf %468, %469 : vector<4x32xf32>
    %471 = vector.extract_strided_slice %453 {offsets = [0, 32], sizes = [4, 32], strides = [1, 1]} : vector<4x128xf32> to vector<4x32xf32>
    %472 = arith.negf %471 : vector<4x32xf32>
    %473 = math.exp %472 : vector<4x32xf32>
    %cst_149 = arith.constant 1.000000e+00 : f32
    %474 = vector.broadcast %cst_149 : f32 to vector<4x32xf32>
    %475 = arith.addf %474, %473 : vector<4x32xf32>
    %476 = arith.divf %474, %475 : vector<4x32xf32>
    %477 = vector.extract_strided_slice %453 {offsets = [0, 64], sizes = [4, 32], strides = [1, 1]} : vector<4x128xf32> to vector<4x32xf32>
    %478 = math.tanh %477 : vector<4x32xf32>
    %479 = vector.extract_strided_slice %453 {offsets = [0, 96], sizes = [4, 32], strides = [1, 1]} : vector<4x128xf32> to vector<4x32xf32>
    %480 = arith.negf %479 : vector<4x32xf32>
    %481 = math.exp %480 : vector<4x32xf32>
    %cst_150 = arith.constant 1.000000e+00 : f32
    %482 = vector.broadcast %cst_150 : f32 to vector<4x32xf32>
    %483 = arith.addf %482, %481 : vector<4x32xf32>
    %484 = arith.divf %482, %483 : vector<4x32xf32>
    %485 = arith.mulf %476, %418 : vector<4x32xf32>
    %486 = arith.mulf %470, %478 : vector<4x32xf32>
    %487 = arith.addf %485, %486 : vector<4x32xf32>
    %488 = math.tanh %487 : vector<4x32xf32>
    %489 = arith.mulf %484, %488 : vector<4x32xf32>
    %490 = arith.select %460, %489, %417 : vector<4x32xi1>, vector<4x32xf32>
    %491 = arith.select %460, %487, %418 : vector<4x32xi1>, vector<4x32xf32>
    %492 = vector.extract_strided_slice %456 {offsets = [0, 0], sizes = [4, 32], strides = [1, 1]} : vector<4x128xf32> to vector<4x32xf32>
    %493 = arith.negf %492 : vector<4x32xf32>
    %494 = math.exp %493 : vector<4x32xf32>
    %cst_151 = arith.constant 1.000000e+00 : f32
    %495 = vector.broadcast %cst_151 : f32 to vector<4x32xf32>
    %496 = arith.addf %495, %494 : vector<4x32xf32>
    %497 = arith.divf %495, %496 : vector<4x32xf32>
    %498 = vector.extract_strided_slice %456 {offsets = [0, 32], sizes = [4, 32], strides = [1, 1]} : vector<4x128xf32> to vector<4x32xf32>
    %499 = arith.negf %498 : vector<4x32xf32>
    %500 = math.exp %499 : vector<4x32xf32>
    %cst_152 = arith.constant 1.000000e+00 : f32
    %501 = vector.broadcast %cst_152 : f32 to vector<4x32xf32>
    %502 = arith.addf %501, %500 : vector<4x32xf32>
    %503 = arith.divf %501, %502 : vector<4x32xf32>
    %504 = vector.extract_strided_slice %456 {offsets = [0, 64], sizes = [4, 32], strides = [1, 1]} : vector<4x128xf32> to vector<4x32xf32>
    %505 = math.tanh %504 : vector<4x32xf32>
    %506 = vector.extract_strided_slice %456 {offsets = [0, 96], sizes = [4, 32], strides = [1, 1]} : vector<4x128xf32> to vector<4x32xf32>
    %507 = arith.negf %506 : vector<4x32xf32>
    %508 = math.exp %507 : vector<4x32xf32>
    %cst_153 = arith.constant 1.000000e+00 : f32
    %509 = vector.broadcast %cst_153 : f32 to vector<4x32xf32>
    %510 = arith.addf %509, %508 : vector<4x32xf32>
    %511 = arith.divf %509, %510 : vector<4x32xf32>
    %512 = arith.mulf %503, %445 : vector<4x32xf32>
    %513 = arith.mulf %497, %505 : vector<4x32xf32>
    %514 = arith.addf %512, %513 : vector<4x32xf32>
    %515 = math.tanh %514 : vector<4x32xf32>
    %516 = arith.mulf %511, %515 : vector<4x32xf32>
    %517 = arith.select %464, %516, %444 : vector<4x32xi1>, vector<4x32xf32>
    %518 = arith.select %464, %514, %445 : vector<4x32xi1>, vector<4x32xf32>
    %c24_154 = arith.constant 24 : index
    %c0_155 = arith.constant 0 : index
    %519 = vector.load %arg16[%c24_154, %c0_155] : memref<32x64xf32, #tpu.memory_space<vmem>>, vector<4x32xf32>
    tpu.vector_store %arg16[%c24_154, %c0_155], %490 {strides = array<i32>} : memref<32x64xf32, #tpu.memory_space<vmem>>, vector<4x32xf32>,
    %c4_156 = arith.constant 4 : index
    %c32_157 = arith.constant 32 : index
    %520 = vector.load %arg16[%c4_156, %c32_157] : memref<32x64xf32, #tpu.memory_space<vmem>>, vector<4x32xf32>
    tpu.vector_store %arg16[%c4_156, %c32_157], %517 {strides = array<i32>} : memref<32x64xf32, #tpu.memory_space<vmem>>, vector<4x32xf32>,
    %521 = tpu.concatenate %490, %517 in 1 : vector<4x32xf32>, vector<4x32xf32> -> vector<4x64xf32>
    %522 = arith.truncf %521 : vector<4x64xf32> to vector<4x64xbf16>
    %cst_158 = arith.constant dense<0.000000e+00> : vector<4x256xf32>
    %523 = tpu.matmul %522, %7, %cst_158 {dimension_numbers = #tpu.dot_dimension_numbers<[1], [0], [0], [1], [0, 0, 1, 1], [], []>} : vector<4x64xbf16>, vector<64x256xbf16>, vector<4x256xf32> -> vector<4x256xf32>
    %c28_159 = arith.constant 28 : index
    %c0_160 = arith.constant 0 : index
    %524 = vector.load %arg14[%c28_159, %c0_160] : memref<32x256xf32, #tpu.memory_space<vmem>>, vector<4x128xf32>
    %525 = vector.extract_strided_slice %523 {offsets = [0, 0], sizes = [4, 128], strides = [1, 1]} : vector<4x256xf32> to vector<4x128xf32>
    %526 = arith.addf %524, %525 : vector<4x128xf32>
    %c0_161 = arith.constant 0 : index
    %c128_162 = arith.constant 128 : index
    %527 = vector.load %arg14[%c0_161, %c128_162] : memref<32x256xf32, #tpu.memory_space<vmem>>, vector<4x128xf32>
    %528 = vector.extract_strided_slice %523 {offsets = [0, 128], sizes = [4, 128], strides = [1, 1]} : vector<4x256xf32> to vector<4x128xf32>
    %529 = arith.addf %527, %528 : vector<4x128xf32>
    %c7_163 = arith.constant 7 : index
    %c0_164 = arith.constant 0 : index
    %c0_165 = arith.constant 0 : index
    %530 = vector.load %arg2[%c7_163, %c0_164, %c0_165] : memref<8x4x32xf32, #tpu.memory_space<vmem>>, vector<1x4x32xf32>
    %531 = vector.shape_cast %530 : vector<1x4x32xf32> to vector<4x32xf32>
    %cst_166 = arith.constant 5.000000e-01 : f32
    %532 = vector.broadcast %cst_166 : f32 to vector<4x32xf32>
    %533 = arith.cmpf ogt, %531, %532 : vector<4x32xf32>
    %c0_167 = arith.constant 0 : index
    %c0_168 = arith.constant 0 : index
    %c0_169 = arith.constant 0 : index
    %534 = vector.load %arg2[%c0_167, %c0_168, %c0_169] : memref<8x4x32xf32, #tpu.memory_space<vmem>>, vector<1x4x32xf32>
    %535 = vector.shape_cast %534 : vector<1x4x32xf32> to vector<4x32xf32>
    %cst_170 = arith.constant 5.000000e-01 : f32
    %536 = vector.broadcast %cst_170 : f32 to vector<4x32xf32>
    %537 = arith.cmpf ogt, %535, %536 : vector<4x32xf32>
    %538 = vector.extract_strided_slice %526 {offsets = [0, 0], sizes = [4, 32], strides = [1, 1]} : vector<4x128xf32> to vector<4x32xf32>
    %539 = arith.negf %538 : vector<4x32xf32>
    %540 = math.exp %539 : vector<4x32xf32>
    %cst_171 = arith.constant 1.000000e+00 : f32
    %541 = vector.broadcast %cst_171 : f32 to vector<4x32xf32>
    %542 = arith.addf %541, %540 : vector<4x32xf32>
    %543 = arith.divf %541, %542 : vector<4x32xf32>
    %544 = vector.extract_strided_slice %526 {offsets = [0, 32], sizes = [4, 32], strides = [1, 1]} : vector<4x128xf32> to vector<4x32xf32>
    %545 = arith.negf %544 : vector<4x32xf32>
    %546 = math.exp %545 : vector<4x32xf32>
    %cst_172 = arith.constant 1.000000e+00 : f32
    %547 = vector.broadcast %cst_172 : f32 to vector<4x32xf32>
    %548 = arith.addf %547, %546 : vector<4x32xf32>
    %549 = arith.divf %547, %548 : vector<4x32xf32>
    %550 = vector.extract_strided_slice %526 {offsets = [0, 64], sizes = [4, 32], strides = [1, 1]} : vector<4x128xf32> to vector<4x32xf32>
    %551 = math.tanh %550 : vector<4x32xf32>
    %552 = vector.extract_strided_slice %526 {offsets = [0, 96], sizes = [4, 32], strides = [1, 1]} : vector<4x128xf32> to vector<4x32xf32>
    %553 = arith.negf %552 : vector<4x32xf32>
    %554 = math.exp %553 : vector<4x32xf32>
    %cst_173 = arith.constant 1.000000e+00 : f32
    %555 = vector.broadcast %cst_173 : f32 to vector<4x32xf32>
    %556 = arith.addf %555, %554 : vector<4x32xf32>
    %557 = arith.divf %555, %556 : vector<4x32xf32>
    %558 = arith.mulf %549, %491 : vector<4x32xf32>
    %559 = arith.mulf %543, %551 : vector<4x32xf32>
    %560 = arith.addf %558, %559 : vector<4x32xf32>
    %561 = math.tanh %560 : vector<4x32xf32>
    %562 = arith.mulf %557, %561 : vector<4x32xf32>
    %563 = arith.select %533, %562, %490 : vector<4x32xi1>, vector<4x32xf32>
    %564 = vector.extract_strided_slice %529 {offsets = [0, 0], sizes = [4, 32], strides = [1, 1]} : vector<4x128xf32> to vector<4x32xf32>
    %565 = arith.negf %564 : vector<4x32xf32>
    %566 = math.exp %565 : vector<4x32xf32>
    %cst_174 = arith.constant 1.000000e+00 : f32
    %567 = vector.broadcast %cst_174 : f32 to vector<4x32xf32>
    %568 = arith.addf %567, %566 : vector<4x32xf32>
    %569 = arith.divf %567, %568 : vector<4x32xf32>
    %570 = vector.extract_strided_slice %529 {offsets = [0, 32], sizes = [4, 32], strides = [1, 1]} : vector<4x128xf32> to vector<4x32xf32>
    %571 = arith.negf %570 : vector<4x32xf32>
    %572 = math.exp %571 : vector<4x32xf32>
    %cst_175 = arith.constant 1.000000e+00 : f32
    %573 = vector.broadcast %cst_175 : f32 to vector<4x32xf32>
    %574 = arith.addf %573, %572 : vector<4x32xf32>
    %575 = arith.divf %573, %574 : vector<4x32xf32>
    %576 = vector.extract_strided_slice %529 {offsets = [0, 64], sizes = [4, 32], strides = [1, 1]} : vector<4x128xf32> to vector<4x32xf32>
    %577 = math.tanh %576 : vector<4x32xf32>
    %578 = vector.extract_strided_slice %529 {offsets = [0, 96], sizes = [4, 32], strides = [1, 1]} : vector<4x128xf32> to vector<4x32xf32>
    %579 = arith.negf %578 : vector<4x32xf32>
    %580 = math.exp %579 : vector<4x32xf32>
    %cst_176 = arith.constant 1.000000e+00 : f32
    %581 = vector.broadcast %cst_176 : f32 to vector<4x32xf32>
    %582 = arith.addf %581, %580 : vector<4x32xf32>
    %583 = arith.divf %581, %582 : vector<4x32xf32>
    %584 = arith.mulf %575, %518 : vector<4x32xf32>
    %585 = arith.mulf %569, %577 : vector<4x32xf32>
    %586 = arith.addf %584, %585 : vector<4x32xf32>
    %587 = math.tanh %586 : vector<4x32xf32>
    %588 = arith.mulf %583, %587 : vector<4x32xf32>
    %589 = arith.select %537, %588, %517 : vector<4x32xi1>, vector<4x32xf32>
    %c28_177 = arith.constant 28 : index
    %c0_178 = arith.constant 0 : index
    %590 = vector.load %arg16[%c28_177, %c0_178] : memref<32x64xf32, #tpu.memory_space<vmem>>, vector<4x32xf32>
    tpu.vector_store %arg16[%c28_177, %c0_178], %563 {strides = array<i32>} : memref<32x64xf32, #tpu.memory_space<vmem>>, vector<4x32xf32>,
    %c0_179 = arith.constant 0 : index
    %c32_180 = arith.constant 32 : index
    %591 = vector.load %arg16[%c0_179, %c32_180] : memref<32x64xf32, #tpu.memory_space<vmem>>, vector<4x32xf32>
    tpu.vector_store %arg16[%c0_179, %c32_180], %589 {strides = array<i32>} : memref<32x64xf32, #tpu.memory_space<vmem>>, vector<4x32xf32>,
    %c0_181 = arith.constant 0 : index
    %c0_182 = arith.constant 0 : index
    %592 = vector.load %arg16[%c0_181, %c0_182] : memref<32x64xf32, #tpu.memory_space<vmem>>, vector<32x64xf32>
    %593 = arith.truncf %592 : vector<32x64xf32> to vector<32x64xbf16>
    %c0_183 = arith.constant 0 : index
    %c0_184 = arith.constant 0 : index
    %594 = vector.load %arg6[%c0_183, %c0_184] : memref<64x128xbf16, #tpu.memory_space<vmem>>, vector<64x128xbf16>
    %cst_185 = arith.constant dense<0.000000e+00> : vector<32x128xf32>
    %595 = tpu.matmul %593, %594, %cst_185 {dimension_numbers = #tpu.dot_dimension_numbers<[1], [0], [0], [1], [0, 0, 1, 1], [], []>} : vector<32x64xbf16>, vector<64x128xbf16>, vector<32x128xf32> -> vector<32x128xf32>
    %c0_186 = arith.constant 0 : index
    %c0_187 = arith.constant 0 : index
    %596 = vector.load %arg7[%c0_186, %c0_187] : memref<1x128xf32, #tpu.memory_space<vmem>>, vector<1x128xf32>
    %597 = vector.broadcast %596 : vector<1x128xf32> to vector<32x128xf32>
    %598 = arith.addf %595, %597 : vector<32x128xf32>
    %c0_188 = arith.constant 0 : index
    %c0_189 = arith.constant 0 : index
    %599 = vector.load %arg15[%c0_188, %c0_189] : memref<32x128xf32, #tpu.memory_space<vmem>>, vector<32x128xf32>
    tpu.vector_store %arg15[%c0_188, %c0_189], %598 {strides = array<i32>} : memref<32x128xf32, #tpu.memory_space<vmem>>, vector<32x128xf32>,
    %600 = arith.truncf %9 : vector<4x32xf32> to vector<4x32xbf16>
    %cst_190 = arith.constant dense<0.000000e+00> : vector<4x128xf32>
    %601 = tpu.matmul %600, %8, %cst_190 {dimension_numbers = #tpu.dot_dimension_numbers<[1], [0], [0], [1], [0, 0, 1, 1], [], []>} : vector<4x32xbf16>, vector<32x128xbf16>, vector<4x128xf32> -> vector<4x128xf32>
    %c28_191 = arith.constant 28 : index
    %c0_192 = arith.constant 0 : index
    %602 = vector.load %arg15[%c28_191, %c0_192] : memref<32x128xf32, #tpu.memory_space<vmem>>, vector<4x128xf32>
    %603 = arith.addf %602, %601 : vector<4x128xf32>
    %c7_193 = arith.constant 7 : index
    %c0_194 = arith.constant 0 : index
    %c0_195 = arith.constant 0 : index
    %604 = vector.load %arg2[%c7_193, %c0_194, %c0_195] : memref<8x4x32xf32, #tpu.memory_space<vmem>>, vector<1x4x32xf32>
    %605 = vector.shape_cast %604 : vector<1x4x32xf32> to vector<4x32xf32>
    %cst_196 = arith.constant 5.000000e-01 : f32
    %606 = vector.broadcast %cst_196 : f32 to vector<4x32xf32>
    %607 = arith.cmpf ogt, %605, %606 : vector<4x32xf32>
    %608 = vector.extract_strided_slice %603 {offsets = [0, 0], sizes = [4, 32], strides = [1, 1]} : vector<4x128xf32> to vector<4x32xf32>
    %609 = arith.negf %608 : vector<4x32xf32>
    %610 = math.exp %609 : vector<4x32xf32>
    %cst_197 = arith.constant 1.000000e+00 : f32
    %611 = vector.broadcast %cst_197 : f32 to vector<4x32xf32>
    %612 = arith.addf %611, %610 : vector<4x32xf32>
    %613 = arith.divf %611, %612 : vector<4x32xf32>
    %614 = vector.extract_strided_slice %603 {offsets = [0, 32], sizes = [4, 32], strides = [1, 1]} : vector<4x128xf32> to vector<4x32xf32>
    %615 = arith.negf %614 : vector<4x32xf32>
    %616 = math.exp %615 : vector<4x32xf32>
    %cst_198 = arith.constant 1.000000e+00 : f32
    %617 = vector.broadcast %cst_198 : f32 to vector<4x32xf32>
    %618 = arith.addf %617, %616 : vector<4x32xf32>
    %619 = arith.divf %617, %618 : vector<4x32xf32>
    %620 = vector.extract_strided_slice %603 {offsets = [0, 64], sizes = [4, 32], strides = [1, 1]} : vector<4x128xf32> to vector<4x32xf32>
    %621 = math.tanh %620 : vector<4x32xf32>
    %622 = vector.extract_strided_slice %603 {offsets = [0, 96], sizes = [4, 32], strides = [1, 1]} : vector<4x128xf32> to vector<4x32xf32>
    %623 = arith.negf %622 : vector<4x32xf32>
    %624 = math.exp %623 : vector<4x32xf32>
    %cst_199 = arith.constant 1.000000e+00 : f32
    %625 = vector.broadcast %cst_199 : f32 to vector<4x32xf32>
    %626 = arith.addf %625, %624 : vector<4x32xf32>
    %627 = arith.divf %625, %626 : vector<4x32xf32>
    %628 = arith.mulf %619, %9 : vector<4x32xf32>
    %629 = arith.mulf %613, %621 : vector<4x32xf32>
    %630 = arith.addf %628, %629 : vector<4x32xf32>
    %631 = math.tanh %630 : vector<4x32xf32>
    %632 = arith.mulf %627, %631 : vector<4x32xf32>
    %633 = arith.select %607, %632, %9 : vector<4x32xi1>, vector<4x32xf32>
    %634 = arith.select %607, %630, %9 : vector<4x32xi1>, vector<4x32xf32>
    %635 = arith.truncf %633 : vector<4x32xf32> to vector<4x32xbf16>
    %cst_200 = arith.constant dense<0.000000e+00> : vector<4x128xf32>
    %636 = tpu.matmul %635, %8, %cst_200 {dimension_numbers = #tpu.dot_dimension_numbers<[1], [0], [0], [1], [0, 0, 1, 1], [], []>} : vector<4x32xbf16>, vector<32x128xbf16>, vector<4x128xf32> -> vector<4x128xf32>
    %c24_201 = arith.constant 24 : index
    %c0_202 = arith.constant 0 : index
    %637 = vector.load %arg15[%c24_201, %c0_202] : memref<32x128xf32, #tpu.memory_space<vmem>>, vector<4x128xf32>
    %638 = arith.addf %637, %636 : vector<4x128xf32>
    %c6_203 = arith.constant 6 : index
    %c0_204 = arith.constant 0 : index
    %c0_205 = arith.constant 0 : index
    %639 = vector.load %arg2[%c6_203, %c0_204, %c0_205] : memref<8x4x32xf32, #tpu.memory_space<vmem>>, vector<1x4x32xf32>
    %640 = vector.shape_cast %639 : vector<1x4x32xf32> to vector<4x32xf32>
    %cst_206 = arith.constant 5.000000e-01 : f32
    %641 = vector.broadcast %cst_206 : f32 to vector<4x32xf32>
    %642 = arith.cmpf ogt, %640, %641 : vector<4x32xf32>
    %643 = vector.extract_strided_slice %638 {offsets = [0, 0], sizes = [4, 32], strides = [1, 1]} : vector<4x128xf32> to vector<4x32xf32>
    %644 = arith.negf %643 : vector<4x32xf32>
    %645 = math.exp %644 : vector<4x32xf32>
    %cst_207 = arith.constant 1.000000e+00 : f32
    %646 = vector.broadcast %cst_207 : f32 to vector<4x32xf32>
    %647 = arith.addf %646, %645 : vector<4x32xf32>
    %648 = arith.divf %646, %647 : vector<4x32xf32>
    %649 = vector.extract_strided_slice %638 {offsets = [0, 32], sizes = [4, 32], strides = [1, 1]} : vector<4x128xf32> to vector<4x32xf32>
    %650 = arith.negf %649 : vector<4x32xf32>
    %651 = math.exp %650 : vector<4x32xf32>
    %cst_208 = arith.constant 1.000000e+00 : f32
    %652 = vector.broadcast %cst_208 : f32 to vector<4x32xf32>
    %653 = arith.addf %652, %651 : vector<4x32xf32>
    %654 = arith.divf %652, %653 : vector<4x32xf32>
    %655 = vector.extract_strided_slice %638 {offsets = [0, 64], sizes = [4, 32], strides = [1, 1]} : vector<4x128xf32> to vector<4x32xf32>
    %656 = math.tanh %655 : vector<4x32xf32>
    %657 = vector.extract_strided_slice %638 {offsets = [0, 96], sizes = [4, 32], strides = [1, 1]} : vector<4x128xf32> to vector<4x32xf32>
    %658 = arith.negf %657 : vector<4x32xf32>
    %659 = math.exp %658 : vector<4x32xf32>
    %cst_209 = arith.constant 1.000000e+00 : f32
    %660 = vector.broadcast %cst_209 : f32 to vector<4x32xf32>
    %661 = arith.addf %660, %659 : vector<4x32xf32>
    %662 = arith.divf %660, %661 : vector<4x32xf32>
    %663 = arith.mulf %654, %634 : vector<4x32xf32>
    %664 = arith.mulf %648, %656 : vector<4x32xf32>
    %665 = arith.addf %663, %664 : vector<4x32xf32>
    %666 = math.tanh %665 : vector<4x32xf32>
    %667 = arith.mulf %662, %666 : vector<4x32xf32>
    %668 = arith.select %642, %667, %633 : vector<4x32xi1>, vector<4x32xf32>
    %669 = arith.select %642, %665, %634 : vector<4x32xi1>, vector<4x32xf32>
    %670 = arith.truncf %668 : vector<4x32xf32> to vector<4x32xbf16>
    %cst_210 = arith.constant dense<0.000000e+00> : vector<4x128xf32>
    %671 = tpu.matmul %670, %8, %cst_210 {dimension_numbers = #tpu.dot_dimension_numbers<[1], [0], [0], [1], [0, 0, 1, 1], [], []>} : vector<4x32xbf16>, vector<32x128xbf16>, vector<4x128xf32> -> vector<4x128xf32>
    %c20_211 = arith.constant 20 : index
    %c0_212 = arith.constant 0 : index
    %672 = vector.load %arg15[%c20_211, %c0_212] : memref<32x128xf32, #tpu.memory_space<vmem>>, vector<4x128xf32>
    %673 = arith.addf %672, %671 : vector<4x128xf32>
    %c5_213 = arith.constant 5 : index
    %c0_214 = arith.constant 0 : index
    %c0_215 = arith.constant 0 : index
    %674 = vector.load %arg2[%c5_213, %c0_214, %c0_215] : memref<8x4x32xf32, #tpu.memory_space<vmem>>, vector<1x4x32xf32>
    %675 = vector.shape_cast %674 : vector<1x4x32xf32> to vector<4x32xf32>
    %cst_216 = arith.constant 5.000000e-01 : f32
    %676 = vector.broadcast %cst_216 : f32 to vector<4x32xf32>
    %677 = arith.cmpf ogt, %675, %676 : vector<4x32xf32>
    %678 = vector.extract_strided_slice %673 {offsets = [0, 0], sizes = [4, 32], strides = [1, 1]} : vector<4x128xf32> to vector<4x32xf32>
    %679 = arith.negf %678 : vector<4x32xf32>
    %680 = math.exp %679 : vector<4x32xf32>
    %cst_217 = arith.constant 1.000000e+00 : f32
    %681 = vector.broadcast %cst_217 : f32 to vector<4x32xf32>
    %682 = arith.addf %681, %680 : vector<4x32xf32>
    %683 = arith.divf %681, %682 : vector<4x32xf32>
    %684 = vector.extract_strided_slice %673 {offsets = [0, 32], sizes = [4, 32], strides = [1, 1]} : vector<4x128xf32> to vector<4x32xf32>
    %685 = arith.negf %684 : vector<4x32xf32>
    %686 = math.exp %685 : vector<4x32xf32>
    %cst_218 = arith.constant 1.000000e+00 : f32
    %687 = vector.broadcast %cst_218 : f32 to vector<4x32xf32>
    %688 = arith.addf %687, %686 : vector<4x32xf32>
    %689 = arith.divf %687, %688 : vector<4x32xf32>
    %690 = vector.extract_strided_slice %673 {offsets = [0, 64], sizes = [4, 32], strides = [1, 1]} : vector<4x128xf32> to vector<4x32xf32>
    %691 = math.tanh %690 : vector<4x32xf32>
    %692 = vector.extract_strided_slice %673 {offsets = [0, 96], sizes = [4, 32], strides = [1, 1]} : vector<4x128xf32> to vector<4x32xf32>
    %693 = arith.negf %692 : vector<4x32xf32>
    %694 = math.exp %693 : vector<4x32xf32>
    %cst_219 = arith.constant 1.000000e+00 : f32
    %695 = vector.broadcast %cst_219 : f32 to vector<4x32xf32>
    %696 = arith.addf %695, %694 : vector<4x32xf32>
    %697 = arith.divf %695, %696 : vector<4x32xf32>
    %698 = arith.mulf %689, %669 : vector<4x32xf32>
    %699 = arith.mulf %683, %691 : vector<4x32xf32>
    %700 = arith.addf %698, %699 : vector<4x32xf32>
    %701 = math.tanh %700 : vector<4x32xf32>
    %702 = arith.mulf %697, %701 : vector<4x32xf32>
    %703 = arith.select %677, %702, %668 : vector<4x32xi1>, vector<4x32xf32>
    %704 = arith.select %677, %700, %669 : vector<4x32xi1>, vector<4x32xf32>
    %705 = arith.truncf %703 : vector<4x32xf32> to vector<4x32xbf16>
    %cst_220 = arith.constant dense<0.000000e+00> : vector<4x128xf32>
    %706 = tpu.matmul %705, %8, %cst_220 {dimension_numbers = #tpu.dot_dimension_numbers<[1], [0], [0], [1], [0, 0, 1, 1], [], []>} : vector<4x32xbf16>, vector<32x128xbf16>, vector<4x128xf32> -> vector<4x128xf32>
    %c16_221 = arith.constant 16 : index
    %c0_222 = arith.constant 0 : index
    %707 = vector.load %arg15[%c16_221, %c0_222] : memref<32x128xf32, #tpu.memory_space<vmem>>, vector<4x128xf32>
    %708 = arith.addf %707, %706 : vector<4x128xf32>
    %c4_223 = arith.constant 4 : index
    %c0_224 = arith.constant 0 : index
    %c0_225 = arith.constant 0 : index
    %709 = vector.load %arg2[%c4_223, %c0_224, %c0_225] : memref<8x4x32xf32, #tpu.memory_space<vmem>>, vector<1x4x32xf32>
    %710 = vector.shape_cast %709 : vector<1x4x32xf32> to vector<4x32xf32>
    %cst_226 = arith.constant 5.000000e-01 : f32
    %711 = vector.broadcast %cst_226 : f32 to vector<4x32xf32>
    %712 = arith.cmpf ogt, %710, %711 : vector<4x32xf32>
    %713 = vector.extract_strided_slice %708 {offsets = [0, 0], sizes = [4, 32], strides = [1, 1]} : vector<4x128xf32> to vector<4x32xf32>
    %714 = arith.negf %713 : vector<4x32xf32>
    %715 = math.exp %714 : vector<4x32xf32>
    %cst_227 = arith.constant 1.000000e+00 : f32
    %716 = vector.broadcast %cst_227 : f32 to vector<4x32xf32>
    %717 = arith.addf %716, %715 : vector<4x32xf32>
    %718 = arith.divf %716, %717 : vector<4x32xf32>
    %719 = vector.extract_strided_slice %708 {offsets = [0, 32], sizes = [4, 32], strides = [1, 1]} : vector<4x128xf32> to vector<4x32xf32>
    %720 = arith.negf %719 : vector<4x32xf32>
    %721 = math.exp %720 : vector<4x32xf32>
    %cst_228 = arith.constant 1.000000e+00 : f32
    %722 = vector.broadcast %cst_228 : f32 to vector<4x32xf32>
    %723 = arith.addf %722, %721 : vector<4x32xf32>
    %724 = arith.divf %722, %723 : vector<4x32xf32>
    %725 = vector.extract_strided_slice %708 {offsets = [0, 64], sizes = [4, 32], strides = [1, 1]} : vector<4x128xf32> to vector<4x32xf32>
    %726 = math.tanh %725 : vector<4x32xf32>
    %727 = vector.extract_strided_slice %708 {offsets = [0, 96], sizes = [4, 32], strides = [1, 1]} : vector<4x128xf32> to vector<4x32xf32>
    %728 = arith.negf %727 : vector<4x32xf32>
    %729 = math.exp %728 : vector<4x32xf32>
    %cst_229 = arith.constant 1.000000e+00 : f32
    %730 = vector.broadcast %cst_229 : f32 to vector<4x32xf32>
    %731 = arith.addf %730, %729 : vector<4x32xf32>
    %732 = arith.divf %730, %731 : vector<4x32xf32>
    %733 = arith.mulf %724, %704 : vector<4x32xf32>
    %734 = arith.mulf %718, %726 : vector<4x32xf32>
    %735 = arith.addf %733, %734 : vector<4x32xf32>
    %736 = math.tanh %735 : vector<4x32xf32>
    %737 = arith.mulf %732, %736 : vector<4x32xf32>
    %738 = arith.select %712, %737, %703 : vector<4x32xi1>, vector<4x32xf32>
    %739 = arith.select %712, %735, %704 : vector<4x32xi1>, vector<4x32xf32>
    %740 = arith.truncf %738 : vector<4x32xf32> to vector<4x32xbf16>
    %cst_230 = arith.constant dense<0.000000e+00> : vector<4x128xf32>
    %741 = tpu.matmul %740, %8, %cst_230 {dimension_numbers = #tpu.dot_dimension_numbers<[1], [0], [0], [1], [0, 0, 1, 1], [], []>} : vector<4x32xbf16>, vector<32x128xbf16>, vector<4x128xf32> -> vector<4x128xf32>
    %c12_231 = arith.constant 12 : index
    %c0_232 = arith.constant 0 : index
    %742 = vector.load %arg15[%c12_231, %c0_232] : memref<32x128xf32, #tpu.memory_space<vmem>>, vector<4x128xf32>
    %743 = arith.addf %742, %741 : vector<4x128xf32>
    %c3_233 = arith.constant 3 : index
    %c0_234 = arith.constant 0 : index
    %c0_235 = arith.constant 0 : index
    %744 = vector.load %arg2[%c3_233, %c0_234, %c0_235] : memref<8x4x32xf32, #tpu.memory_space<vmem>>, vector<1x4x32xf32>
    %745 = vector.shape_cast %744 : vector<1x4x32xf32> to vector<4x32xf32>
    %cst_236 = arith.constant 5.000000e-01 : f32
    %746 = vector.broadcast %cst_236 : f32 to vector<4x32xf32>
    %747 = arith.cmpf ogt, %745, %746 : vector<4x32xf32>
    %748 = vector.extract_strided_slice %743 {offsets = [0, 0], sizes = [4, 32], strides = [1, 1]} : vector<4x128xf32> to vector<4x32xf32>
    %749 = arith.negf %748 : vector<4x32xf32>
    %750 = math.exp %749 : vector<4x32xf32>
    %cst_237 = arith.constant 1.000000e+00 : f32
    %751 = vector.broadcast %cst_237 : f32 to vector<4x32xf32>
    %752 = arith.addf %751, %750 : vector<4x32xf32>
    %753 = arith.divf %751, %752 : vector<4x32xf32>
    %754 = vector.extract_strided_slice %743 {offsets = [0, 32], sizes = [4, 32], strides = [1, 1]} : vector<4x128xf32> to vector<4x32xf32>
    %755 = arith.negf %754 : vector<4x32xf32>
    %756 = math.exp %755 : vector<4x32xf32>
    %cst_238 = arith.constant 1.000000e+00 : f32
    %757 = vector.broadcast %cst_238 : f32 to vector<4x32xf32>
    %758 = arith.addf %757, %756 : vector<4x32xf32>
    %759 = arith.divf %757, %758 : vector<4x32xf32>
    %760 = vector.extract_strided_slice %743 {offsets = [0, 64], sizes = [4, 32], strides = [1, 1]} : vector<4x128xf32> to vector<4x32xf32>
    %761 = math.tanh %760 : vector<4x32xf32>
    %762 = vector.extract_strided_slice %743 {offsets = [0, 96], sizes = [4, 32], strides = [1, 1]} : vector<4x128xf32> to vector<4x32xf32>
    %763 = arith.negf %762 : vector<4x32xf32>
    %764 = math.exp %763 : vector<4x32xf32>
    %cst_239 = arith.constant 1.000000e+00 : f32
    %765 = vector.broadcast %cst_239 : f32 to vector<4x32xf32>
    %766 = arith.addf %765, %764 : vector<4x32xf32>
    %767 = arith.divf %765, %766 : vector<4x32xf32>
    %768 = arith.mulf %759, %739 : vector<4x32xf32>
    %769 = arith.mulf %753, %761 : vector<4x32xf32>
    %770 = arith.addf %768, %769 : vector<4x32xf32>
    %771 = math.tanh %770 : vector<4x32xf32>
    %772 = arith.mulf %767, %771 : vector<4x32xf32>
    %773 = arith.select %747, %772, %738 : vector<4x32xi1>, vector<4x32xf32>
    %774 = arith.select %747, %770, %739 : vector<4x32xi1>, vector<4x32xf32>
    %775 = arith.truncf %773 : vector<4x32xf32> to vector<4x32xbf16>
    %cst_240 = arith.constant dense<0.000000e+00> : vector<4x128xf32>
    %776 = tpu.matmul %775, %8, %cst_240 {dimension_numbers = #tpu.dot_dimension_numbers<[1], [0], [0], [1], [0, 0, 1, 1], [], []>} : vector<4x32xbf16>, vector<32x128xbf16>, vector<4x128xf32> -> vector<4x128xf32>
    %c8_241 = arith.constant 8 : index
    %c0_242 = arith.constant 0 : index
    %777 = vector.load %arg15[%c8_241, %c0_242] : memref<32x128xf32, #tpu.memory_space<vmem>>, vector<4x128xf32>
    %778 = arith.addf %777, %776 : vector<4x128xf32>
    %c2_243 = arith.constant 2 : index
    %c0_244 = arith.constant 0 : index
    %c0_245 = arith.constant 0 : index
    %779 = vector.load %arg2[%c2_243, %c0_244, %c0_245] : memref<8x4x32xf32, #tpu.memory_space<vmem>>, vector<1x4x32xf32>
    %780 = vector.shape_cast %779 : vector<1x4x32xf32> to vector<4x32xf32>
    %cst_246 = arith.constant 5.000000e-01 : f32
    %781 = vector.broadcast %cst_246 : f32 to vector<4x32xf32>
    %782 = arith.cmpf ogt, %780, %781 : vector<4x32xf32>
    %783 = vector.extract_strided_slice %778 {offsets = [0, 0], sizes = [4, 32], strides = [1, 1]} : vector<4x128xf32> to vector<4x32xf32>
    %784 = arith.negf %783 : vector<4x32xf32>
    %785 = math.exp %784 : vector<4x32xf32>
    %cst_247 = arith.constant 1.000000e+00 : f32
    %786 = vector.broadcast %cst_247 : f32 to vector<4x32xf32>
    %787 = arith.addf %786, %785 : vector<4x32xf32>
    %788 = arith.divf %786, %787 : vector<4x32xf32>
    %789 = vector.extract_strided_slice %778 {offsets = [0, 32], sizes = [4, 32], strides = [1, 1]} : vector<4x128xf32> to vector<4x32xf32>
    %790 = arith.negf %789 : vector<4x32xf32>
    %791 = math.exp %790 : vector<4x32xf32>
    %cst_248 = arith.constant 1.000000e+00 : f32
    %792 = vector.broadcast %cst_248 : f32 to vector<4x32xf32>
    %793 = arith.addf %792, %791 : vector<4x32xf32>
    %794 = arith.divf %792, %793 : vector<4x32xf32>
    %795 = vector.extract_strided_slice %778 {offsets = [0, 64], sizes = [4, 32], strides = [1, 1]} : vector<4x128xf32> to vector<4x32xf32>
    %796 = math.tanh %795 : vector<4x32xf32>
    %797 = vector.extract_strided_slice %778 {offsets = [0, 96], sizes = [4, 32], strides = [1, 1]} : vector<4x128xf32> to vector<4x32xf32>
    %798 = arith.negf %797 : vector<4x32xf32>
    %799 = math.exp %798 : vector<4x32xf32>
    %cst_249 = arith.constant 1.000000e+00 : f32
    %800 = vector.broadcast %cst_249 : f32 to vector<4x32xf32>
    %801 = arith.addf %800, %799 : vector<4x32xf32>
    %802 = arith.divf %800, %801 : vector<4x32xf32>
    %803 = arith.mulf %794, %774 : vector<4x32xf32>
    %804 = arith.mulf %788, %796 : vector<4x32xf32>
    %805 = arith.addf %803, %804 : vector<4x32xf32>
    %806 = math.tanh %805 : vector<4x32xf32>
    %807 = arith.mulf %802, %806 : vector<4x32xf32>
    %808 = arith.select %782, %807, %773 : vector<4x32xi1>, vector<4x32xf32>
    %809 = arith.select %782, %805, %774 : vector<4x32xi1>, vector<4x32xf32>
    %810 = arith.truncf %808 : vector<4x32xf32> to vector<4x32xbf16>
    %cst_250 = arith.constant dense<0.000000e+00> : vector<4x128xf32>
    %811 = tpu.matmul %810, %8, %cst_250 {dimension_numbers = #tpu.dot_dimension_numbers<[1], [0], [0], [1], [0, 0, 1, 1], [], []>} : vector<4x32xbf16>, vector<32x128xbf16>, vector<4x128xf32> -> vector<4x128xf32>
    %c4_251 = arith.constant 4 : index
    %c0_252 = arith.constant 0 : index
    %812 = vector.load %arg15[%c4_251, %c0_252] : memref<32x128xf32, #tpu.memory_space<vmem>>, vector<4x128xf32>
    %813 = arith.addf %812, %811 : vector<4x128xf32>
    %c1_253 = arith.constant 1 : index
    %c0_254 = arith.constant 0 : index
    %c0_255 = arith.constant 0 : index
    %814 = vector.load %arg2[%c1_253, %c0_254, %c0_255] : memref<8x4x32xf32, #tpu.memory_space<vmem>>, vector<1x4x32xf32>
    %815 = vector.shape_cast %814 : vector<1x4x32xf32> to vector<4x32xf32>
    %cst_256 = arith.constant 5.000000e-01 : f32
    %816 = vector.broadcast %cst_256 : f32 to vector<4x32xf32>
    %817 = arith.cmpf ogt, %815, %816 : vector<4x32xf32>
    %818 = vector.extract_strided_slice %813 {offsets = [0, 0], sizes = [4, 32], strides = [1, 1]} : vector<4x128xf32> to vector<4x32xf32>
    %819 = arith.negf %818 : vector<4x32xf32>
    %820 = math.exp %819 : vector<4x32xf32>
    %cst_257 = arith.constant 1.000000e+00 : f32
    %821 = vector.broadcast %cst_257 : f32 to vector<4x32xf32>
    %822 = arith.addf %821, %820 : vector<4x32xf32>
    %823 = arith.divf %821, %822 : vector<4x32xf32>
    %824 = vector.extract_strided_slice %813 {offsets = [0, 32], sizes = [4, 32], strides = [1, 1]} : vector<4x128xf32> to vector<4x32xf32>
    %825 = arith.negf %824 : vector<4x32xf32>
    %826 = math.exp %825 : vector<4x32xf32>
    %cst_258 = arith.constant 1.000000e+00 : f32
    %827 = vector.broadcast %cst_258 : f32 to vector<4x32xf32>
    %828 = arith.addf %827, %826 : vector<4x32xf32>
    %829 = arith.divf %827, %828 : vector<4x32xf32>
    %830 = vector.extract_strided_slice %813 {offsets = [0, 64], sizes = [4, 32], strides = [1, 1]} : vector<4x128xf32> to vector<4x32xf32>
    %831 = math.tanh %830 : vector<4x32xf32>
    %832 = vector.extract_strided_slice %813 {offsets = [0, 96], sizes = [4, 32], strides = [1, 1]} : vector<4x128xf32> to vector<4x32xf32>
    %833 = arith.negf %832 : vector<4x32xf32>
    %834 = math.exp %833 : vector<4x32xf32>
    %cst_259 = arith.constant 1.000000e+00 : f32
    %835 = vector.broadcast %cst_259 : f32 to vector<4x32xf32>
    %836 = arith.addf %835, %834 : vector<4x32xf32>
    %837 = arith.divf %835, %836 : vector<4x32xf32>
    %838 = arith.mulf %829, %809 : vector<4x32xf32>
    %839 = arith.mulf %823, %831 : vector<4x32xf32>
    %840 = arith.addf %838, %839 : vector<4x32xf32>
    %841 = math.tanh %840 : vector<4x32xf32>
    %842 = arith.mulf %837, %841 : vector<4x32xf32>
    %843 = arith.select %817, %842, %808 : vector<4x32xi1>, vector<4x32xf32>
    %844 = arith.select %817, %840, %809 : vector<4x32xi1>, vector<4x32xf32>
    %845 = arith.truncf %843 : vector<4x32xf32> to vector<4x32xbf16>
    %cst_260 = arith.constant dense<0.000000e+00> : vector<4x128xf32>
    %846 = tpu.matmul %845, %8, %cst_260 {dimension_numbers = #tpu.dot_dimension_numbers<[1], [0], [0], [1], [0, 0, 1, 1], [], []>} : vector<4x32xbf16>, vector<32x128xbf16>, vector<4x128xf32> -> vector<4x128xf32>
    %c0_261 = arith.constant 0 : index
    %c0_262 = arith.constant 0 : index
    %847 = vector.load %arg15[%c0_261, %c0_262] : memref<32x128xf32, #tpu.memory_space<vmem>>, vector<4x128xf32>
    %848 = arith.addf %847, %846 : vector<4x128xf32>
    %c0_263 = arith.constant 0 : index
    %c0_264 = arith.constant 0 : index
    %c0_265 = arith.constant 0 : index
    %849 = vector.load %arg2[%c0_263, %c0_264, %c0_265] : memref<8x4x32xf32, #tpu.memory_space<vmem>>, vector<1x4x32xf32>
    %850 = vector.shape_cast %849 : vector<1x4x32xf32> to vector<4x32xf32>
    %cst_266 = arith.constant 5.000000e-01 : f32
    %851 = vector.broadcast %cst_266 : f32 to vector<4x32xf32>
    %852 = arith.cmpf ogt, %850, %851 : vector<4x32xf32>
    %853 = vector.extract_strided_slice %848 {offsets = [0, 0], sizes = [4, 32], strides = [1, 1]} : vector<4x128xf32> to vector<4x32xf32>
    %854 = arith.negf %853 : vector<4x32xf32>
    %855 = math.exp %854 : vector<4x32xf32>
    %cst_267 = arith.constant 1.000000e+00 : f32
    %856 = vector.broadcast %cst_267 : f32 to vector<4x32xf32>
    %857 = arith.addf %856, %855 : vector<4x32xf32>
    %858 = arith.divf %856, %857 : vector<4x32xf32>
    %859 = vector.extract_strided_slice %848 {offsets = [0, 32], sizes = [4, 32], strides = [1, 1]} : vector<4x128xf32> to vector<4x32xf32>
    %860 = arith.negf %859 : vector<4x32xf32>
    %861 = math.exp %860 : vector<4x32xf32>
    %cst_268 = arith.constant 1.000000e+00 : f32
    %862 = vector.broadcast %cst_268 : f32 to vector<4x32xf32>
    %863 = arith.addf %862, %861 : vector<4x32xf32>
    %864 = arith.divf %862, %863 : vector<4x32xf32>
    %865 = vector.extract_strided_slice %848 {offsets = [0, 64], sizes = [4, 32], strides = [1, 1]} : vector<4x128xf32> to vector<4x32xf32>
    %866 = math.tanh %865 : vector<4x32xf32>
    %867 = vector.extract_strided_slice %848 {offsets = [0, 96], sizes = [4, 32], strides = [1, 1]} : vector<4x128xf32> to vector<4x32xf32>
    %868 = arith.negf %867 : vector<4x32xf32>
    %869 = math.exp %868 : vector<4x32xf32>
    %cst_269 = arith.constant 1.000000e+00 : f32
    %870 = vector.broadcast %cst_269 : f32 to vector<4x32xf32>
    %871 = arith.addf %870, %869 : vector<4x32xf32>
    %872 = arith.divf %870, %871 : vector<4x32xf32>
    %873 = arith.mulf %864, %844 : vector<4x32xf32>
    %874 = arith.mulf %858, %866 : vector<4x32xf32>
    %875 = arith.addf %873, %874 : vector<4x32xf32>
    %876 = math.tanh %875 : vector<4x32xf32>
    %877 = arith.mulf %872, %876 : vector<4x32xf32>
    %878 = arith.select %852, %877, %843 : vector<4x32xi1>, vector<4x32xf32>
    %c0_270 = arith.constant 0 : index
    %c0_271 = arith.constant 0 : index
    %879 = vector.load %arg9[%c0_270, %c0_271] : memref<1x32xf32, #tpu.memory_space<vmem>>, vector<1x32xf32>
    %880 = vector.broadcast %879 : vector<1x32xf32> to vector<4x32xf32>
    %881 = arith.mulf %878, %880 : vector<4x32xf32>
    %c0_272 = arith.constant 0 : index
    %c0_273 = arith.constant 0 : index
    %882 = vector.load %arg10[%c0_272, %c0_273] : memref<1x32xf32, #tpu.memory_space<vmem>>, vector<1x32xf32>
    %883 = vector.broadcast %882 : vector<1x32xf32> to vector<4x32xf32>
    %884 = arith.addf %881, %883 : vector<4x32xf32>
    %c0_274 = arith.constant 0 : index
    %c0_275 = arith.constant 0 : index
    %885 = vector.load %arg11[%c0_274, %c0_275] : memref<32x2xf32, #tpu.memory_space<vmem>>, vector<32x2xf32>
    %cst_276 = arith.constant dense<0.000000e+00> : vector<4x2xf32>
    %886 = tpu.matmul %884, %885, %cst_276 {dimension_numbers = #tpu.dot_dimension_numbers<[1], [0], [0], [1], [0, 0, 1, 1], [], []>} : vector<4x32xf32>, vector<32x2xf32>, vector<4x2xf32> -> vector<4x2xf32>
    %c0_277 = arith.constant 0 : index
    %c0_278 = arith.constant 0 : index
    %887 = vector.load %arg12[%c0_277, %c0_278] : memref<1x2xf32, #tpu.memory_space<vmem>>, vector<1x2xf32>
    %888 = vector.broadcast %887 : vector<1x2xf32> to vector<4x2xf32>
    %889 = arith.addf %886, %888 : vector<4x2xf32>
    %cst_279 = arith.constant 0.000000e+00 : f32
    %890 = vector.broadcast %cst_279 : f32 to vector<4x2xf32>
    %891 = arith.maximumf %889, %890 : vector<4x2xf32>
    %c0_280 = arith.constant 0 : index
    %c0_281 = arith.constant 0 : index
    %892 = vector.load %arg13[%c0_280, %c0_281] : memref<4x2xf32, #tpu.memory_space<vmem>>, vector<4x2xf32>
    tpu.vector_store %arg13[%c0_280, %c0_281], %891 {strides = array<i32>} : memref<4x2xf32, #tpu.memory_space<vmem>>, vector<4x2xf32>,
    return
  }
  func.func @transform_0(%arg0: i32) -> (i32, i32) {
    %c0_i32 = arith.constant 0 : i32
    %c0_i32_0 = arith.constant 0 : i32
    %c0_i32_1 = arith.constant 0 : i32
    return %c0_i32, %c0_i32_0 : i32, i32
  }
  func.func @transform_1(%arg0: i32) -> (i32, i32, i32) {
    %c0_i32 = arith.constant 0 : i32
    %c0_i32_0 = arith.constant 0 : i32
    %c0_i32_1 = arith.constant 0 : i32
    %c0_i32_2 = arith.constant 0 : i32
    return %c0_i32, %c0_i32_0, %c0_i32_1 : i32, i32, i32
  }
  func.func @transform_2(%arg0: i32) -> (i32, i32) {
    %c0_i32 = arith.constant 0 : i32
    %c0_i32_0 = arith.constant 0 : i32
    %c0_i32_1 = arith.constant 0 : i32
    return %c0_i32, %c0_i32_0 : i32, i32
  }
  func.func @transform_3(%arg0: i32) -> (i32, i32) {
    %c0_i32 = arith.constant 0 : i32
    %c0_i32_0 = arith.constant 0 : i32
    %c0_i32_1 = arith.constant 0 : i32
    return %c0_i32, %c0_i32_0 : i32, i32
  }
  func.func @transform_4(%arg0: i32) -> (i32, i32) {
    %c0_i32 = arith.constant 0 : i32
    %c0_i32_0 = arith.constant 0 : i32
    %c0_i32_1 = arith.constant 0 : i32
    return %c0_i32, %c0_i32_0 : i32, i32
  }
  func.func @transform_5(%arg0: i32) -> (i32, i32) {
    %c0_i32 = arith.constant 0 : i32
    %c0_i32_0 = arith.constant 0 : i32
    %c0_i32_1 = arith.constant 0 : i32
    return %c0_i32, %c0_i32_0 : i32, i32
  }
  func.func @transform_6(%arg0: i32) -> (i32, i32) {
    %c0_i32 = arith.constant 0 : i32
    %c0_i32_0 = arith.constant 0 : i32
    %c0_i32_1 = arith.constant 0 : i32
    return %c0_i32, %c0_i32_0 : i32, i32
  }
  func.func @transform_7(%arg0: i32) -> (i32, i32) {
    %c0_i32 = arith.constant 0 : i32
    %c0_i32_0 = arith.constant 0 : i32
    %c0_i32_1 = arith.constant 0 : i32
    return %c0_i32, %c0_i32_0 : i32, i32
  }
  func.func @transform_8(%arg0: i32) -> (i32, i32) {
    %c0_i32 = arith.constant 0 : i32
    %c0_i32_0 = arith.constant 0 : i32
    %c0_i32_1 = arith.constant 0 : i32
    return %c0_i32, %c0_i32_0 : i32, i32
  }
  func.func @transform_9(%arg0: i32) -> (i32, i32) {
    %c0_i32 = arith.constant 0 : i32
    %c0_i32_0 = arith.constant 0 : i32
    %c0_i32_1 = arith.constant 0 : i32
    return %c0_i32, %c0_i32_0 : i32, i32
  }
  func.func @transform_10(%arg0: i32) -> (i32, i32) {
    %c0_i32 = arith.constant 0 : i32
    %c0_i32_0 = arith.constant 0 : i32
    %c0_i32_1 = arith.constant 0 : i32
    return %c0_i32, %c0_i32_0 : i32, i32
  }
  func.func @transform_11(%arg0: i32) -> (i32, i32) {
    %c0_i32 = arith.constant 0 : i32
    %c0_i32_0 = arith.constant 0 : i32
    %c0_i32_1 = arith.constant 0 : i32
    return %c0_i32, %c0_i32_0 : i32, i32
  }
  func.func @transform_12(%arg0: i32) -> (i32, i32) {
    %c0_i32 = arith.constant 0 : i32
    %c0_i32_0 = arith.constant 0 : i32
    %c0_i32_1 = arith.constant 0 : i32
    return %c0_i32, %c0_i32_0 : i32, i32
  }
}

</mosaic_0001>

<bundles_post_ra>
// kernel: tpu_custom_call.1
= control target key start
LH: loop header
LB: loop body
LE: loop exit
PB: predicated region body
PF: predicated region fallthrough
CT: control target
= control target key end

     0   :  { %17 = vsyncpa [#allocation6], 0  ;;  %s3512_s0 = inlined_call_operand.hbm [shape: bf16[32,32], index: 0, kind: input, shape index: {}]   ;;  %s3513_s1 = inlined_call_operand.vmem [shape: f32[8,4,32], index: 1, kind: input, shape index: {}]   ;;  %s3514_s2 = inlined_call_operand.hbm [shape: bf16[32,256], index: 2, kind: input, shape index: {}]   ;;  %s3515_s3 = inlined_call_operand.vmem [shape: f32[1,256], index: 3, kind: input, shape index: {}]   ;;  %s3516_s4 = inlined_call_operand.hbm [shape: bf16[64,256], index: 4, kind: input, shape index: {}]   ;;  %s3517_s5 = inlined_call_operand.hbm [shape: bf16[64,128], index: 5, kind: input, shape index: {}]   ;;  %s3518_s6 = inlined_call_operand.vmem [shape: f32[1,128], index: 6, kind: input, shape index: {}]   ;;  %s3519_s7 = inlined_call_operand.hbm [shape: bf16[32,128], index: 7, kind: input, shape index: {}]   ;;  %s3520_s8 = inlined_call_operand.vmem [shape: f32[1,32], index: 8, kind: input, shape index: {}]   ;;  %s3521_s9 = inlined_call_operand.vmem [shape: f32[1,32], index: 9, kind: input, shape index: {}]   ;;  %s3522_s10 = inlined_call_operand.vmem [shape: f32[32,2], index: 10, kind: input, shape index: {}]   ;;  %s3523_s11 = inlined_call_operand.vmem [shape: f32[1,2], index: 11, kind: input, shape index: {}]   ;;  %s3524_s12 = inlined_call_operand.vmem [shape: f32[4,2], index: 12, kind: output, shape index: {}]  }
   0x1   :  { %18 = vsyncpa [#allocation8], 0 }
   0x2   :  { %19 = vsyncpa [#allocation11], 0  ;;  %s2863_s21 = smov [#allocation7]  }
   0x3   :  { %s39_s22 = sshll.u32 %s2863_s21, 4  ;;  %s40_s22 = int_to_ptr.vmem [resolvable:$true] %s39_s22 }
   0x4   :  { %s2765_s23 = scalar_lea.vmem %s40_s22, 512  ;;  %p2770_p1 = scmp.lt.s32.totalorder %s40_s22, %s40_s22 }
   0x5   :  { %p2766_p0 = scmp.ne.s32.totalorder %s40_s22, %s2765_s23  ;;  %p2771_p2 = scmp.lt.s32.totalorder %s2765_s23, %s2765_s23 }
   0x7   :  { %p2772_p3 = por %p2771_p2, %p2770_p1 }
   0x9   :  { %p2773_p4 = pnand %p2772_p3, %p2766_p0 }
   0xb   :  { %2776 = shalt.err (!%p2773_p4)
}
   0xc   :  { %s2864_s24 = smov 128   ;;  %s2865_s25 = smov 8  }
   0xd   :  { %45 = dma.hbm_to_vmem [thread:$0]  %s3514_s2, 512, %s40_s22, [#allocation8], %s2864_s24, %s2864_s24, %s2865_s25  }
   0xe   :  { %s2866_s28 = smov [#allocation10]   ;;  %s2867_s30 = smov [#allocation5]  }
   0xf   :  { %s65_s29 = sshll.u32 %s2866_s28, 4  ;;  %s25_s13 = sshll.u32 %s2867_s30, 4  ;;  %s66_s29 = int_to_ptr.vmem [resolvable:$true] %s65_s29  ;;  %s26_s13 = int_to_ptr.vmem [resolvable:$true] %s25_s13 }
  0x10   :  { %s2785_s14 = scalar_lea.vmem %s66_s29, 512  ;;  %p2790_p6 = scmp.lt.s32.totalorder %s66_s29, %s66_s29 }
  0x11   :  { %p2786_p5 = scmp.ne.s32.totalorder %s66_s29, %s2785_s14  ;;  %p2791_p7 = scmp.lt.s32.totalorder %s2785_s14, %s2785_s14 }
  0x13   :  { %p2792_p8 = por %p2791_p7, %p2790_p6 }
  0x15   :  { %p2793_p9 = pnand %p2792_p8, %p2786_p5 }
  0x17   :  { %2796 = shalt.err (!%p2793_p9)
}
  0x18   :  { %s2868_s15 = smov 64   ;;  %s2869_s16 = smov 4  }
  0x19   :  { %71 = dma.hbm_to_vmem [thread:$0]  %s3517_s5, 512, %s66_s29, [#allocation11], %s2868_s15, %s2868_s15, %s2869_s16  }
  0x1a   :  { %s2805_s2 = scalar_lea.vmem %s26_s13, 256  ;;  %p2810_p11 = scmp.lt.s32.totalorder %s26_s13, %s26_s13 }
  0x1b   :  { %p2806_p10 = scmp.ne.s32.totalorder %s26_s13, %s2805_s2  ;;  %p2811_p12 = scmp.lt.s32.totalorder %s2805_s2, %s2805_s2 }
  0x1d   :  { %p2812_p13 = por %p2811_p12, %p2810_p11 }
  0x1f   :  { %p2813_p0 = pnand %p2812_p13, %p2806_p10 }
  0x21   :  { %2816 = shalt.err (!%p2813_p0)
}
  0x22   :  { %31 = dma.hbm_to_vmem [thread:$0]  %s3512_s0, 256, %s26_s13, [#allocation6], %s2868_s15, %s2868_s15, %s2869_s16  }
  0x23   :  { %s2870_s21 = smov [#allocation9]   ;;  %s2871_s23 = smov [#allocation12]  }
  0x24   :  { %s53_s22 = sshll.u32 %s2870_s21, 4  ;;  %s79_s5 = sshll.u32 %s2871_s23, 4  ;;  %s54_s22 = int_to_ptr.vmem [resolvable:$true] %s53_s22  ;;  %s80_s5 = int_to_ptr.vmem [resolvable:$true] %s79_s5 }
  0x25   :  { %s2825_s26 = scalar_lea.vmem %s54_s22, 1024  ;;  %p2830_p2 = scmp.lt.s32.totalorder %s54_s22, %s54_s22 }
  0x26   :  { %p2826_p1 = scmp.ne.s32.totalorder %s54_s22, %s2825_s26  ;;  %p2831_p3 = scmp.lt.s32.totalorder %s2825_s26, %s2825_s26 }
  0x28   :  { %p2832_p4 = por %p2831_p3, %p2830_p2 }
  0x2a   :  { %p2833_p5 = pnand %p2832_p4, %p2826_p1 }
  0x2c   :  { %2836 = shalt.err (!%p2833_p5)
}
  0x2d   :  { %59 = dma.hbm_to_vmem [thread:$0]  %s3516_s4, 1024, %s54_s22, [#allocation8], %s2864_s24, %s2864_s24, %s2865_s25  }
  0x2e   :  { %s2845_s0 = scalar_lea.vmem %s80_s5, 256  ;;  %p2850_p7 = scmp.lt.s32.totalorder %s80_s5, %s80_s5 }
  0x2f   :  { %p2846_p6 = scmp.ne.s32.totalorder %s80_s5, %s2845_s0  ;;  %p2851_p8 = scmp.lt.s32.totalorder %s2845_s0, %s2845_s0 }
  0x31   :  { %p2852_p9 = por %p2851_p8, %p2850_p7 }
  0x33   :  { %p2853_p10 = pnand %p2852_p9, %p2846_p6 }
  0x35   :  { %2856 = shalt.err (!%p2853_p10)
}
  0x36   :  { %85 = dma.hbm_to_vmem [thread:$0]  %s3519_s7, 256, %s80_s5, [#allocation11], %s2868_s15, %s2868_s15, %s2869_s16  }
  0x37   :  { %2857 = dma.done.wait [#allocation6], 256  }
  0x38   :  { %2858 = vsyncadd [#allocation6], 4294967040 }
  0x39   :  { %2859 = dma.done.wait [#allocation8], 1536  }
  0x3a   :  { %2860 = vsyncadd [#allocation8], 4294965760 }
  0x3b   :  { %2861 = dma.done.wait [#allocation11], 768  }
  0x3c   :  { %2862 = vsyncadd [#allocation11], 4294966528  ;;  %v2872_v0 = vmov 0   ;;  %v2534_v1 = vld [vmem:[#allocation7 + $0x14] ss:$8 sps:$4 sm:$0xff]   ;;  %vm160_vm0 = vcmask 261120   ;;  %v120_v16 = vlaneseq }
  0x3d   :  { %199 = vmatprep.mubr.bf16.mxu0 %v2872_v0  ;;  %317 = vmatprep.mubr.bf16.mxu1 %v2872_v0  ;;  %v2536_v2 = vld [vmem:[#allocation7 + $0x10] ss:$8 sps:$4 sm:$0xff]   ;;  %v2975_v3 = vld [vmem:[#allocation9 + $0x34] ss:$8 sps:$4 sm:$0xff]   ;;  %v2540_v5 = vld [vmem:[#allocation7 + $0x4] ss:$8 sps:$4 sm:$0xff]  }
  0x3e   :  { %179 = vmatprep.subr.bf16.mxu0 %v2534_v1  ;;  %v2977_v4 = vld [vmem:[#allocation9 + $0x30] ss:$8 sps:$4 sm:$0xff]   ;;  %v2542_v6 = vld [vmem:[#allocation7] ss:$8 sps:$4 sm:$0xff]   ;;  %293 = vmatprep.subr.bf16.mxu1 %v2975_v3  ;;  %v2980_v7 = vld [vmem:[#allocation9 + $0x24] ss:$8 sps:$4 sm:$0xff]  }
  0x3f   :  { %180 = vmatpush1.bf16.msra.mxu0 %v2536_v2  ;;  %294 = vmatpush1.bf16.msra.mxu1 %v2977_v4  ;;  %v2983_v8 = vld [vmem:[#allocation9 + $0x20] ss:$8 sps:$4 sm:$0xff]   ;;  %v2546_v9 = vld [vmem:[#allocation5] sm:$0xff]   ;;  %v2994_v12 = vld [vmem:[#allocation9 + $0x4] ss:$8 sps:$4 sm:$0xff]   ;;  %v2873_v15 = vmov 0.0|0.0  }
  0x40   :  { %181 = vmatprep.subr.bf16.mxu0 %v2540_v5  ;;  %295 = vmatprep.subr.bf16.mxu1 %v2980_v7  ;;  %v2986_v10 = vld [vmem:[#allocation9 + $0x14] ss:$8 sps:$4 sm:$0xff]   ;;  %v2990_v11 = vld [vmem:[#allocation9 + $0x10] ss:$8 sps:$4 sm:$0xff]   ;;  %v2997_v13 = vld [vmem:[#allocation9] ss:$8 sps:$4 sm:$0xff]  }
  0x41   :  { %v2553_v14 = vld [vmem:[#allocation5 + $0x8] sm:$0xff]   ;;  %v121_v17 = vshrl.u32 %v120_v16, 7  ;;  %v118_v19 = vld [vmem:[%s3515_s3] sm:$0x3]  ;;  %s2874_s3 = smov 32   ;;  %s2875_s24 = smov 96  }
  0x42   :  { %vm408_vm3 = vcmask 257024   ;;  %vm414_vm4 = vcmask 519424   ;;  %vm281_vm5 = vcmask 523264  }
  0x43   :  { %182 = vmatpush1.bf16.msra.mxu0 %v2542_v6  ;;  %296 = vmatpush1.bf16.msra.mxu1 %v2983_v8  ;;  %v122_v18 = vsub.s32 0, %v121_v17  ;;  %v126_v20 = vsub.s32 1, %v121_v17 }
  0x44   :  { %429 = vmatprep.subr.bf16.mxu0 %v2975_v3  ;;  %297 = vmatprep.subr.bf16.mxu1 %v2986_v10 }
  0x45   :  { %v123_v21 = vrot.slane %v118_v19, %v122_v18  ;;  %v127_v22 = vrot.slane %v118_v19, %v126_v20 }
  0x46   :  { %2315 = vmatmul.mubr.msk.bf16.vlgmr.msra.gmra.mxu0 %vm160_vm0, %v2546_v9 }
  0x47   :  { %209 = vmatprep.mubr.bf16.mxu0 %v2872_v0  ;;  %430 = vmatpush1.bf16.msra.mxu0 %v2977_v4 }
  0x48   :  { %431 = vmatprep.subr.bf16.mxu0 %v2980_v7  ;;  %298 = vmatpush1.bf16.msra.mxu1 %v2990_v11 }
  0x49   :  { %299 = vmatprep.subr.bf16.mxu1 %v2994_v12 }
  0x4b   :  { %432 = vmatpush1.bf16.msra.mxu0 %v2983_v8 }
  0x4c   :  { %433 = vmatprep.subr.bf16.mxu0 %v2986_v10  ;;  %300 = vmatpush1.bf16.msra.mxu1 %v2997_v13 }
  0x4d   :  { %573 = vmatprep.subr.bf16.mxu1 %v2975_v3 }
  0x4e   :  { %2316 = vmatmul.mubr.msk.bf16.gmra.mxu0 %vm160_vm0, %v2553_v14 }
  0x4f   :  { %434 = vmatpush1.bf16.msra.mxu0 %v2990_v11  ;;  %453 = vmatprep.mubr.bf16.mxu0 %v2872_v0 }
  0x50   :  { %318 = vmatmul.mubr.bf16.vlgmr.msra.gmra.mxu1 %v2873_v15  ;;  %435 = vmatprep.subr.bf16.mxu0 %v2994_v12 }
  0x51   :  { %574 = vmatpush1.bf16.msra.mxu1 %v2977_v4  ;;  %597 = vmatprep.mubr.bf16.mxu1 %v2872_v0 }
  0x52   :  { %575 = vmatprep.subr.bf16.mxu1 %v2980_v7 }
  0x53   :  { %436 = vmatpush1.bf16.msra.mxu0 %v2997_v13 }
  0x54   :  { %717 = vmatprep.subr.bf16.mxu0 %v2975_v3 }
  0x55   :  { %576 = vmatpush1.bf16.msra.mxu1 %v2983_v8 }
  0x56   :  { %577 = vmatprep.subr.bf16.mxu1 %v2986_v10 }
  0x59   :  { %578 = vmatpush1.bf16.msra.mxu1 %v2990_v11 }
  0x5a   :  { %579 = vmatprep.subr.bf16.mxu1 %v2994_v12 }
  0x5d   :  { %580 = vmatpush1.bf16.msra.mxu1 %v2997_v13 }
  0x5e   :  { %861 = vmatprep.subr.bf16.mxu1 %v2975_v3 }
 0x106   :  { %v201_v23 = vpop.f32.mrf.mxu0 }
 0x107   :  { %v202_v24 = vadd.f32 %v201_v23, %v123_v21 }
 0x108   :  { %v203_v25 = vpop.f32.mrf.mxu0 }
 0x109   :  { %220 = vst [vmem:[#allocation2 + $0x30] sm:$0xff] %v202_v24  ;;  %v204_v26 = vadd.f32 %v203_v25, %v127_v22 }
 0x10a   :  { %v205_v27 = vpop.f32.mrf.mxu0 }
 0x10b   :  { %221 = vst [vmem:[#allocation2] sm:$0xff] %v204_v26  ;;  %v206_v28 = vadd.f32 %v205_v27, %v123_v21 }
 0x10c   :  { %v207_v29 = vpop.f32.mrf.mxu0 }
 0x10d   :  { %222 = vst [vmem:[#allocation2 + $0x18] sm:$0xff] %v206_v28  ;;  %v208_v30 = vadd.f32 %v207_v29, %v127_v22 }
 0x10e   :  { %v211_v31 = vpop.f32.mrf.mxu0 }
 0x10f   :  { %223 = vst [vmem:[#allocation2 + $0x10] sm:$0xff] %v208_v30  ;;  %v212_v32 = vadd.f32 %v211_v31, %v123_v21 }
 0x110   :  { %v213_v33 = vpop.f32.mrf.mxu0  ;;  %v319_v34 = vpop.f32.mrf.mxu1  ;;  %v326_v44 = vld [vmem:[#allocation2 + $0x30] sm:$0xf] }
 0x111   :  { %224 = vst [vmem:[#allocation2 + $0x8] sm:$0xff] %v212_v32  ;;  %v214_v35 = vadd.f32 %v213_v33, %v127_v22  ;;  %v327_v47 = vadd.f32 %v326_v44, %v319_v34 }
 0x112   :  { %v215_v36 = vpop.f32.mrf.mxu0  ;;  %v321_v37 = vpop.f32.mrf.mxu1 }
 0x113   :  { %225 = vst [vmem:[#allocation2 + $0x20] sm:$0xff] %v214_v35  ;;  %v216_v38 = vadd.f32 %v215_v36, %v123_v21  ;;  %v330_v43 = vrot.slane %v321_v37, 4  ;;  %v2326_v51 = vmul.f32 -1.442695, %v327_v47  ;;  %v2325_v21 = vld [vmem:[%s3513_s1 + $0x1c] sm:$0xf] }
 0x114   :  { %v217_v39 = vpop.f32.mrf.mxu0  ;;  %v323_v40 = vpop.f32.mrf.mxu1  ;;  %vm337_vm1 = vcmp.gt.f32.partialorder %v2325_v21, 0.5  ;;  %v2329_v21 = vld [vmem:[%s3513_s1 + $0x4] sm:$0xf] }
 0x115   :  { %226 = vst [vmem:[#allocation2 + $0x28] sm:$0xff] %v216_v38  ;;  %v218_v41 = vadd.f32 %v217_v39, %v127_v22  ;;  %v333_v22 = vld [vmem:[%s3513_s1] sm:$0xf]  ;;  %vm471_vm7 = vcmp.gt.f32.partialorder %v2329_v21, 0.5 }
 0x116   :  { %v324_v42 = vpop.f32.mrf.mxu1  ;;  %vm334_vm2 = vcmp.gt.f32.partialorder %v333_v22, 0.5 }
 0x117   :  { %227 = vst [vmem:[#allocation2 + $0x38] sm:$0xff] %v218_v41  ;;  %v462_v41 = vld [vmem:[#allocation2 + $0x30] sm:$0xf0] }
 0x11e   :  { %v328_v45 = vld [vmem:[#allocation2 + $0x38] sm:$0xf0]  ;;  %v467_v38 = vld [vmem:[#allocation2 + $0x38] sm:$0xf] }
 0x11f   :  { %v332_v46 = vadd.f32 %v330_v43, %v328_v45 }
 0x121   :  { %2560 = vtanh.f32 %v332_v46  ;;  %v2327_v50 = vmul.f32 -1.442695, %v332_v46 }
 0x122   :  { %2562 = vtanh.f32 %v327_v47 }
 0x123   :  { %2564 = vpow2.f32 %v2327_v50 }
 0x124   :  { %2566 = vpow2.f32 %v2326_v51 }
 0x12e   :  { %v2561_v48 = vpop.eup %2560 }
 0x12f   :  { %381 = vrot.lane.b32.xlu0 %v2561_v48, %s2868_s15  ;;  %v2563_v49 = vpop.eup %2562 }
 0x130   :  { %v2565_v52 = vpop.eup %2564 }
 0x131   :  { %v375_v53 = vadd.f32 1.0, %v2565_v52  ;;  %v2567_v54 = vpop.eup %2566 }
 0x132   :  { %v341_v55 = vadd.f32 1.0, %v2567_v54 }
 0x133   :  { %347 = vrot.lane.b32.xlu0 %v2563_v49, %s2868_s15  ;;  %2568 = vrcp.f32 %v375_v53 }
 0x134   :  { %2570 = vrcp.f32 %v341_v55 }
 0x140   :  { %v2569_v56 = vpop.eup %2568 }
 0x141   :  { %v2571_v59 = vpop.eup %2570  ;;  %v379_v62 = vmul.f32 0.0, %v2569_v56 }
 0x142   :  { %v345_v2 = vmul.f32 0.0, %v2571_v59 }
 0x1a1   :  { %v382_v57 = vpop.permute.xlu0 %381 }
 0x1a2   :  { %v384_v58 = vmul.f32 %v2569_v56, %v382_v57 }
 0x1a4   :  { %386 = vrot.lane.b32.xlu1 %v384_v58, %s2874_s3 }
 0x1a5   :  { %v348_v60 = vpop.permute.xlu0 %347 }
 0x1a6   :  { %v350_v61 = vmul.f32 %v2571_v59, %v348_v60 }
 0x1a8   :  { %352 = vrot.lane.b32.xlu1 %v350_v61, %s2874_s3 }
 0x216   :  { %v387_v63 = vpop.permute.xlu1 %386 }
 0x217   :  { %v389_v1 = vadd.f32 %v387_v63, %v379_v62 }
 0x219   :  { %2572 = vtanh.f32 %v389_v1  ;;  %v403_v20 = vrot.slane %v389_v1, 4 }
 0x21a   :  { %v353_v5 = vpop.permute.xlu1 %352 }
 0x21b   :  { %v355_v6 = vadd.f32 %v353_v5, %v345_v2 }
 0x21d   :  { %2574 = vtanh.f32 %v355_v6 }
 0x226   :  { %v2573_v9 = vpop.eup %2572 }
 0x227   :  { %392 = vrot.lane.b32.xlu0 %v2573_v9, %s2868_s15 }
 0x22a   :  { %v2575_v14 = vpop.eup %2574 }
 0x22b   :  { %358 = vrot.lane.b32.xlu1 %v2575_v14, %s2868_s15 }
 0x299   :  { %v393_v15 = vpop.permute.xlu0 %392 }
 0x29a   :  { %v395_v16 = vmul.f32 %v2569_v56, %v393_v15 }
 0x29c   :  { %v397_v17 = vrot.slane %v395_v16, 4 }
 0x29d   :  { %v359_v18 = vpop.permute.xlu1 %358 }
 0x29e   :  { %v361_v19 = vmul.f32 %v2571_v59, %v359_v18  ;;  %398 = vrot.lane.b32.xlu0 %v397_v17, %s2874_s3  ;;  %v2330_v18 = vld [vmem:[%s3513_s1 + $0x18] sm:$0xf] }
 0x29f   :  { %vm474_vm6 = vcmp.gt.f32.partialorder %v2330_v18, 0.5  ;;  %v2334_v18 = vld [vmem:[%s3513_s1 + $0x8] sm:$0xf] }
 0x2a0   :  { %363 = vrot.lane.b32.xlu1 %v361_v19, %s2874_s3  ;;  %vm615_vm9 = vcmp.gt.f32.partialorder %v2334_v18, 0.5 }
 0x2a4   :  { %404 = vrot.lane.b32.xlu1 %v403_v20, %s2875_s24 }
 0x2a8   :  { %368 = vrot.lane.b32.xlu1 %v355_v6, %s2875_s24 }
 0x310   :  { %v399_v23 = vpop.permute.xlu0 %398 }
 0x311   :  { %v3041_v24 = vsel %vm337_vm1, %v399_v23, 0.0 }
 0x312   :  { %411 = vrot.lane.b32.xlu0 %v3041_v24, %s2874_s3  ;;  %v364_v25 = vpop.permute.xlu1 %363 }
 0x313   :  { %v3045_v26 = vsel %vm334_vm2, %v364_v25, 0.0 }
 0x314   :  { %409 = vst.msk [vmem:[#allocation4] sm:$0xf] %vm408_vm3, %v3045_v26 }
 0x316   :  { %v405_v27 = vpop.permute.xlu1 %404 }
 0x317   :  { %v3049_v28 = vsel %vm337_vm1, %v405_v27, 0.0 }
 0x318   :  { %524 = vrot.lane.b32.xlu1 %v3049_v28, %s2874_s3 }
 0x31a   :  { %v369_v29 = vpop.permute.xlu1 %368 }
 0x31b   :  { %v3053_v30 = vsel %vm334_vm2, %v369_v29, 0.0 }
 0x31c   :  { %v483_v31 = vrot.slane %v3053_v30, 4 }
 0x31e   :  { %484 = vrot.lane.b32.xlu1 %v483_v31, %s2874_s3 }
 0x384   :  { %v412_v32 = vpop.permute.xlu0 %411 }
 0x385   :  { %415 = vst.msk [vmem:[#allocation4 + $0x1c] sm:$0xf] %vm414_vm4, %v412_v32  ;;  %v416_v33 = vsel %vm160_vm0, %v3045_v26, %v412_v32 }
 0x386   :  { %v417_v34 = vpack.c.bf16 %v416_v33, %v416_v33 }
 0x388   :  { %2328 = vmatmul.mubr.msk.bf16.vlgmr.msra.gmra.mxu0 %vm281_vm5, %v417_v34 }
 0x389   :  { %718 = vmatpush1.bf16.msra.mxu0 %v2977_v4  ;;  %741 = vmatprep.mubr.bf16.mxu0 %v2872_v0 }
 0x38a   :  { %719 = vmatprep.subr.bf16.mxu0 %v2980_v7  ;;  %v525_v58 = vpop.permute.xlu1 %524 }
 0x38d   :  { %720 = vmatpush1.bf16.msra.mxu0 %v2983_v8 }
 0x38e   :  { %721 = vmatprep.subr.bf16.mxu0 %v2986_v10 }
 0x390   :  { %v485_v62 = vpop.permute.xlu1 %484 }
 0x391   :  { %722 = vmatpush1.bf16.msra.mxu0 %v2990_v11 }
 0x392   :  { %723 = vmatprep.subr.bf16.mxu0 %v2994_v12 }
 0x395   :  { %724 = vmatpush1.bf16.msra.mxu0 %v2997_v13 }
 0x396   :  { %1003 = vmatprep.subr.bf16.mxu0 %v2975_v3 }
 0x448   :  { %v455_v35 = vpop.f32.mrf.mxu0 }
 0x449   :  { %v464_v36 = vrot.slane %v455_v35, 4 }
 0x44a   :  { %v457_v37 = vpop.f32.mrf.mxu0 }
 0x44b   :  { %v468_v39 = vadd.f32 %v467_v38, %v457_v37  ;;  %v466_v42 = vadd.f32 %v464_v36, %v462_v41  ;;  %v608_v36 = vld [vmem:[#allocation2 + $0x20] sm:$0xf0] }
 0x44c   :  { %v459_v40 = vpop.f32.mrf.mxu0 }
 0x44d   :  { %2576 = vtanh.f32 %v468_v39  ;;  %v2332_v46 = vmul.f32 -1.442695, %v468_v39  ;;  %v2331_v47 = vmul.f32 -1.442695, %v466_v42 }
 0x44e   :  { %v460_v43 = vpop.f32.mrf.mxu0  ;;  %2578 = vtanh.f32 %v466_v42 }
 0x44f   :  { %2580 = vpow2.f32 %v2332_v46 }
 0x450   :  { %2582 = vpow2.f32 %v2331_v47 }
 0x45a   :  { %v2577_v44 = vpop.eup %2576 }
 0x45b   :  { %529 = vrot.lane.b32.xlu0 %v2577_v44, %s2868_s15  ;;  %v2579_v45 = vpop.eup %2578 }
 0x45c   :  { %v2581_v48 = vpop.eup %2580 }
 0x45d   :  { %v519_v49 = vadd.f32 1.0, %v2581_v48  ;;  %v2583_v50 = vpop.eup %2582 }
 0x45e   :  { %v478_v51 = vadd.f32 1.0, %v2583_v50 }
 0x45f   :  { %489 = vrot.lane.b32.xlu0 %v2579_v45, %s2868_s15  ;;  %2584 = vrcp.f32 %v519_v49 }
 0x460   :  { %2586 = vrcp.f32 %v478_v51 }
 0x46c   :  { %v2585_v52 = vpop.eup %2584 }
 0x46d   :  { %v2587_v55 = vpop.eup %2586  ;;  %v527_v59 = vmul.f32 %v2585_v52, %v525_v58 }
 0x46e   :  { %v487_v63 = vmul.f32 %v2587_v55, %v485_v62 }
 0x4cd   :  { %v530_v53 = vpop.permute.xlu0 %529 }
 0x4ce   :  { %v532_v54 = vmul.f32 %v2585_v52, %v530_v53 }
 0x4d0   :  { %534 = vrot.lane.b32.xlu0 %v532_v54, %s2874_s3 }
 0x4d1   :  { %v490_v56 = vpop.permute.xlu0 %489 }
 0x4d2   :  { %v492_v57 = vmul.f32 %v2587_v55, %v490_v56 }
 0x4d4   :  { %494 = vrot.lane.b32.xlu0 %v492_v57, %s2874_s3 }
 0x542   :  { %v535_v60 = vpop.permute.xlu0 %534 }
 0x543   :  { %v537_v61 = vadd.f32 %v535_v60, %v527_v59 }
 0x545   :  { %2588 = vtanh.f32 %v537_v61 }
 0x546   :  { %v495_v1 = vpop.permute.xlu0 %494 }
 0x547   :  { %v497_v2 = vadd.f32 %v495_v1, %v487_v63 }
 0x549   :  { %2590 = vtanh.f32 %v497_v2  ;;  %v511_v42 = vrot.slane %v497_v2, 4 }
 0x552   :  { %v2589_v5 = vpop.eup %2588 }
 0x553   :  { %540 = vrot.lane.b32.xlu1 %v2589_v5, %s2868_s15 }
 0x556   :  { %v2591_v6 = vpop.eup %2590 }
 0x557   :  { %500 = vrot.lane.b32.xlu0 %v2591_v6, %s2868_s15 }
 0x5c5   :  { %v541_v9 = vpop.permute.xlu1 %540 }
 0x5c6   :  { %v543_v14 = vmul.f32 %v2585_v52, %v541_v9 }
 0x5c8   :  { %545 = vrot.lane.b32.xlu1 %v543_v14, %s2874_s3 }
 0x5c9   :  { %v501_v15 = vpop.permute.xlu0 %500 }
 0x5ca   :  { %v503_v16 = vmul.f32 %v2587_v55, %v501_v15 }
 0x5cc   :  { %v505_v17 = vrot.slane %v503_v16, 4 }
 0x5ce   :  { %506 = vrot.lane.b32.xlu0 %v505_v17, %s2874_s3  ;;  %v2335_v17 = vld [vmem:[%s3513_s1 + $0x14] sm:$0xf] }
 0x5cf   :  { %vm618_vm8 = vcmp.gt.f32.partialorder %v2335_v17, 0.5 }
 0x5d2   :  { %550 = vrot.lane.b32.xlu0 %v537_v61, %s2875_s24 }
 0x63a   :  { %v546_v19 = vpop.permute.xlu1 %545 }
 0x63b   :  { %v3083_v20 = vsel %vm474_vm6, %v546_v19, %v3041_v24 }
 0x63c   :  { %556 = vrot.lane.b32.xlu1 %v3083_v20, %s2874_s3 }
 0x640   :  { %v507_v22 = vpop.permute.xlu0 %506 }
 0x641   :  { %v3092_v23 = vsel %vm471_vm7, %v507_v22, %v3045_v26 }
 0x642   :  { %554 = vst.msk [vmem:[#allocation4 + $0x4] sm:$0xf] %vm408_vm3, %v3092_v23 }
 0x644   :  { %v551_v25 = vpop.permute.xlu0 %550 }
 0x645   :  { %v3097_v24 = vsel %vm474_vm6, %v551_v25, %v3049_v28  ;;  %v606_v28 = vld [vmem:[#allocation2 + $0x18] sm:$0xf] }
 0x646   :  { %v665_v27 = vrot.slane %v3097_v24, 4 }
 0x648   :  { %666 = vrot.lane.b32.xlu0 %v665_v27, %s2874_s3 }
 0x6ae   :  { %v557_v29 = vpop.permute.xlu1 %556 }
 0x6af   :  { %559 = vst.msk [vmem:[#allocation4 + $0x18] sm:$0xf] %vm414_vm4, %v557_v29  ;;  %v560_v31 = vsel %vm160_vm0, %v3092_v23, %v557_v29 }
 0x6b0   :  { %v561_v32 = vpack.c.bf16 %v560_v31, %v560_v31 }
 0x6b2   :  { %2333 = vmatmul.mubr.msk.bf16.vlgmr.msra.gmra.mxu1 %vm281_vm5, %v561_v32 }
 0x6b3   :  { %862 = vmatpush1.bf16.msra.mxu1 %v2977_v4  ;;  %885 = vmatprep.mubr.bf16.mxu1 %v2872_v0 }
 0x6b4   :  { %863 = vmatprep.subr.bf16.mxu1 %v2980_v7 }
 0x6b7   :  { %864 = vmatpush1.bf16.msra.mxu1 %v2983_v8 }
 0x6b8   :  { %865 = vmatprep.subr.bf16.mxu1 %v2986_v10 }
 0x6ba   :  { %v667_v49 = vpop.permute.xlu0 %666 }
 0x6bb   :  { %866 = vmatpush1.bf16.msra.mxu1 %v2990_v11 }
 0x6bc   :  { %867 = vmatprep.subr.bf16.mxu1 %v2994_v12 }
 0x6bf   :  { %868 = vmatpush1.bf16.msra.mxu1 %v2997_v13 }
 0x6c0   :  { %1145 = vmatprep.subr.bf16.mxu1 %v2975_v3 }
 0x772   :  { %v599_v26 = vpop.f32.mrf.mxu1 }
 0x773   :  { %v607_v33 = vadd.f32 %v606_v28, %v599_v26 }
 0x774   :  { %v601_v34 = vpop.f32.mrf.mxu1 }
 0x775   :  { %2592 = vtanh.f32 %v607_v33  ;;  %v610_v35 = vrot.slane %v601_v34, 4  ;;  %v2336_v44 = vmul.f32 -1.442695, %v607_v33 }
 0x776   :  { %v603_v37 = vpop.f32.mrf.mxu1 }
 0x777   :  { %v612_v38 = vadd.f32 %v610_v35, %v608_v36  ;;  %v755_v35 = vld [vmem:[#allocation2 + $0x20] sm:$0xf] }
 0x778   :  { %v604_v39 = vpop.f32.mrf.mxu1 }
 0x779   :  { %2594 = vtanh.f32 %v612_v38  ;;  %v2337_v43 = vmul.f32 -1.442695, %v612_v38  ;;  %v750_v38 = vld [vmem:[#allocation2 + $0x18] sm:$0xf0] }
 0x77b   :  { %2596 = vpow2.f32 %v2337_v43 }
 0x77c   :  { %2598 = vpow2.f32 %v2336_v44 }
 0x782   :  { %v2593_v40 = vpop.eup %2592 }
 0x783   :  { %632 = vrot.lane.b32.xlu0 %v2593_v40, %s2868_s15 }
 0x786   :  { %v2595_v41 = vpop.eup %2594 }
 0x787   :  { %671 = vrot.lane.b32.xlu1 %v2595_v41, %s2868_s15 }
 0x788   :  { %v2597_v45 = vpop.eup %2596 }
 0x789   :  { %v660_v46 = vadd.f32 1.0, %v2597_v45  ;;  %v2599_v47 = vpop.eup %2598 }
 0x78a   :  { %v622_v48 = vadd.f32 1.0, %v2599_v47 }
 0x78b   :  { %512 = vrot.lane.b32.xlu1 %v511_v42, %s2875_s24  ;;  %2600 = vrcp.f32 %v660_v46 }
 0x78c   :  { %2602 = vrcp.f32 %v622_v48 }
 0x798   :  { %v2601_v50 = vpop.eup %2600 }
 0x799   :  { %v2603_v54 = vpop.eup %2602  ;;  %v669_v58 = vmul.f32 %v2601_v50, %v667_v49 }
 0x7f5   :  { %v633_v53 = vpop.permute.xlu0 %632 }
 0x7f6   :  { %v635_v56 = vmul.f32 %v2603_v54, %v633_v53 }
 0x7f9   :  { %v672_v51 = vpop.permute.xlu1 %671 }
 0x7fa   :  { %v674_v52 = vmul.f32 %v2601_v50, %v672_v51 }
 0x7fc   :  { %676 = vrot.lane.b32.xlu1 %v674_v52, %s2874_s3 }
 0x7fd   :  { %v513_v55 = vpop.permute.xlu1 %512 }
 0x7fe   :  { %v515_v57 = vsel %vm471_vm7, %v513_v55, %v3053_v30  ;;  %vm2877_vm7 = vmmov 0  }
 0x7ff   :  { %627 = vrot.lane.b32.xlu0 %v515_v57, %s2874_s3 }
 0x800   :  { %637 = vrot.lane.b32.xlu1 %v635_v56, %s2874_s3 }
 0x86e   :  { %v677_v59 = vpop.permute.xlu1 %676 }
 0x86f   :  { %v679_v60 = vadd.f32 %v677_v59, %v669_v58 }
 0x871   :  { %2604 = vtanh.f32 %v679_v60  ;;  %v628_v61 = vpop.permute.xlu0 %627  ;;  %v693_v16 = vrot.slane %v679_v60, 4 }
 0x872   :  { %v630_v62 = vmul.f32 %v2603_v54, %v628_v61  ;;  %v638_v63 = vpop.permute.xlu1 %637 }
 0x874   :  { %v640_v1 = vadd.f32 %v638_v63, %v630_v62 }
 0x876   :  { %2606 = vtanh.f32 %v640_v1 }
 0x87e   :  { %v2605_v2 = vpop.eup %2604 }
 0x87f   :  { %682 = vrot.lane.b32.xlu0 %v2605_v2, %s2868_s15 }
 0x883   :  { %v2607_v5 = vpop.eup %2606 }
 0x884   :  { %643 = vrot.lane.b32.xlu1 %v2607_v5, %s2868_s15 }
 0x8f1   :  { %v683_v30 = vpop.permute.xlu0 %682 }
 0x8f2   :  { %v685_v6 = vmul.f32 %v2601_v50, %v683_v30 }
 0x8f4   :  { %v687_v9 = vrot.slane %v685_v6, 4 }
 0x8f6   :  { %v644_v14 = vpop.permute.xlu1 %643  ;;  %688 = vrot.lane.b32.xlu0 %v687_v9, %s2874_s3  ;;  %v2340_v9 = vld [vmem:[%s3513_s1 + $0x10] sm:$0xf] }
 0x8f7   :  { %v646_v15 = vmul.f32 %v2603_v54, %v644_v14  ;;  %vm762_vm10 = vcmp.gt.f32.partialorder %v2340_v9, 0.5 }
 0x8f9   :  { %648 = vrot.lane.b32.xlu1 %v646_v15, %s2874_s3 }
 0x8fd   :  { %694 = vrot.lane.b32.xlu1 %v693_v16, %s2875_s24  ;;  %v2339_v16 = vld [vmem:[%s3513_s1 + $0xc] sm:$0xf] }
 0x8fe   :  { %vm759_vm11 = vcmp.gt.f32.partialorder %v2339_v16, 0.5 }
 0x901   :  { %653 = vrot.lane.b32.xlu1 %v640_v1, %s2875_s24 }
 0x968   :  { %v689_v19 = vpop.permute.xlu0 %688 }
 0x969   :  { %v3135_v21 = vsel %vm618_vm8, %v689_v19, %v3083_v20 }
 0x96a   :  { %700 = vrot.lane.b32.xlu0 %v3135_v21, %s2874_s3 }
 0x96b   :  { %v649_v22 = vpop.permute.xlu1 %648 }
 0x96c   :  { %v3140_v25 = vsel %vm615_vm9, %v649_v22, %v3092_v23 }
 0x96d   :  { %698 = vst.msk [vmem:[#allocation4 + $0x8] sm:$0xf] %vm408_vm3, %v3140_v25 }
 0x96f   :  { %v695_v27 = vpop.permute.xlu1 %694 }
 0x970   :  { %v3145_v29 = vsel %vm618_vm8, %v695_v27, %v3097_v24 }
 0x971   :  { %812 = vrot.lane.b32.xlu1 %v3145_v29, %s2874_s3 }
 0x973   :  { %v654_v20 = vpop.permute.xlu1 %653 }
 0x974   :  { %v3149_v31 = vsel %vm615_vm9, %v654_v20, %v515_v57 }
 0x975   :  { %v771_v32 = vrot.slane %v3149_v31, 4 }
 0x977   :  { %772 = vrot.lane.b32.xlu1 %v771_v32, %s2874_s3 }
 0x9dc   :  { %v701_v26 = vpop.permute.xlu0 %700 }
 0x9dd   :  { %703 = vst.msk [vmem:[#allocation4 + $0x14] sm:$0xf] %vm414_vm4, %v701_v26  ;;  %v704_v23 = vsel %vm160_vm0, %v3140_v25, %v701_v26 }
 0x9de   :  { %v705_v28 = vpack.c.bf16 %v704_v23, %v704_v23 }
 0x9e0   :  { %2338 = vmatmul.mubr.msk.bf16.vlgmr.msra.gmra.mxu0 %vm281_vm5, %v705_v28  ;;  %v896_v28 = vld [vmem:[#allocation2 + $0x10] sm:$0xf0] }
 0x9e1   :  { %1004 = vmatpush1.bf16.msra.mxu0 %v2977_v4  ;;  %1027 = vmatprep.mubr.bf16.mxu0 %v2872_v0 }
 0x9e2   :  { %1005 = vmatprep.subr.bf16.mxu0 %v2980_v7 }
 0x9e3   :  { %v813_v54 = vpop.permute.xlu1 %812 }
 0x9e5   :  { %1006 = vmatpush1.bf16.msra.mxu0 %v2983_v8 }
 0x9e6   :  { %1007 = vmatprep.subr.bf16.mxu0 %v2986_v10 }
 0x9e9   :  { %1008 = vmatpush1.bf16.msra.mxu0 %v2990_v11  ;;  %v773_v58 = vpop.permute.xlu1 %772 }
 0x9ea   :  { %1009 = vmatprep.subr.bf16.mxu0 %v2994_v12 }
 0x9ed   :  { %1010 = vmatpush1.bf16.msra.mxu0 %v2997_v13 }
 0x9ee   :  { %1287 = vmatprep.subr.bf16.mxu0 %v2975_v3 }
 0xaa0   :  { %v743_v24 = vpop.f32.mrf.mxu0 }
 0xaa1   :  { %v752_v33 = vrot.slane %v743_v24, 4 }
 0xaa2   :  { %v745_v34 = vpop.f32.mrf.mxu0 }
 0xaa3   :  { %v756_v36 = vadd.f32 %v755_v35, %v745_v34  ;;  %v754_v39 = vadd.f32 %v752_v33, %v750_v38 }
 0xaa4   :  { %v747_v37 = vpop.f32.mrf.mxu0 }
 0xaa5   :  { %2608 = vtanh.f32 %v756_v36  ;;  %v2342_v43 = vmul.f32 -1.442695, %v756_v36  ;;  %v2341_v44 = vmul.f32 -1.442695, %v754_v39 }
 0xaa6   :  { %v748_v40 = vpop.f32.mrf.mxu0  ;;  %2610 = vtanh.f32 %v754_v39 }
 0xaa7   :  { %2612 = vpow2.f32 %v2342_v43 }
 0xaa8   :  { %2614 = vpow2.f32 %v2341_v44 }
 0xab2   :  { %v2609_v41 = vpop.eup %2608 }
 0xab3   :  { %817 = vrot.lane.b32.xlu0 %v2609_v41, %s2868_s15  ;;  %v2611_v42 = vpop.eup %2610 }
 0xab4   :  { %v2613_v3 = vpop.eup %2612 }
 0xab5   :  { %v807_v45 = vadd.f32 1.0, %v2613_v3  ;;  %v2615_v46 = vpop.eup %2614 }
 0xab6   :  { %v766_v47 = vadd.f32 1.0, %v2615_v46 }
 0xab7   :  { %777 = vrot.lane.b32.xlu0 %v2611_v42, %s2868_s15  ;;  %2616 = vrcp.f32 %v807_v45 }
 0xab8   :  { %2618 = vrcp.f32 %v766_v47 }
 0xac4   :  { %v2617_v48 = vpop.eup %2616 }
 0xac5   :  { %v2619_v51 = vpop.eup %2618  ;;  %v815_v55 = vmul.f32 %v2617_v48, %v813_v54 }
 0xac6   :  { %v775_v59 = vmul.f32 %v2619_v51, %v773_v58 }
 0xb25   :  { %v818_v49 = vpop.permute.xlu0 %817 }
 0xb26   :  { %v820_v50 = vmul.f32 %v2617_v48, %v818_v49 }
 0xb28   :  { %822 = vrot.lane.b32.xlu0 %v820_v50, %s2874_s3 }
 0xb29   :  { %v778_v52 = vpop.permute.xlu0 %777 }
 0xb2a   :  { %v780_v53 = vmul.f32 %v2619_v51, %v778_v52 }
 0xb2c   :  { %782 = vrot.lane.b32.xlu0 %v780_v53, %s2874_s3 }
 0xb9a   :  { %v823_v56 = vpop.permute.xlu0 %822 }
 0xb9b   :  { %v825_v57 = vadd.f32 %v823_v56, %v815_v55 }
 0xb9d   :  { %2620 = vtanh.f32 %v825_v57 }
 0xb9e   :  { %v783_v60 = vpop.permute.xlu0 %782 }
 0xb9f   :  { %v785_v61 = vadd.f32 %v783_v60, %v775_v59 }
 0xba1   :  { %2622 = vtanh.f32 %v785_v61 }
 0xbaa   :  { %v2621_v62 = vpop.eup %2620 }
 0xbab   :  { %828 = vrot.lane.b32.xlu1 %v2621_v62, %s2868_s15  ;;  %v2345_v62 = vld [vmem:[%s3513_s1 + $0xc] sm:$0xf] }
 0xbac   :  { %vm904_vm12 = vcmp.gt.f32.partialorder %v2345_v62, 0.5 }
 0xbae   :  { %v2623_v63 = vpop.eup %2622 }
 0xbaf   :  { %788 = vrot.lane.b32.xlu0 %v2623_v63, %s2868_s15  ;;  %v2344_v63 = vld [vmem:[%s3513_s1 + $0x10] sm:$0xf] }
 0xbb0   :  { %vm902_vm13 = vcmp.gt.f32.partialorder %v2344_v63, 0.5 }
 0xc1d   :  { %v829_v1 = vpop.permute.xlu1 %828 }
 0xc1e   :  { %v831_v2 = vmul.f32 %v2617_v48, %v829_v1 }
 0xc20   :  { %833 = vrot.lane.b32.xlu1 %v831_v2, %s2874_s3 }
 0xc21   :  { %v789_v5 = vpop.permute.xlu0 %788 }
 0xc22   :  { %v791_v30 = vmul.f32 %v2619_v51, %v789_v5 }
 0xc24   :  { %v793_v6 = vrot.slane %v791_v30, 4 }
 0xc26   :  { %794 = vrot.lane.b32.xlu0 %v793_v6, %s2874_s3 }
 0xc2a   :  { %838 = vrot.lane.b32.xlu0 %v825_v57, %s2875_s24 }
 0xc92   :  { %v834_v14 = vpop.permute.xlu1 %833 }
 0xc93   :  { %v3179_v15 = vsel %vm762_vm10, %v834_v14, %v3135_v21 }
 0xc94   :  { %844 = vrot.lane.b32.xlu1 %v3179_v15, %s2874_s3 }
 0xc98   :  { %v795_v17 = vpop.permute.xlu0 %794 }
 0xc99   :  { %v3188_v18 = vsel %vm759_vm11, %v795_v17, %v3140_v25 }
 0xc9a   :  { %842 = vst.msk [vmem:[#allocation4 + $0xc] sm:$0xf] %vm408_vm3, %v3188_v18 }
 0xc9c   :  { %v839_v19 = vpop.permute.xlu0 %838 }
 0xc9d   :  { %v3193_v21 = vsel %vm762_vm10, %v839_v19, %v3145_v29  ;;  %v894_v29 = vld [vmem:[#allocation2 + $0x8] sm:$0xf] }
 0xc9e   :  { %v951_v22 = vrot.slane %v3193_v21, 4 }
 0xca0   :  { %952 = vrot.lane.b32.xlu0 %v951_v22, %s2874_s3  ;;  %v2753_v22 = vld [vmem:[#allocation9 + $0x24] ss:$8 sps:$4 sm:$0xff]  }
 0xd06   :  { %v845_v27 = vpop.permute.xlu1 %844 }
 0xd07   :  { %847 = vst.msk [vmem:[#allocation4 + $0x10] sm:$0xf] %vm414_vm4, %v845_v27  ;;  %v848_v20 = vsel %vm160_vm0, %v3188_v18, %v845_v27  ;;  %v2754_v27 = vld [vmem:[#allocation9 + $0x20] ss:$8 sps:$4 sm:$0xff]  }
 0xd08   :  { %v849_v32 = vpack.c.bf16 %v848_v20, %v848_v20  ;;  %v2755_v20 = vld [vmem:[#allocation9 + $0x14] ss:$8 sps:$4 sm:$0xff]  }
 0xd0a   :  { %2343 = vmatmul.mubr.msk.bf16.vlgmr.msra.gmra.mxu1 %vm281_vm5, %v849_v32  ;;  %v2756_v32 = vld [vmem:[#allocation9 + $0x10] ss:$8 sps:$4 sm:$0xff]  }
 0xd0b   :  { %1146 = vmatpush1.bf16.msra.mxu1 %v2977_v4  ;;  %1169 = vmatprep.mubr.bf16.mxu1 %v2872_v0 }
 0xd0c   :  { %1147 = vmatprep.subr.bf16.mxu1 %v2980_v7 }
 0xd0f   :  { %1148 = vmatpush1.bf16.msra.mxu1 %v2983_v8 }
 0xd10   :  { %1149 = vmatprep.subr.bf16.mxu1 %v2986_v10 }
 0xd12   :  { %v953_v40 = vpop.permute.xlu0 %952 }
 0xd13   :  { %1150 = vmatpush1.bf16.msra.mxu1 %v2990_v11  ;;  %v799_v11 = vrot.slane %v785_v61, 4 }
 0xd14   :  { %1151 = vmatprep.subr.bf16.mxu1 %v2994_v12 }
 0xd17   :  { %1152 = vmatpush1.bf16.msra.mxu1 %v2997_v13 }
 0xdca   :  { %v887_v25 = vpop.f32.mrf.mxu1 }
 0xdcb   :  { %v895_v26 = vadd.f32 %v894_v29, %v887_v25 }
 0xdcc   :  { %v889_v23 = vpop.f32.mrf.mxu1 }
 0xdcd   :  { %2624 = vtanh.f32 %v895_v26  ;;  %v898_v4 = vrot.slane %v889_v23, 4  ;;  %v2346_v35 = vmul.f32 -1.442695, %v895_v26  ;;  %v1041_v23 = vld [vmem:[#allocation2 + $0x10] sm:$0xf] }
 0xdce   :  { %v891_v24 = vpop.f32.mrf.mxu1 }
 0xdcf   :  { %v900_v33 = vadd.f32 %v898_v4, %v896_v28  ;;  %v1036_v24 = vld [vmem:[#allocation2 + $0x8] sm:$0xf0] }
 0xdd0   :  { %v892_v7 = vpop.f32.mrf.mxu1 }
 0xdd1   :  { %2626 = vtanh.f32 %v900_v33  ;;  %v2347_v34 = vmul.f32 -1.442695, %v900_v33 }
 0xdd3   :  { %2628 = vpow2.f32 %v2347_v34 }
 0xdd4   :  { %2630 = vpow2.f32 %v2346_v35 }
 0xdda   :  { %v2625_v8 = vpop.eup %2624 }
 0xddb   :  { %918 = vrot.lane.b32.xlu0 %v2625_v8, %s2868_s15 }
 0xdde   :  { %v2627_v10 = vpop.eup %2626 }
 0xddf   :  { %957 = vrot.lane.b32.xlu1 %v2627_v10, %s2868_s15 }
 0xde0   :  { %v2629_v36 = vpop.eup %2628 }
 0xde1   :  { %v946_v37 = vadd.f32 1.0, %v2629_v36  ;;  %v2631_v38 = vpop.eup %2630 }
 0xde2   :  { %v908_v39 = vadd.f32 1.0, %v2631_v38 }
 0xde3   :  { %800 = vrot.lane.b32.xlu1 %v799_v11, %s2875_s24  ;;  %2632 = vrcp.f32 %v946_v37 }
 0xde4   :  { %2634 = vrcp.f32 %v908_v39 }
 0xdf0   :  { %v2633_v41 = vpop.eup %2632 }
 0xdf1   :  { %v2635_v3 = vpop.eup %2634  ;;  %v955_v48 = vmul.f32 %v2633_v41, %v953_v40 }
 0xe4d   :  { %v919_v44 = vpop.permute.xlu0 %918 }
 0xe4e   :  { %v921_v46 = vmul.f32 %v2635_v3, %v919_v44 }
 0xe51   :  { %v958_v42 = vpop.permute.xlu1 %957 }
 0xe52   :  { %v960_v43 = vmul.f32 %v2633_v41, %v958_v42 }
 0xe54   :  { %962 = vrot.lane.b32.xlu1 %v960_v43, %s2874_s3 }
 0xe55   :  { %v801_v45 = vpop.permute.xlu1 %800 }
 0xe56   :  { %v803_v47 = vsel %vm759_vm11, %v801_v45, %v3149_v31 }
 0xe57   :  { %913 = vrot.lane.b32.xlu0 %v803_v47, %s2874_s3 }
 0xe58   :  { %923 = vrot.lane.b32.xlu1 %v921_v46, %s2874_s3 }
 0xec6   :  { %v963_v49 = vpop.permute.xlu1 %962 }
 0xec7   :  { %v965_v50 = vadd.f32 %v963_v49, %v955_v48 }
 0xec9   :  { %2636 = vtanh.f32 %v965_v50  ;;  %v914_v51 = vpop.permute.xlu0 %913  ;;  %v979_v61 = vrot.slane %v965_v50, 4 }
 0xeca   :  { %v916_v52 = vmul.f32 %v2635_v3, %v914_v51  ;;  %v924_v53 = vpop.permute.xlu1 %923 }
 0xecc   :  { %v926_v54 = vadd.f32 %v924_v53, %v916_v52 }
 0xece   :  { %2638 = vtanh.f32 %v926_v54 }
 0xed6   :  { %v2637_v55 = vpop.eup %2636 }
 0xed7   :  { %968 = vrot.lane.b32.xlu0 %v2637_v55, %s2868_s15 }
 0xedb   :  { %v2639_v56 = vpop.eup %2638 }
 0xedc   :  { %929 = vrot.lane.b32.xlu1 %v2639_v56, %s2868_s15 }
 0xf49   :  { %v969_v31 = vpop.permute.xlu0 %968 }
 0xf4a   :  { %v971_v57 = vmul.f32 %v2633_v41, %v969_v31  ;;  %v2350_v31 = vld [vmem:[%s3513_s1 + $0x8] sm:$0xf] }
 0xf4b   :  { %vm1046_vm14 = vcmp.gt.f32.partialorder %v2350_v31, 0.5 }
 0xf4c   :  { %v973_v58 = vrot.slane %v971_v57, 4 }
 0xf4e   :  { %v930_v59 = vpop.permute.xlu1 %929  ;;  %974 = vrot.lane.b32.xlu0 %v973_v58, %s2874_s3 }
 0xf4f   :  { %v932_v60 = vmul.f32 %v2635_v3, %v930_v59  ;;  %v2349_v59 = vld [vmem:[%s3513_s1 + $0x14] sm:$0xf] }
 0xf50   :  { %vm1044_vm15 = vcmp.gt.f32.partialorder %v2349_v59, 0.5 }
 0xf51   :  { %934 = vrot.lane.b32.xlu1 %v932_v60, %s2874_s3 }
 0xf55   :  { %980 = vrot.lane.b32.xlu1 %v979_v61, %s2875_s24 }
 0xf59   :  { %939 = vrot.lane.b32.xlu1 %v926_v54, %s2875_s24 }
 0xfc0   :  { %v975_v1 = vpop.permute.xlu0 %974 }
 0xfc1   :  { %v3230_v2 = vsel %vm904_vm12, %v975_v1, %v3179_v15 }
 0xfc2   :  { %986 = vrot.lane.b32.xlu0 %v3230_v2, %s2874_s3 }
 0xfc3   :  { %v935_v5 = vpop.permute.xlu1 %934 }
 0xfc4   :  { %v3235_v30 = vsel %vm902_vm13, %v935_v5, %v3188_v18 }
 0xfc5   :  { %984 = vst.msk [vmem:[#allocation4 + $0x10] sm:$0xf] %vm408_vm3, %v3235_v30 }
 0xfc7   :  { %v981_v6 = vpop.permute.xlu1 %980 }
 0xfc8   :  { %v3240_v9 = vsel %vm904_vm12, %v981_v6, %v3193_v21  ;;  %v2752_v21 = vld [vmem:[#allocation9 + $0x30] ss:$8 sps:$4 sm:$0xff]  }
 0xfc9   :  { %1096 = vrot.lane.b32.xlu1 %v3240_v9, %s2874_s3 }
 0xfcb   :  { %v940_v14 = vpop.permute.xlu1 %939 }
 0xfcc   :  { %v3244_v15 = vsel %vm902_vm13, %v940_v14, %v803_v47  ;;  %v1178_v14 = vld [vmem:[#allocation2 + $0x28] sm:$0xf] }
 0xfcd   :  { %v1055_v16 = vrot.slane %v3244_v15, 4 }
 0xfcf   :  { %1056 = vrot.lane.b32.xlu1 %v1055_v16, %s2874_s3 }
0x1034   :  { %v987_v17 = vpop.permute.xlu0 %986 }
0x1035   :  { %989 = vst.msk [vmem:[#allocation4 + $0xc] sm:$0xf] %vm414_vm4, %v987_v17  ;;  %v990_v18 = vsel %vm160_vm0, %v3235_v30, %v987_v17 }
0x1036   :  { %v991_v19 = vpack.c.bf16 %v990_v18, %v990_v18  ;;  %v1180_v18 = vld [vmem:[#allocation2] sm:$0xf0] }
0x1038   :  { %2348 = vmatmul.mubr.msk.bf16.vlgmr.msra.gmra.mxu0 %vm281_vm5, %v991_v19 }
0x1039   :  { %1288 = vmatpush1.bf16.msra.mxu0 %v2752_v21  ;;  %1311 = vmatprep.mubr.bf16.mxu0 %v2872_v0 }
0x103a   :  { %1289 = vmatprep.subr.bf16.mxu0 %v2753_v22 }
0x103b   :  { %v1097_v43 = vpop.permute.xlu1 %1096 }
0x103d   :  { %1290 = vmatpush1.bf16.msra.mxu0 %v2754_v27 }
0x103e   :  { %1291 = vmatprep.subr.bf16.mxu0 %v2755_v20 }
0x1041   :  { %1292 = vmatpush1.bf16.msra.mxu0 %v2756_v32  ;;  %v1057_v46 = vpop.permute.xlu1 %1056 }
0x1042   :  { %1293 = vmatprep.subr.bf16.mxu0 %v2994_v12 }
0x1045   :  { %1294 = vmatpush1.bf16.msra.mxu0 %v2997_v13 }
0x10f8   :  { %v1029_v25 = vpop.f32.mrf.mxu0 }
0x10f9   :  { %v1038_v29 = vrot.slane %v1029_v25, 4 }
0x10fa   :  { %v1031_v26 = vpop.f32.mrf.mxu0 }
0x10fb   :  { %v1042_v4 = vadd.f32 %v1041_v23, %v1031_v26  ;;  %v1040_v33 = vadd.f32 %v1038_v29, %v1036_v24 }
0x10fc   :  { %v1033_v28 = vpop.f32.mrf.mxu0 }
0x10fd   :  { %2640 = vtanh.f32 %v1042_v4  ;;  %v2352_v12 = vmul.f32 -1.442695, %v1042_v4  ;;  %v2351_v11 = vmul.f32 -1.442695, %v1040_v33 }
0x10fe   :  { %v1034_v7 = vpop.f32.mrf.mxu0  ;;  %2642 = vtanh.f32 %v1040_v33 }
0x10ff   :  { %2644 = vpow2.f32 %v2352_v12 }
0x1100   :  { %2646 = vpow2.f32 %v2351_v11 }
0x110a   :  { %v2641_v8 = vpop.eup %2640 }
0x110b   :  { %1101 = vrot.lane.b32.xlu0 %v2641_v8, %s2868_s15  ;;  %v2643_v10 = vpop.eup %2642 }
0x110c   :  { %v2645_v13 = vpop.eup %2644 }
0x110d   :  { %v1091_v34 = vadd.f32 1.0, %v2645_v13  ;;  %v2647_v35 = vpop.eup %2646 }
0x110e   :  { %v1050_v36 = vadd.f32 1.0, %v2647_v35 }
0x110f   :  { %1061 = vrot.lane.b32.xlu0 %v2643_v10, %s2868_s15  ;;  %2648 = vrcp.f32 %v1091_v34 }
0x1110   :  { %2650 = vrcp.f32 %v1050_v36 }
0x111c   :  { %v2649_v37 = vpop.eup %2648 }
0x111d   :  { %v2651_v40 = vpop.eup %2650  ;;  %v1099_v44 = vmul.f32 %v2649_v37, %v1097_v43 }
0x111e   :  { %v1059_v47 = vmul.f32 %v2651_v40, %v1057_v46 }
0x117d   :  { %v1102_v38 = vpop.permute.xlu0 %1101 }
0x117e   :  { %v1104_v39 = vmul.f32 %v2649_v37, %v1102_v38 }
0x1180   :  { %1106 = vrot.lane.b32.xlu0 %v1104_v39, %s2874_s3 }
0x1181   :  { %v1062_v41 = vpop.permute.xlu0 %1061 }
0x1182   :  { %v1064_v42 = vmul.f32 %v2651_v40, %v1062_v41 }
0x1184   :  { %1066 = vrot.lane.b32.xlu0 %v1064_v42, %s2874_s3 }
0x11f2   :  { %v1107_v3 = vpop.permute.xlu0 %1106 }
0x11f3   :  { %v1109_v45 = vadd.f32 %v1107_v3, %v1099_v44 }
0x11f5   :  { %2652 = vtanh.f32 %v1109_v45 }
0x11f6   :  { %v1067_v48 = vpop.permute.xlu0 %1066 }
0x11f7   :  { %v1069_v49 = vadd.f32 %v1067_v48, %v1059_v47  ;;  %v2355_v48 = vld [vmem:[%s3513_s1 + $0x4] sm:$0xf] }
0x11f8   :  { %vm1188_vm1 = vcmp.gt.f32.partialorder %v2355_v48, 0.5 }
0x11f9   :  { %2654 = vtanh.f32 %v1069_v49  ;;  %v1083_v32 = vrot.slane %v1069_v49, 4  ;;  %v2354_v49 = vld [vmem:[%s3513_s1 + $0x18] sm:$0xf] }
0x11fa   :  { %vm1186_vm2 = vcmp.gt.f32.partialorder %v2354_v49, 0.5 }
0x1202   :  { %v2653_v50 = vpop.eup %2652 }
0x1203   :  { %1112 = vrot.lane.b32.xlu1 %v2653_v50, %s2868_s15 }
0x1206   :  { %v2655_v51 = vpop.eup %2654 }
0x1207   :  { %1072 = vrot.lane.b32.xlu0 %v2655_v51, %s2868_s15 }
0x1275   :  { %v1113_v52 = vpop.permute.xlu1 %1112 }
0x1276   :  { %v1115_v53 = vmul.f32 %v2649_v37, %v1113_v52 }
0x1278   :  { %1117 = vrot.lane.b32.xlu1 %v1115_v53, %s2874_s3 }
0x1279   :  { %v1073_v54 = vpop.permute.xlu0 %1072 }
0x127a   :  { %v1075_v55 = vmul.f32 %v2651_v40, %v1073_v54 }
0x127c   :  { %v1077_v56 = vrot.slane %v1075_v55, 4 }
0x127e   :  { %1078 = vrot.lane.b32.xlu0 %v1077_v56, %s2874_s3 }
0x1282   :  { %1122 = vrot.lane.b32.xlu0 %v1109_v45, %s2875_s24 }
0x12ea   :  { %v1118_v57 = vpop.permute.xlu1 %1117 }
0x12eb   :  { %v3268_v58 = vsel %vm1046_vm14, %v1118_v57, %v3230_v2 }
0x12ec   :  { %1128 = vrot.lane.b32.xlu1 %v3268_v58, %s2874_s3 }
0x12f0   :  { %v1079_v60 = vpop.permute.xlu0 %1078 }
0x12f1   :  { %v3277_v61 = vsel %vm1044_vm15, %v1079_v60, %v3235_v30 }
0x12f2   :  { %1126 = vst.msk [vmem:[#allocation4 + $0x14] sm:$0xf] %vm408_vm3, %v3277_v61 }
0x12f4   :  { %v1123_v62 = vpop.permute.xlu0 %1122 }
0x12f5   :  { %v3282_v63 = vsel %vm1046_vm14, %v1123_v62, %v3240_v9  ;;  %vm2300_vm14 = vcmask 11264  }
0x12f6   :  { %v1235_v1 = vrot.slane %v3282_v63, 4 }
0x12f8   :  { %1236 = vrot.lane.b32.xlu0 %v1235_v1, %s2874_s3 }
0x135e   :  { %v1129_v2 = vpop.permute.xlu1 %1128 }
0x135f   :  { %1131 = vst.msk [vmem:[#allocation4 + $0x8] sm:$0xf] %vm414_vm4, %v1129_v2  ;;  %v1132_v5 = vsel %vm160_vm0, %v3277_v61, %v1129_v2 }
0x1360   :  { %v1133_v6 = vpack.c.bf16 %v1132_v5, %v1132_v5 }
0x1362   :  { %2353 = vmatmul.mubr.msk.bf16.vlgmr.msra.gmra.mxu1 %vm281_vm5, %v1133_v6  ;;  %v1320_v6 = vld [vmem:[#allocation2 + $0x28] sm:$0xf0] }
0x136a   :  { %v1237_v24 = vpop.permute.xlu0 %1236 }
0x1422   :  { %v1171_v30 = vpop.f32.mrf.mxu1 }
0x1423   :  { %v1179_v16 = vadd.f32 %v1178_v14, %v1171_v30 }
0x1424   :  { %v1173_v17 = vpop.f32.mrf.mxu1 }
0x1425   :  { %2656 = vtanh.f32 %v1179_v16  ;;  %v1182_v9 = vrot.slane %v1173_v17, 4  ;;  %v2356_v29 = vmul.f32 -1.442695, %v1179_v16 }
0x1426   :  { %v1175_v19 = vpop.f32.mrf.mxu1 }
0x1427   :  { %v1184_v21 = vadd.f32 %v1182_v9, %v1180_v18 }
0x1428   :  { %v1176_v22 = vpop.f32.mrf.mxu1 }
0x1429   :  { %2658 = vtanh.f32 %v1184_v21  ;;  %v2357_v25 = vmul.f32 -1.442695, %v1184_v21 }
0x142b   :  { %2660 = vpow2.f32 %v2357_v25 }
0x142c   :  { %2662 = vpow2.f32 %v2356_v29 }
0x1432   :  { %v2657_v27 = vpop.eup %2656 }
0x1433   :  { %1202 = vrot.lane.b32.xlu0 %v2657_v27, %s2868_s15 }
0x1436   :  { %v2659_v20 = vpop.eup %2658 }
0x1437   :  { %1241 = vrot.lane.b32.xlu1 %v2659_v20, %s2868_s15 }
0x1438   :  { %v2661_v26 = vpop.eup %2660 }
0x1439   :  { %v1230_v23 = vadd.f32 1.0, %v2661_v26  ;;  %v2663_v4 = vpop.eup %2662 }
0x143a   :  { %v1192_v28 = vadd.f32 1.0, %v2663_v4 }
0x143b   :  { %1084 = vrot.lane.b32.xlu1 %v1083_v32, %s2875_s24  ;;  %2664 = vrcp.f32 %v1230_v23 }
0x143c   :  { %2666 = vrcp.f32 %v1192_v28 }
0x1448   :  { %v2665_v33 = vpop.eup %2664 }
0x1449   :  { %v2667_v12 = vpop.eup %2666  ;;  %v1239_v35 = vmul.f32 %v2665_v33, %v1237_v24 }
0x14a5   :  { %v1203_v10 = vpop.permute.xlu0 %1202 }
0x14a6   :  { %v1205_v13 = vmul.f32 %v2667_v12, %v1203_v10 }
0x14a9   :  { %v1242_v7 = vpop.permute.xlu1 %1241 }
0x14aa   :  { %v1244_v8 = vmul.f32 %v2665_v33, %v1242_v7 }
0x14ac   :  { %1246 = vrot.lane.b32.xlu1 %v1244_v8, %s2874_s3 }
0x14ad   :  { %v1085_v11 = vpop.permute.xlu1 %1084 }
0x14ae   :  { %v1087_v34 = vsel %vm1044_vm15, %v1085_v11, %v3244_v15 }
0x14af   :  { %1197 = vrot.lane.b32.xlu0 %v1087_v34, %s2874_s3 }
0x14b0   :  { %1207 = vrot.lane.b32.xlu1 %v1205_v13, %s2874_s3 }
0x151e   :  { %v1247_v36 = vpop.permute.xlu1 %1246 }
0x151f   :  { %v1249_v37 = vadd.f32 %v1247_v36, %v1239_v35  ;;  %v2555_v35 = vld [vmem:[#allocation10 + $0x10] sm:$0xff]  }
0x1521   :  { %2668 = vtanh.f32 %v1249_v37  ;;  %v1198_v38 = vpop.permute.xlu0 %1197  ;;  %v1263_v47 = vrot.slane %v1249_v37, 4 }
0x1522   :  { %v1200_v39 = vmul.f32 %v2667_v12, %v1198_v38  ;;  %v1208_v40 = vpop.permute.xlu1 %1207 }
0x1524   :  { %v1210_v41 = vadd.f32 %v1208_v40, %v1200_v39 }
0x1526   :  { %2670 = vtanh.f32 %v1210_v41 }
0x152e   :  { %v2669_v42 = vpop.eup %2668 }
0x152f   :  { %1252 = vrot.lane.b32.xlu0 %v2669_v42, %s2868_s15  ;;  %v2557_v42 = vld [vmem:[#allocation10] sm:$0xff]  }
0x1533   :  { %v2671_v43 = vpop.eup %2670 }
0x1534   :  { %1213 = vrot.lane.b32.xlu1 %v2671_v43, %s2868_s15  ;;  %v1329_v43 = vld [vmem:[%s3513_s1] sm:$0xf] }
0x1535   :  { %vm1330_vm6 = vcmp.gt.f32.partialorder %v1329_v43, 0.5 }
0x15a1   :  { %v1253_v15 = vpop.permute.xlu0 %1252 }
0x15a2   :  { %v1255_v44 = vmul.f32 %v2665_v33, %v1253_v15  ;;  %v3338_v15 = vld [vmem:[#allocation12 + $0x8] sm:$0xff]  }
0x15a4   :  { %v1257_v3 = vrot.slane %v1255_v44, 4 }
0x15a6   :  { %v1214_v45 = vpop.permute.xlu1 %1213  ;;  %1258 = vrot.lane.b32.xlu0 %v1257_v3, %s2874_s3  ;;  %v2876_v3 = vmov 0.0  }
0x15a7   :  { %v1216_v46 = vmul.f32 %v2667_v12, %v1214_v45  ;;  %2444 = vmatprep.subr.bf16.mxu0 %v2876_v3 }
0x15a9   :  { %1218 = vrot.lane.b32.xlu1 %v1216_v46, %s2874_s3  ;;  %v2359_v46 = vld [vmem:[%s3513_s1 + $0x1c] sm:$0xf] }
0x15aa   :  { %vm1328_vm8 = vcmp.gt.f32.partialorder %v2359_v46, 0.5 }
0x15ad   :  { %1264 = vrot.lane.b32.xlu1 %v1263_v47, %s2875_s24  ;;  %v3347_v47 = vld [vmem:[#allocation12] sm:$0xff]  }
0x15b1   :  { %1223 = vrot.lane.b32.xlu1 %v1210_v41, %s2875_s24  ;;  %v2556_v41 = vld [vmem:[#allocation10 + $0x8] sm:$0xff]  }
0x1618   :  { %v1259_v50 = vpop.permute.xlu0 %1258 }
0x1619   :  { %v3311_v51 = vsel %vm1188_vm1, %v1259_v50, %v3268_v58 }
0x161a   :  { %1270 = vrot.lane.b32.xlu0 %v3311_v51, %s2874_s3 }
0x161b   :  { %v1219_v52 = vpop.permute.xlu1 %1218 }
0x161c   :  { %v3316_v53 = vsel %vm1186_vm2, %v1219_v52, %v3277_v61 }
0x161d   :  { %1268 = vst.msk [vmem:[#allocation4 + $0x18] sm:$0xf] %vm408_vm3, %v3316_v53 }
0x161f   :  { %v1265_v54 = vpop.permute.xlu1 %1264 }
0x1620   :  { %v1267_v55 = vsel %vm1188_vm1, %v1265_v54, %v3282_v63  ;;  %v1325_v63 = vld [vmem:[#allocation2] sm:$0xf] }
0x1621   :  { %1374 = vrot.lane.b32.xlu1 %v1267_v55, %s2874_s3  ;;  %v1407_v55 = vld [vmem:[#allocation4 + $0x10] sm:$0xff] }
0x1623   :  { %v1224_v56 = vpop.permute.xlu1 %1223 }
0x1624   :  { %v1226_v31 = vsel %vm1186_vm2, %v1224_v56, %v1087_v34  ;;  %v2554_v34 = vld [vmem:[#allocation10 + $0x18] sm:$0xff]  }
0x1625   :  { %v1339_v57 = vrot.slane %v1226_v31, 4  ;;  %2432 = vmatprep.subr.bf16.mxu1 %v2554_v34 }
0x1626   :  { %2433 = vmatpush3.bf16.msra.mxu1 %v2554_v34 }
0x1627   :  { %1340 = vrot.lane.b32.xlu1 %v1339_v57, %s2874_s3  ;;  %2434 = vmatprep.subr.bf16.mxu1 %v2555_v35 }
0x162a   :  { %2435 = vmatpush3.bf16.msra.mxu1 %v2555_v35 }
0x162b   :  { %2436 = vmatprep.subr.bf16.mxu1 %v2556_v41 }
0x162e   :  { %2437 = vmatpush3.bf16.msra.mxu1 %v2556_v41 }
0x162f   :  { %2438 = vmatprep.subr.bf16.mxu1 %v2557_v42 }
0x1632   :  { %2439 = vmatpush3.bf16.msra.mxu1 %v2557_v42 }
0x1633   :  { %2460 = vmatprep.subr.bf16.mxu1 %v2876_v3 }
0x168c   :  { %v1271_v58 = vpop.permute.xlu0 %1270 }
0x168d   :  { %1273 = vst.msk [vmem:[#allocation4 + $0x4] sm:$0xf] %vm414_vm4, %v1271_v58  ;;  %v1274_v59 = vsel %vm160_vm0, %v3316_v53, %v1271_v58 }
0x168e   :  { %v1275_v60 = vpack.c.bf16 %v1274_v59, %v1274_v59  ;;  %v2362_v59 = vld [vmem:[%s3518_s6] ss:$0 sm:$0xff] }
0x1690   :  { %2358 = vmatmul.mubr.msk.bf16.vlgmr.msra.gmra.mxu0 %vm281_vm5, %v1275_v60 }
0x1691   :  { %2445 = vmatpush3.bf16.msra.mxu0 %v3338_v15  ;;  %2448 = vmatprep.mubr.msk.bf16.mxu0 %vm2877_vm7, %v2876_v3 }
0x1692   :  { %2446 = vmatprep.subr.bf16.mxu0 %v2876_v3 }
0x1693   :  { %v1375_v4 = vpop.permute.xlu1 %1374 }
0x1695   :  { %2447 = vmatpush3.bf16.msra.mxu0 %v3347_v47 }
0x1696   :  { %2452 = vmatprep.subr.bf16.mxu0 %v2876_v3 }
0x1698   :  { %2449 = vmatmul.mubr.bf16.vlgmr.msra.gmra.mxu0 %v2872_v0 }
0x1699   :  { %v1341_v7 = vpop.permute.xlu1 %1340  ;;  %2453 = vmatpush3.bf16.msra.mxu0 %v3338_v15  ;;  %2456 = vmatprep.mubr.msk.bf16.mxu0 %vm2877_vm7, %v2876_v3 }
0x169a   :  { %2454 = vmatprep.subr.bf16.mxu0 %v2876_v3 }
0x169d   :  { %2455 = vmatpush3.bf16.msra.mxu0 %v3347_v47 }
0x169e   :  { %2468 = vmatprep.subr.bf16.mxu0 %v2876_v3 }
0x1750   :  { %v1313_v61 = vpop.f32.mrf.mxu0 }
0x1751   :  { %v1322_v62 = vrot.slane %v1313_v61, 4 }
0x1752   :  { %v1315_v1 = vpop.f32.mrf.mxu0 }
0x1753   :  { %v1326_v2 = vadd.f32 %v1325_v63, %v1315_v1  ;;  %v1324_v30 = vadd.f32 %v1322_v62, %v1320_v6 }
0x1754   :  { %v1317_v5 = vpop.f32.mrf.mxu0 }
0x1755   :  { %2672 = vtanh.f32 %v1326_v2  ;;  %v2361_v9 = vmul.f32 -1.442695, %v1326_v2  ;;  %v2360_v18 = vmul.f32 -1.442695, %v1324_v30 }
0x1756   :  { %v1318_v14 = vpop.f32.mrf.mxu0  ;;  %2674 = vtanh.f32 %v1324_v30 }
0x1757   :  { %2676 = vpow2.f32 %v2361_v9 }
0x1758   :  { %2678 = vpow2.f32 %v2360_v18  ;;  %v1558_v56 = vpop.f32.mrf.mxu0 }
0x175a   :  { %v2450_v31 = vpop.f32.mrf.mxu0 }
0x175c   :  { %v1561_v57 = vpop.f32.mrf.mxu0 }
0x175e   :  { %v2451_v58 = vpop.f32.mrf.mxu0 }
0x1762   :  { %v2673_v16 = vpop.eup %2672 }
0x1763   :  { %1379 = vrot.lane.b32.xlu0 %v2673_v16, %s2868_s15  ;;  %v2675_v17 = vpop.eup %2674 }
0x1764   :  { %v2677_v19 = vpop.eup %2676 }
0x1765   :  { %v1369_v21 = vadd.f32 1.0, %v2677_v19  ;;  %v2679_v22 = vpop.eup %2678 }
0x1766   :  { %v1334_v27 = vadd.f32 1.0, %v2679_v22 }
0x1767   :  { %1345 = vrot.lane.b32.xlu0 %v2675_v17, %s2868_s15  ;;  %2680 = vrcp.f32 %v1369_v21 }
0x1768   :  { %2682 = vrcp.f32 %v1334_v27 }
0x1774   :  { %v2681_v20 = vpop.eup %2680 }
0x1775   :  { %v2683_v29 = vpop.eup %2682  ;;  %v1377_v28 = vmul.f32 %v2681_v20, %v1375_v4 }
0x1776   :  { %v1343_v8 = vmul.f32 %v2683_v29, %v1341_v7 }
0x17d5   :  { %v1380_v32 = vpop.permute.xlu0 %1379 }
0x17d6   :  { %v1382_v25 = vmul.f32 %v2681_v20, %v1380_v32 }
0x17d8   :  { %1384 = vrot.lane.b32.xlu0 %v1382_v25, %s2874_s3 }
0x17d9   :  { %v1346_v26 = vpop.permute.xlu0 %1345 }
0x17da   :  { %v1348_v23 = vmul.f32 %v2683_v29, %v1346_v26 }
0x17dc   :  { %1350 = vrot.lane.b32.xlu0 %v1348_v23, %s2874_s3 }
0x184a   :  { %v1385_v24 = vpop.permute.xlu0 %1384 }
0x184b   :  { %v1387_v33 = vadd.f32 %v1385_v24, %v1377_v28 }
0x184d   :  { %2684 = vtanh.f32 %v1387_v33 }
0x184e   :  { %v1351_v10 = vpop.permute.xlu0 %1350 }
0x184f   :  { %v1353_v12 = vadd.f32 %v1351_v10, %v1343_v8 }
0x1851   :  { %2686 = vtanh.f32 %v1353_v12 }
0x185a   :  { %v2685_v11 = vpop.eup %2684 }
0x185b   :  { %1390 = vrot.lane.b32.xlu1 %v2685_v11, %s2868_s15 }
0x185e   :  { %v2687_v13 = vpop.eup %2686 }
0x185f   :  { %1356 = vrot.lane.b32.xlu0 %v2687_v13, %s2868_s15 }
0x18cd   :  { %v1391_v36 = vpop.permute.xlu1 %1390 }
0x18ce   :  { %v1393_v37 = vmul.f32 %v2681_v20, %v1391_v36 }
0x18d0   :  { %1395 = vrot.lane.b32.xlu1 %v1393_v37, %s2874_s3 }
0x18d1   :  { %v1357_v38 = vpop.permute.xlu0 %1356 }
0x18d2   :  { %v1359_v39 = vmul.f32 %v2683_v29, %v1357_v38  ;;  %v2371_v29 = vld [vmem:[%s3513_s1 + $0x1c] sm:$0xf] }
0x18d4   :  { %v1361_v40 = vrot.slane %v1359_v39, 4 }
0x18d6   :  { %1362 = vrot.lane.b32.xlu0 %v1361_v40, %s2874_s3 }
0x1942   :  { %v1396_v44 = vpop.permute.xlu1 %1395 }
0x1943   :  { %v1398_v45 = vsel %vm1330_vm6, %v1396_v44, %v3311_v51 }
0x1944   :  { %1401 = vrot.lane.b32.xlu1 %v1398_v45, %s2874_s3 }
0x1948   :  { %v1363_v48 = vpop.permute.xlu0 %1362 }
0x1949   :  { %v1365_v49 = vsel %vm1328_vm8, %v1363_v48, %v3316_v53  ;;  %v1406_v53 = vld [vmem:[#allocation4 + $0x8] sm:$0xff]  ;;  %v2374_v48 = vld [vmem:[%s3513_s1 + $0x18] sm:$0xf] }
0x194a   :  { %1399 = vst.msk [vmem:[#allocation4 + $0x1c] sm:$0xf] %vm408_vm3, %v1365_v49  ;;  %vm1567_vm3 = vcmp.gt.f32.partialorder %v2371_v29, 0.5 }
0x1951   :  { %v1408_v51 = vld [vmem:[#allocation4 + $0x18] sm:$0xff] }
0x1952   :  { %v1410_v0 = vpack.c.bf16 %v1408_v51, %v1407_v55 }
0x19b6   :  { %v1402_v50 = vpop.permute.xlu1 %1401 }
0x19b7   :  { %1404 = vst.msk [vmem:[#allocation4] sm:$0xf] %vm414_vm4, %v1402_v50  ;;  %vm1649_vm4 = vcmp.gt.f32.partialorder %v2374_v48, 0.5 }
0x19be   :  { %v1405_v52 = vld [vmem:[#allocation4] sm:$0xff] }
0x19bf   :  { %v1409_v54 = vpack.c.bf16 %v1406_v53, %v1405_v52 }
0x19c1   :  { %2440 = vmatprep.mubr.msk.bf16.mxu1 %vm281_vm5, %v1409_v54 }
0x19c2   :  { %2441 = vmatmul.mubr.msk.bf16.vlgmr.msra.gmra.mxu1 %vm281_vm5, %v1410_v0 }
0x19c3   :  { %2461 = vmatpush3.bf16.msra.mxu1 %v3338_v15  ;;  %2464 = vmatprep.mubr.msk.bf16.mxu1 %vm2877_vm7, %v2876_v3 }
0x19c4   :  { %2462 = vmatprep.subr.bf16.mxu1 %v2876_v3 }
0x19c7   :  { %2463 = vmatpush3.bf16.msra.mxu1 %v3347_v47 }
0x19c8   :  { %2476 = vmatprep.subr.bf16.mxu1 %v2876_v3 }
0x1a82   :  { %v2442_v60 = vpop.f32.mrf.mxu1 }
0x1a83   :  { %v1499_v61 = vadd.f32 %v2442_v60, %v2362_v59 }
0x1a84   :  { %v1490_v62 = vpop.f32.mrf.mxu1 }
0x1a85   :  { %1507 = vst [vmem:[#allocation3 + $0x10] sm:$0xff] %v1499_v61  ;;  %v1491_v1 = vadd.f32 %v2362_v59, %v1490_v62 }
0x1a86   :  { %v2443_v63 = vpop.f32.mrf.mxu1 }
0x1a87   :  { %1505 = vst [vmem:[#allocation3] sm:$0xff] %v1491_v1  ;;  %v1502_v2 = vadd.f32 %v2443_v63, %v2362_v59 }
0x1a88   :  { %v1493_v5 = vpop.f32.mrf.mxu1 }
0x1a89   :  { %1508 = vst [vmem:[#allocation3 + $0x18] sm:$0xff] %v1502_v2  ;;  %v1494_v6 = vadd.f32 %v2362_v59, %v1493_v5 }
0x1a8b   :  { %1506 = vst [vmem:[#allocation3 + $0x8] sm:$0xff] %v1494_v6 }
0x1a8c   :  { %v1818_v29 = vld [vmem:[#allocation3 + $0x10] sm:$0xf] }
0x1a90   :  { %v1564_v30 = vld [vmem:[#allocation3 + $0x1c] sm:$0xf]  ;;  %v1646_v10 = vld [vmem:[#allocation3 + $0x18] sm:$0xf] }
0x1a91   :  { %v1565_v14 = vadd.f32 %v1564_v30, %v1558_v56  ;;  %v1732_v56 = vld [vmem:[#allocation3 + $0x14] sm:$0xf] }
0x1a92   :  { %v1904_v48 = vld [vmem:[#allocation3 + $0xc] sm:$0xf] }
0x1a93   :  { %2688 = vtanh.f32 %v1565_v14  ;;  %v2372_v17 = vmul.f32 -1.442695, %v1565_v14 }
0x1a95   :  { %2690 = vpow2.f32 %v2372_v17 }
0x1aa0   :  { %v2689_v16 = vpop.eup %2688 }
0x1aa1   :  { %1577 = vrot.lane.b32.xlu0 %v2689_v16, %s2868_s15 }
0x1aa2   :  { %v2691_v9 = vpop.eup %2690 }
0x1aa3   :  { %v1571_v18 = vadd.f32 1.0, %v2691_v9  ;;  %v2377_v9 = vld [vmem:[%s3513_s1 + $0x14] sm:$0xf] }
0x1aa4   :  { %vm1735_vm5 = vcmp.gt.f32.partialorder %v2377_v9, 0.5  ;;  %v1990_v9 = vld [vmem:[#allocation3 + $0x8] sm:$0xf] }
0x1aa5   :  { %2692 = vrcp.f32 %v1571_v18 }
0x1ab2   :  { %v2693_v19 = vpop.eup %2692 }
0x1ab3   :  { %v1575_v27 = vmul.f32 0.0, %v2693_v19 }
0x1b13   :  { %v1578_v21 = vpop.permute.xlu0 %1577 }
0x1b14   :  { %v1580_v22 = vmul.f32 %v2693_v19, %v1578_v21 }
0x1b16   :  { %1582 = vrot.lane.b32.xlu1 %v1580_v22, %s2874_s3 }
0x1b88   :  { %v1583_v20 = vpop.permute.xlu1 %1582 }
0x1b89   :  { %v1585_v32 = vadd.f32 %v1583_v20, %v1575_v27 }
0x1b8b   :  { %2694 = vtanh.f32 %v1585_v32 }
0x1b98   :  { %v2695_v25 = vpop.eup %2694 }
0x1b99   :  { %1588 = vrot.lane.b32.xlu0 %v2695_v25, %s2868_s15 }
0x1b9d   :  { %1598 = vrot.lane.b32.xlu0 %v1585_v32, %s2875_s24 }
0x1c0b   :  { %v1589_v26 = vpop.permute.xlu0 %1588 }
0x1c0c   :  { %v1591_v23 = vmul.f32 %v2693_v19, %v1589_v26 }
0x1c0e   :  { %1593 = vrot.lane.b32.xlu1 %v1591_v23, %s2874_s3 }
0x1c0f   :  { %v1599_v4 = vpop.permute.xlu0 %1598 }
0x1c10   :  { %v1601_v28 = vsel %vm1567_vm3, %v1599_v4, 0.0 }
0x1c11   :  { %1658 = vrot.lane.b32.xlu0 %v1601_v28, %s2874_s3 }
0x1c80   :  { %v1594_v24 = vpop.permute.xlu1 %1593 }
0x1c81   :  { %v1596_v33 = vsel %vm1567_vm3, %v1594_v24, 0.0 }
0x1c82   :  { %v1602_v7 = vpack.c.bf16 %v1596_v33, %v1596_v33 }
0x1c83   :  { %v1659_v42 = vpop.permute.xlu0 %1658 }
0x1c84   :  { %2457 = vmatmul.mubr.msk.bf16.vlgmr.msra.gmra.mxu0 %vm160_vm0, %v1602_v7 }
0x1c85   :  { %2469 = vmatpush3.bf16.msra.mxu0 %v3338_v15  ;;  %2472 = vmatprep.mubr.msk.bf16.mxu0 %vm2877_vm7, %v2876_v3 }
0x1c86   :  { %2470 = vmatprep.subr.bf16.mxu0 %v2876_v3 }
0x1c89   :  { %2471 = vmatpush3.bf16.msra.mxu0 %v3347_v47 }
0x1c8a   :  { %2484 = vmatprep.subr.bf16.mxu0 %v2876_v3 }
0x1d44   :  { %v1640_v8 = vpop.f32.mrf.mxu0 }
0x1d45   :  { %v1647_v12 = vadd.f32 %v1646_v10, %v1640_v8 }
0x1d46   :  { %v2458_v11 = vpop.f32.mrf.mxu0 }
0x1d47   :  { %2696 = vtanh.f32 %v1647_v12  ;;  %v2375_v36 = vmul.f32 -1.442695, %v1647_v12 }
0x1d48   :  { %v1643_v13 = vpop.f32.mrf.mxu0 }
0x1d49   :  { %2698 = vpow2.f32 %v2375_v36 }
0x1d4a   :  { %v2459_v34 = vpop.f32.mrf.mxu0 }
0x1d54   :  { %v2697_v35 = vpop.eup %2696 }
0x1d55   :  { %1663 = vrot.lane.b32.xlu1 %v2697_v35, %s2868_s15 }
0x1d56   :  { %v2699_v37 = vpop.eup %2698 }
0x1d57   :  { %v1653_v38 = vadd.f32 1.0, %v2699_v37 }
0x1d59   :  { %2700 = vrcp.f32 %v1653_v38  ;;  %v2380_v38 = vld [vmem:[%s3513_s1 + $0x10] sm:$0xf] }
0x1d5a   :  { %vm1821_vm9 = vcmp.gt.f32.partialorder %v2380_v38, 0.5 }
0x1d66   :  { %v2701_v39 = vpop.eup %2700 }
0x1d67   :  { %v1661_v43 = vmul.f32 %v2701_v39, %v1659_v42 }
0x1dc7   :  { %v1664_v40 = vpop.permute.xlu1 %1663 }
0x1dc8   :  { %v1666_v41 = vmul.f32 %v2701_v39, %v1664_v40 }
0x1dca   :  { %1668 = vrot.lane.b32.xlu1 %v1666_v41, %s2874_s3 }
0x1e3c   :  { %v1669_v44 = vpop.permute.xlu1 %1668 }
0x1e3d   :  { %v1671_v45 = vadd.f32 %v1669_v44, %v1661_v43 }
0x1e3f   :  { %2702 = vtanh.f32 %v1671_v45 }
0x1e4c   :  { %v2703_v46 = vpop.eup %2702 }
0x1e4d   :  { %1674 = vrot.lane.b32.xlu0 %v2703_v46, %s2868_s15 }
0x1e51   :  { %1684 = vrot.lane.b32.xlu0 %v1671_v45, %s2875_s24 }
0x1ebf   :  { %v1675_v49 = vpop.permute.xlu0 %1674 }
0x1ec0   :  { %v1677_v50 = vmul.f32 %v2701_v39, %v1675_v49 }
0x1ec2   :  { %1679 = vrot.lane.b32.xlu1 %v1677_v50, %s2874_s3 }
0x1ec3   :  { %v1685_v51 = vpop.permute.xlu0 %1684 }
0x1ec4   :  { %v1687_v52 = vsel %vm1649_vm4, %v1685_v51, %v1601_v28 }
0x1ec5   :  { %1744 = vrot.lane.b32.xlu0 %v1687_v52, %s2874_s3 }
0x1f34   :  { %v1680_v53 = vpop.permute.xlu1 %1679 }
0x1f35   :  { %v1682_v54 = vsel %vm1649_vm4, %v1680_v53, %v1596_v33 }
0x1f36   :  { %v1688_v55 = vpack.c.bf16 %v1682_v54, %v1682_v54 }
0x1f37   :  { %v1745_v6 = vpop.permute.xlu0 %1744 }
0x1f38   :  { %2465 = vmatmul.mubr.msk.bf16.vlgmr.msra.gmra.mxu1 %vm160_vm0, %v1688_v55 }
0x1f39   :  { %2477 = vmatpush3.bf16.msra.mxu1 %v3338_v15  ;;  %2480 = vmatprep.mubr.msk.bf16.mxu1 %vm2877_vm7, %v2876_v3 }
0x1f3a   :  { %2478 = vmatprep.subr.bf16.mxu1 %v2876_v3 }
0x1f3d   :  { %2479 = vmatpush3.bf16.msra.mxu1 %v3347_v47 }
0x1f3e   :  { %2492 = vmatprep.subr.bf16.mxu1 %v2876_v3 }
0x1ff8   :  { %v1726_v0 = vpop.f32.mrf.mxu1 }
0x1ff9   :  { %v1733_v31 = vadd.f32 %v1732_v56, %v1726_v0 }
0x1ffa   :  { %v2466_v57 = vpop.f32.mrf.mxu1 }
0x1ffb   :  { %2704 = vtanh.f32 %v1733_v31  ;;  %v2378_v61 = vmul.f32 -1.442695, %v1733_v31 }
0x1ffc   :  { %v1729_v58 = vpop.f32.mrf.mxu1 }
0x1ffd   :  { %2706 = vpow2.f32 %v2378_v61 }
0x1ffe   :  { %v2467_v59 = vpop.f32.mrf.mxu1 }
0x2008   :  { %v2705_v60 = vpop.eup %2704 }
0x2009   :  { %1749 = vrot.lane.b32.xlu1 %v2705_v60, %s2868_s15 }
0x200a   :  { %v2707_v62 = vpop.eup %2706 }
0x200b   :  { %v1739_v1 = vadd.f32 1.0, %v2707_v62 }
0x200d   :  { %2708 = vrcp.f32 %v1739_v1  ;;  %v2383_v1 = vld [vmem:[%s3513_s1 + $0xc] sm:$0xf] }
0x200e   :  { %vm1907_vm10 = vcmp.gt.f32.partialorder %v2383_v1, 0.5 }
0x201a   :  { %v2709_v63 = vpop.eup %2708 }
0x201b   :  { %v1747_v30 = vmul.f32 %v2709_v63, %v1745_v6 }
0x207b   :  { %v1750_v2 = vpop.permute.xlu1 %1749 }
0x207c   :  { %v1752_v5 = vmul.f32 %v2709_v63, %v1750_v2 }
0x207e   :  { %1754 = vrot.lane.b32.xlu1 %v1752_v5, %s2874_s3 }
0x20f0   :  { %v1755_v14 = vpop.permute.xlu1 %1754 }
0x20f1   :  { %v1757_v16 = vadd.f32 %v1755_v14, %v1747_v30 }
0x20f3   :  { %2710 = vtanh.f32 %v1757_v16 }
0x2100   :  { %v2711_v17 = vpop.eup %2710 }
0x2101   :  { %1760 = vrot.lane.b32.xlu0 %v2711_v17, %s2868_s15 }
0x2105   :  { %1770 = vrot.lane.b32.xlu0 %v1757_v16, %s2875_s24 }
0x2173   :  { %v1761_v18 = vpop.permute.xlu0 %1760 }
0x2174   :  { %v1763_v19 = vmul.f32 %v2709_v63, %v1761_v18 }
0x2176   :  { %1765 = vrot.lane.b32.xlu1 %v1763_v19, %s2874_s3 }
0x2177   :  { %v1771_v21 = vpop.permute.xlu0 %1770 }
0x2178   :  { %v1773_v22 = vsel %vm1735_vm5, %v1771_v21, %v1687_v52 }
0x2179   :  { %1830 = vrot.lane.b32.xlu0 %v1773_v22, %s2874_s3 }
0x21e8   :  { %v1766_v27 = vpop.permute.xlu1 %1765 }
0x21e9   :  { %v1768_v20 = vsel %vm1735_vm5, %v1766_v27, %v1682_v54 }
0x21ea   :  { %v1774_v32 = vpack.c.bf16 %v1768_v20, %v1768_v20 }
0x21eb   :  { %v1831_v13 = vpop.permute.xlu0 %1830 }
0x21ec   :  { %2473 = vmatmul.mubr.msk.bf16.vlgmr.msra.gmra.mxu0 %vm160_vm0, %v1774_v32 }
0x21ed   :  { %2485 = vmatpush3.bf16.msra.mxu0 %v3338_v15  ;;  %2488 = vmatprep.mubr.msk.bf16.mxu0 %vm2877_vm7, %v2876_v3 }
0x21ee   :  { %2486 = vmatprep.subr.bf16.mxu0 %v2876_v3 }
0x21f1   :  { %2487 = vmatpush3.bf16.msra.mxu0 %v3347_v47 }
0x21f2   :  { %2500 = vmatprep.subr.bf16.mxu0 %v2876_v3 }
0x22ac   :  { %v1812_v25 = vpop.f32.mrf.mxu0 }
0x22ad   :  { %v1819_v26 = vadd.f32 %v1818_v29, %v1812_v25 }
0x22ae   :  { %v2474_v23 = vpop.f32.mrf.mxu0 }
0x22af   :  { %2712 = vtanh.f32 %v1819_v26  ;;  %v2381_v33 = vmul.f32 -1.442695, %v1819_v26 }
0x22b0   :  { %v1815_v4 = vpop.f32.mrf.mxu0 }
0x22b1   :  { %2714 = vpow2.f32 %v2381_v33  ;;  %v2386_v33 = vld [vmem:[%s3513_s1 + $0x8] sm:$0xf] }
0x22b2   :  { %v2475_v28 = vpop.f32.mrf.mxu0  ;;  %vm1993_vm11 = vcmp.gt.f32.partialorder %v2386_v33, 0.5 }
0x22bc   :  { %v2713_v24 = vpop.eup %2712 }
0x22bd   :  { %1835 = vrot.lane.b32.xlu1 %v2713_v24, %s2868_s15 }
0x22be   :  { %v2715_v7 = vpop.eup %2714 }
0x22bf   :  { %v1825_v8 = vadd.f32 1.0, %v2715_v7 }
0x22c1   :  { %2716 = vrcp.f32 %v1825_v8 }
0x22ce   :  { %v2717_v10 = vpop.eup %2716 }
0x22cf   :  { %v1833_v34 = vmul.f32 %v2717_v10, %v1831_v13 }
0x232f   :  { %v1836_v12 = vpop.permute.xlu1 %1835 }
0x2330   :  { %v1838_v11 = vmul.f32 %v2717_v10, %v1836_v12 }
0x2332   :  { %1840 = vrot.lane.b32.xlu1 %v1838_v11, %s2874_s3 }
0x23a4   :  { %v1841_v35 = vpop.permute.xlu1 %1840 }
0x23a5   :  { %v1843_v36 = vadd.f32 %v1841_v35, %v1833_v34 }
0x23a7   :  { %2718 = vtanh.f32 %v1843_v36 }
0x23b4   :  { %v2719_v37 = vpop.eup %2718 }
0x23b5   :  { %1846 = vrot.lane.b32.xlu0 %v2719_v37, %s2868_s15 }
0x23b9   :  { %1856 = vrot.lane.b32.xlu0 %v1843_v36, %s2875_s24  ;;  %v2076_v36 = vld [vmem:[#allocation3 + $0x4] sm:$0xf] }
0x2427   :  { %v1847_v39 = vpop.permute.xlu0 %1846 }
0x2428   :  { %v1849_v40 = vmul.f32 %v2717_v10, %v1847_v39 }
0x242a   :  { %1851 = vrot.lane.b32.xlu1 %v1849_v40, %s2874_s3 }
0x242b   :  { %v1857_v41 = vpop.permute.xlu0 %1856 }
0x242c   :  { %v1859_v42 = vsel %vm1821_vm9, %v1857_v41, %v1773_v22 }
0x242d   :  { %1916 = vrot.lane.b32.xlu0 %v1859_v42, %s2874_s3 }
0x249c   :  { %v1852_v43 = vpop.permute.xlu1 %1851 }
0x249d   :  { %v1854_v44 = vsel %vm1821_vm9, %v1852_v43, %v1768_v20 }
0x249e   :  { %v1860_v45 = vpack.c.bf16 %v1854_v44, %v1854_v44 }
0x249f   :  { %v1917_v58 = vpop.permute.xlu0 %1916 }
0x24a0   :  { %2481 = vmatmul.mubr.msk.bf16.vlgmr.msra.gmra.mxu1 %vm160_vm0, %v1860_v45 }
0x24a1   :  { %2493 = vmatpush3.bf16.msra.mxu1 %v3338_v15  ;;  %2496 = vmatprep.mubr.msk.bf16.mxu1 %vm2877_vm7, %v2876_v3 }
0x24a2   :  { %2494 = vmatprep.subr.bf16.mxu1 %v2876_v3 }
0x24a5   :  { %2495 = vmatpush3.bf16.msra.mxu1 %v3347_v47 }
0x24a6   :  { %2508 = vmatprep.subr.mxu1 %v2876_v3 }
0x2560   :  { %v1898_v46 = vpop.f32.mrf.mxu1 }
0x2561   :  { %v1905_v49 = vadd.f32 %v1904_v48, %v1898_v46 }
0x2562   :  { %v2482_v50 = vpop.f32.mrf.mxu1 }
0x2563   :  { %2720 = vtanh.f32 %v1905_v49  ;;  %v2384_v54 = vmul.f32 -1.442695, %v1905_v49 }
0x2564   :  { %v1901_v51 = vpop.f32.mrf.mxu1 }
0x2565   :  { %2722 = vpow2.f32 %v2384_v54  ;;  %v2389_v54 = vld [vmem:[%s3513_s1 + $0x4] sm:$0xf] }
0x2566   :  { %v2483_v52 = vpop.f32.mrf.mxu1  ;;  %vm2079_vm12 = vcmp.gt.f32.partialorder %v2389_v54, 0.5 }
0x2570   :  { %v2721_v53 = vpop.eup %2720 }
0x2571   :  { %1921 = vrot.lane.b32.xlu1 %v2721_v53, %s2868_s15 }
0x2572   :  { %v2723_v55 = vpop.eup %2722 }
0x2573   :  { %v1911_v0 = vadd.f32 1.0, %v2723_v55 }
0x2575   :  { %2724 = vrcp.f32 %v1911_v0 }
0x2582   :  { %v2725_v56 = vpop.eup %2724 }
0x2583   :  { %v1919_v59 = vmul.f32 %v2725_v56, %v1917_v58 }
0x25e3   :  { %v1922_v31 = vpop.permute.xlu1 %1921 }
0x25e4   :  { %v1924_v57 = vmul.f32 %v2725_v56, %v1922_v31 }
0x25e6   :  { %1926 = vrot.lane.b32.xlu1 %v1924_v57, %s2874_s3 }
0x2658   :  { %v1927_v60 = vpop.permute.xlu1 %1926 }
0x2659   :  { %v1929_v61 = vadd.f32 %v1927_v60, %v1919_v59 }
0x265b   :  { %2726 = vtanh.f32 %v1929_v61 }
0x2668   :  { %v2727_v62 = vpop.eup %2726 }
0x2669   :  { %1932 = vrot.lane.b32.xlu0 %v2727_v62, %s2868_s15 }
0x266d   :  { %1942 = vrot.lane.b32.xlu0 %v1929_v61, %s2875_s24  ;;  %v2162_v61 = vld [vmem:[#allocation3] sm:$0xf] }
0x26db   :  { %v1933_v63 = vpop.permute.xlu0 %1932 }
0x26dc   :  { %v1935_v2 = vmul.f32 %v2725_v56, %v1933_v63 }
0x26de   :  { %1937 = vrot.lane.b32.xlu1 %v1935_v2, %s2874_s3 }
0x26df   :  { %v1943_v5 = vpop.permute.xlu0 %1942 }
0x26e0   :  { %v1945_v6 = vsel %vm1907_vm10, %v1943_v5, %v1859_v42 }
0x26e1   :  { %2002 = vrot.lane.b32.xlu0 %v1945_v6, %s2874_s3 }
0x2750   :  { %v1938_v30 = vpop.permute.xlu1 %1937 }
0x2751   :  { %v1940_v14 = vsel %vm1907_vm10, %v1938_v30, %v1854_v44 }
0x2752   :  { %v1946_v16 = vpack.c.bf16 %v1940_v14, %v1940_v14 }
0x2754   :  { %2489 = vmatmul.mubr.msk.bf16.vlgmr.msra.gmra.mxu0 %vm160_vm0, %v1946_v16 }
0x2755   :  { %2501 = vmatpush3.bf16.msra.mxu0 %v3338_v15  ;;  %2504 = vmatprep.mubr.msk.bf16.mxu0 %vm2877_vm7, %v2876_v3 }
0x2756   :  { %2502 = vmatprep.subr.bf16.mxu0 %v2876_v3 }
0x2759   :  { %2503 = vmatpush3.bf16.msra.mxu0 %v3347_v47  ;;  %v2003_v47 = vpop.permute.xlu0 %2002 }
0x2814   :  { %v1984_v17 = vpop.f32.mrf.mxu0 }
0x2815   :  { %v1991_v18 = vadd.f32 %v1990_v9, %v1984_v17 }
0x2816   :  { %v2490_v19 = vpop.f32.mrf.mxu0 }
0x2817   :  { %2728 = vtanh.f32 %v1991_v18  ;;  %v2387_v20 = vmul.f32 -1.442695, %v1991_v18 }
0x2818   :  { %v1987_v21 = vpop.f32.mrf.mxu0 }
0x2819   :  { %2730 = vpow2.f32 %v2387_v20  ;;  %v2217_v20 = vld [vmem:[%s3522_s10 + $0x10] sm:$0xff] }
0x281a   :  { %v2491_v22 = vpop.f32.mrf.mxu0 }
0x2824   :  { %v2729_v27 = vpop.eup %2728 }
0x2825   :  { %2007 = vrot.lane.b32.xlu1 %v2729_v27, %s2868_s15  ;;  %v2218_v27 = vld [vmem:[%s3522_s10 + $0x18] sm:$0xff] }
0x2826   :  { %v2731_v15 = vpop.eup %2730 }
0x2827   :  { %v1997_v32 = vadd.f32 1.0, %v2731_v15 }
0x2829   :  { %2732 = vrcp.f32 %v1997_v32  ;;  %v2216_v32 = vld [vmem:[%s3522_s10 + $0x8] sm:$0xff] }
0x2836   :  { %v2733_v25 = vpop.eup %2732 }
0x2837   :  { %v2005_v23 = vmul.f32 %v2733_v25, %v2003_v47  ;;  %v2164_v47 = vld [vmem:[%s3513_s1] sm:$0xf] }
0x2838   :  { %vm2165_vm13 = vcmp.gt.f32.partialorder %v2164_v47, 0.5 }
0x2897   :  { %v2008_v29 = vpop.permute.xlu1 %2007 }
0x2898   :  { %v2010_v26 = vmul.f32 %v2733_v25, %v2008_v29 }
0x289a   :  { %2012 = vrot.lane.b32.xlu1 %v2010_v26, %s2874_s3 }
0x290c   :  { %v2013_v4 = vpop.permute.xlu1 %2012 }
0x290d   :  { %v2015_v28 = vadd.f32 %v2013_v4, %v2005_v23  ;;  %v2393_v23 = vld [vmem:[%s3520_s8] ss:$0 sm:$0xff] }
0x290f   :  { %2734 = vtanh.f32 %v2015_v28 }
0x291c   :  { %v2735_v24 = vpop.eup %2734 }
0x291d   :  { %2018 = vrot.lane.b32.xlu0 %v2735_v24, %s2868_s15 }
0x2921   :  { %2028 = vrot.lane.b32.xlu0 %v2015_v28, %s2875_s24 }
0x298f   :  { %v2019_v7 = vpop.permute.xlu0 %2018 }
0x2990   :  { %v2021_v8 = vmul.f32 %v2733_v25, %v2019_v7  ;;  %v2215_v25 = vld [vmem:[%s3522_s10] sm:$0xff] }
0x2991   :  { %v2395_v7 = vld [vmem:[%s3523_s11] ss:$0 sm:$0xff] }
0x2992   :  { %2023 = vrot.lane.b32.xlu1 %v2021_v8, %s2874_s3 }
0x2993   :  { %v2029_v10 = vpop.permute.xlu0 %2028 }
0x2994   :  { %v2031_v12 = vsel %vm1993_vm11, %v2029_v10, %v1945_v6 }
0x2995   :  { %2088 = vrot.lane.b32.xlu0 %v2031_v12, %s2874_s3 }
0x2a04   :  { %v2024_v11 = vpop.permute.xlu1 %2023 }
0x2a05   :  { %v2026_v13 = vsel %vm1993_vm11, %v2024_v11, %v1940_v14 }
0x2a06   :  { %v2032_v34 = vpack.c.bf16 %v2026_v13, %v2026_v13 }
0x2a07   :  { %v2089_v49 = vpop.permute.xlu0 %2088 }
0x2a08   :  { %2497 = vmatmul.mubr.msk.bf16.vlgmr.msra.gmra.mxu1 %vm160_vm0, %v2032_v34 }
0x2a09   :  { %2516 = vmatprep.mubr.msk.f32.mxu1 %vm2877_vm7, %v2876_v3  ;;  %2509 = vmatpush3.msra.mxu1 %v2218_v27 }
0x2a0a   :  { %2510 = vmatprep.subr.mxu1 %v2876_v3 }
0x2a0b   :  { %2511 = vmatpush3.msra.mxu1 %v2217_v20 }
0x2a0c   :  { %2512 = vmatprep.subr.mxu1 %v2876_v3 }
0x2a0d   :  { %2513 = vmatpush3.msra.mxu1 %v2216_v32 }
0x2a0e   :  { %2514 = vmatprep.subr.mxu1 %v2876_v3  ;;  %v2394_v3 = vld [vmem:[%s3521_s9] ss:$0 sm:$0xff] }
0x2a0f   :  { %2515 = vmatpush3.msra.mxu1 %v2215_v25 }
0x2ac8   :  { %v2070_v35 = vpop.f32.mrf.mxu1 }
0x2ac9   :  { %v2077_v37 = vadd.f32 %v2076_v36, %v2070_v35 }
0x2aca   :  { %v2498_v38 = vpop.f32.mrf.mxu1 }
0x2acb   :  { %2736 = vtanh.f32 %v2077_v37  ;;  %v2390_v42 = vmul.f32 -1.442695, %v2077_v37 }
0x2acc   :  { %v2073_v39 = vpop.f32.mrf.mxu1 }
0x2acd   :  { %2738 = vpow2.f32 %v2390_v42 }
0x2ace   :  { %v2499_v40 = vpop.f32.mrf.mxu1 }
0x2ad8   :  { %v2737_v41 = vpop.eup %2736 }
0x2ad9   :  { %2093 = vrot.lane.b32.xlu1 %v2737_v41, %s2868_s15 }
0x2ada   :  { %v2739_v43 = vpop.eup %2738 }
0x2adb   :  { %v2083_v44 = vadd.f32 1.0, %v2739_v43 }
0x2add   :  { %2740 = vrcp.f32 %v2083_v44 }
0x2aea   :  { %v2741_v45 = vpop.eup %2740 }
0x2aeb   :  { %v2091_v50 = vmul.f32 %v2741_v45, %v2089_v49 }
0x2b4b   :  { %v2094_v46 = vpop.permute.xlu1 %2093 }
0x2b4c   :  { %v2096_v48 = vmul.f32 %v2741_v45, %v2094_v46 }
0x2b4e   :  { %2098 = vrot.lane.b32.xlu1 %v2096_v48, %s2874_s3 }
0x2bc0   :  { %v2099_v51 = vpop.permute.xlu1 %2098 }
0x2bc1   :  { %v2101_v52 = vadd.f32 %v2099_v51, %v2091_v50 }
0x2bc3   :  { %2742 = vtanh.f32 %v2101_v52 }
0x2bd0   :  { %v2743_v53 = vpop.eup %2742 }
0x2bd1   :  { %2104 = vrot.lane.b32.xlu0 %v2743_v53, %s2868_s15 }
0x2bd5   :  { %2114 = vrot.lane.b32.xlu0 %v2101_v52, %s2875_s24 }
0x2c43   :  { %v2105_v55 = vpop.permute.xlu0 %2104 }
0x2c44   :  { %v2107_v0 = vmul.f32 %v2741_v45, %v2105_v55 }
0x2c46   :  { %2109 = vrot.lane.b32.xlu1 %v2107_v0, %s2874_s3 }
0x2c47   :  { %v2115_v56 = vpop.permute.xlu0 %2114 }
0x2c48   :  { %v2117_v31 = vsel %vm2079_vm12, %v2115_v56, %v2031_v12 }
0x2c49   :  { %2174 = vrot.lane.b32.xlu0 %v2117_v31, %s2874_s3 }
0x2cb8   :  { %v2110_v57 = vpop.permute.xlu1 %2109 }
0x2cb9   :  { %v2112_v58 = vsel %vm2079_vm12, %v2110_v57, %v2026_v13 }
0x2cba   :  { %v2118_v59 = vpack.c.bf16 %v2112_v58, %v2112_v58 }
0x2cbb   :  { %v2175_v18 = vpop.permute.xlu0 %2174 }
0x2cbc   :  { %2505 = vmatmul.mubr.msk.bf16.vlgmr.msra.gmra.mxu0 %vm160_vm0, %v2118_v59 }
0x2d7c   :  { %v2156_v60 = vpop.f32.mrf.mxu0 }
0x2d7d   :  { %v2163_v62 = vadd.f32 %v2162_v61, %v2156_v60 }
0x2d7e   :  { %v2506_v1 = vpop.f32.mrf.mxu0 }
0x2d7f   :  { %2744 = vtanh.f32 %v2163_v62  ;;  %v2392_v6 = vmul.f32 -1.442695, %v2163_v62 }
0x2d80   :  { %v2159_v63 = vpop.f32.mrf.mxu0 }
0x2d81   :  { %2746 = vpow2.f32 %v2392_v6 }
0x2d82   :  { %v2507_v2 = vpop.f32.mrf.mxu0 }
0x2d8c   :  { %v2745_v5 = vpop.eup %2744 }
0x2d8d   :  { %2179 = vrot.lane.b32.xlu1 %v2745_v5, %s2868_s15 }
0x2d8e   :  { %v2747_v30 = vpop.eup %2746 }
0x2d8f   :  { %v2169_v14 = vadd.f32 1.0, %v2747_v30 }
0x2d91   :  { %2748 = vrcp.f32 %v2169_v14 }
0x2d9e   :  { %v2749_v16 = vpop.eup %2748 }
0x2d9f   :  { %v2177_v19 = vmul.f32 %v2749_v16, %v2175_v18 }
0x2dff   :  { %v2180_v17 = vpop.permute.xlu1 %2179 }
0x2e00   :  { %v2182_v9 = vmul.f32 %v2749_v16, %v2180_v17 }
0x2e02   :  { %2184 = vrot.lane.b32.xlu1 %v2182_v9, %s2874_s3 }
0x2e74   :  { %v2185_v21 = vpop.permute.xlu1 %2184 }
0x2e75   :  { %v2187_v22 = vadd.f32 %v2185_v21, %v2177_v19 }
0x2e77   :  { %2750 = vtanh.f32 %v2187_v22 }
0x2e84   :  { %v2751_v15 = vpop.eup %2750 }
0x2e85   :  { %2190 = vrot.lane.b32.xlu0 %v2751_v15, %s2868_s15 }
0x2ef7   :  { %v2191_v29 = vpop.permute.xlu0 %2190 }
0x2ef8   :  { %v2193_v26 = vmul.f32 %v2749_v16, %v2191_v29 }
0x2efa   :  { %2195 = vrot.lane.b32.xlu1 %v2193_v26, %s2874_s3 }
0x2f6c   :  { %v2196_v4 = vpop.permute.xlu1 %2195 }
0x2f6d   :  { %v2198_v28 = vsel %vm2165_vm13, %v2196_v4, %v2112_v58 }
0x2f6e   :  { %v2206_v24 = vmul.f32 %v2393_v23, %v2198_v28 }
0x2f70   :  { %v2214_v33 = vadd.f32 %v2394_v3, %v2206_v24 }
0x2f72   :  { %2517 = vmatmul.mubr.msk.f32.vlgmr.msra.gmra.mxu1 %vm160_vm0, %v2214_v33 }
0x3032   :  { %v2295_v8 = vpop.f32.mrf.mxu1 }
0x3033   :  { %v2296_v10 = vadd.f32 %v2395_v7, %v2295_v8 }
0x3034   :  { %v2518_v12 = vpop.f32.mrf.mxu1 }
0x3035   :  { %v2299_v11 = vmax.f32 %v2296_v10, 0.0 }
0x3037   :  { %2301 = vst.msk [vmem:[%s3524_s12] sm:$0xf] %vm2300_vm14, %v2299_v11 }
0x3038   :  { %2306 = vsyncpa [#allocation6], 1 }
0x3039   :  { %2307 = vsyncpa [#allocation8], 1 }
0x303a   :  { %2308 = vsyncpa [#allocation11], 1 }

</bundles_post_ra>
